<compile_context>
chip_gen: v7x
topology: tpu7x:2x2x1
jax: 0.10.0
libtpu: 0.0.40
codegen_flags: <defaults>
</compile_context>

<pallas_src>
import functools

import numpy as np
import jax
import jax.numpy as jnp
from jax import lax
from jax.experimental import pallas as pl
from jax.experimental.pallas import tpu as pltpu  # noqa: F401  (no scratch/grid needed here)

# ---------------- static architecture constants (never traced) ---------------- #
MLP_DIM = 20
TRAJ_FEAT = 8
D_MODEL = 128
NHEAD = 4
HEAD_DIM = D_MODEL // NHEAD
DFF = 256
FUSION_DIM = 256
C1, C2 = 8, 16            # conv channel counts
IMG_HW = 16               # hist image spatial size (16x16, Cin=1)
HW2 = IMG_HW // 2
HW4 = IMG_HW // 4
WC1 = IMG_HW * C1         # 128 lanes after conv1 (layout x*C1 + c)
WC2 = HW2 * C2            # 128 lanes after conv2 (layout x*C2 + c)
LN_EPS = 1e-5


def _layer_norm(x, g, b):
    mu = jnp.mean(x, axis=-1, keepdims=True)
    var = jnp.mean((x - mu) ** 2, axis=-1, keepdims=True)
    return (x - mu) * lax.rsqrt(var + LN_EPS) * g + b


# ----------------------------------------------------------------------------- #
# Fused forward kernel (single gridless pallas_call; everything resident in VMEM)
# ----------------------------------------------------------------------------- #
def _fused_kernel(
        # data
        mlp_in, traj, img,
        # host-built, batch-dependent constant matrices
        attn_mask, pool_m, rdn1, rup1, eh1, oh1, rdn2, rup2, eh2, oh2, sel_hist,
        # parameters (host-repacked)
        mlp_w1, mlp_b1, mlp_w2, mlp_b2,
        emb_w, emb_b, wqkv, bqkv, wo, bo,
        ln1_g, ln1_b, ffn_w1, ffn_b1, ffn_w2, ffn_b2, ln2_g, ln2_b,
        w1cat, b1t, w2cat, b2t, ew1, ow1, ew2, ow2,
        fw_mlp, fw_tr, fw_hist, fus_b1, fus_w2, fus_b2,
        # output
        out_ref):
    f32 = jnp.float32
    dot = functools.partial(jnp.dot, preferred_element_type=f32)
    relu = lambda t: jnp.maximum(t, 0.0)

    # ---------------- MLP branch ----------------
    h0 = relu(dot(mlp_in[...], mlp_w1[...]) + mlp_b1[...])
    mlp_out = relu(dot(h0, mlp_w2[...]) + mlp_b2[...])                       # (B,128)

    # ---------------- Transformer branch ----------------
    emb = dot(traj[...], emb_w[...]) + emb_b[...]                            # (B*S,128)
    qkv = dot(emb, wqkv[...]) + bqkv[...]                                    # (B*S,384); Q pre-scaled
    mask = attn_mask[...]                                                    # (B*S,B*S): 0 / -1e30
    wo_v = wo[...]
    attn = bo[...]                                                           # (1,128), broadcasts on add
    for h in range(NHEAD):                                                   # batched over B; no concats
        c0 = h * HEAD_DIM
        q = qkv[:, c0:c0 + HEAD_DIM]
        k = qkv[:, D_MODEL + c0:D_MODEL + c0 + HEAD_DIM]
        v = qkv[:, 2 * D_MODEL + c0:2 * D_MODEL + c0 + HEAD_DIM]
        s = lax.dot_general(q, k, (((1,), (1,)), ((), ())),
                            preferred_element_type=f32) + mask               # block-diag over batch
        s = s - jnp.max(s, axis=-1, keepdims=True)
        e = jnp.exp(s)
        p = e / jnp.sum(e, axis=-1, keepdims=True)
        attn = attn + dot(dot(p, v), wo_v[c0:c0 + HEAD_DIM, :])              # fold head into out-proj
    x1 = _layer_norm(emb + attn, ln1_g[...], ln1_b[...])                     # post-LN
    ffn = dot(relu(dot(x1, ffn_w1[...]) + ffn_b1[...]), ffn_w2[...]) + ffn_b2[...]
    x2 = _layer_norm(x1 + ffn, ln2_g[...], ln2_b[...])                       # (B*S,128)
    trans_out = dot(pool_m[...], x2)                                         # (B,128) mean over seq

    # ---------------- CNN branch (batch stacked along sublanes) ----------------
    # conv1: one banded matmul (dx shift + 1->8 channel expansion folded into w1cat),
    # plus two block-diagonal row-shift matmuls for dy = 0 / 2.
    a1 = dot(img[...], w1cat[...])                                           # (B*16, 3*128)
    conv1 = relu(dot(rdn1[...], a1[:, :WC1]) + a1[:, WC1:2 * WC1]
                 + dot(rup1[...], a1[:, 2 * WC1:]) + b1t[...])               # (B*16,128)
    pool1 = jnp.maximum(dot(eh1[...], conv1), dot(oh1[...], conv1))          # 2x2 maxpool: rows
    pool1 = jnp.maximum(dot(pool1, ew1[...]), dot(pool1, ow1[...]))          # (B*8,64)  lanes x*C1+c
    # conv2: same scheme, 8 -> 16 channels.
    a2 = dot(pool1, w2cat[...])                                              # (B*8, 3*128)
    conv2 = relu(dot(rdn2[...], a2[:, :WC2]) + a2[:, WC2:2 * WC2]
                 + dot(rup2[...], a2[:, 2 * WC2:]) + b2t[...])               # (B*8,128)
    pool2 = jnp.maximum(dot(eh2[...], conv2), dot(oh2[...], conv2))          # (B*4,128)
    pool2 = jnp.maximum(dot(pool2, ew2[...]), dot(pool2, ow2[...]))          # (B*4,64)  lanes x*C2+c

    # ---------------- Fusion head ----------------
    # Concat folded into row blocks of fus_w1; hist NCHW flatten folded into fw_hist's
    # host-side permutation.  Dropout(0.3) is identity at eval time.
    z = dot(mlp_out, fw_mlp[...]) + dot(trans_out, fw_tr[...]) + fus_b1[...]
    for i in range(HW4):
        z = z + dot(dot(sel_hist[i], pool2), fw_hist[i])
    z = relu(z)
    out_ref[...] = (dot(z, fus_w2[...]) + fus_b2[...]).astype(out_ref.dtype)


PARAM_ORDER = (
    "mlp_w1", "mlp_b1", "mlp_w2", "mlp_b2",
    "emb_w", "emb_b", "wqkv", "bqkv", "wo", "bo",
    "ln1_g", "ln1_b", "ffn_w1", "ffn_b1", "ffn_w2", "ffn_b2", "ln2_g", "ln2_b",
    "w1cat", "b1t", "w2cat", "b2t", "ew1", "ow1", "ew2", "ow2",
    "fw_mlp", "fw_tr", "fw_hist", "fus_b1", "fus_w2", "fus_b2",
)


@functools.lru_cache(maxsize=None)
def _batch_consts(B, S):
    """Host-built constant matrices that depend only on (B, S).  All tiny (< 20 KiB total)."""
    f32 = np.float32
    BS = B * S
    bid = np.repeat(np.arange(B), S)
    attn_mask = np.where(bid[:, None] == bid[None, :], 0.0, -1e30).astype(f32)
    pool_m = np.zeros((B, BS), f32)
    for b in range(B):
        pool_m[b, b * S:(b + 1) * S] = 1.0 / S

    def row_shifts(n):
        dn = np.zeros((B * n, B * n), f32)
        up = np.zeros((B * n, B * n), f32)
        for b in range(B):
            for y in range(1, n):
                dn[b * n + y, b * n + y - 1] = 1.0     # row y <- row y-1 (zero at y=0)
            for y in range(n - 1):
                up[b * n + y, b * n + y + 1] = 1.0     # row y <- row y+1 (zero at y=n-1)
        return dn, up

    def pool_rows(n):
        m = n // 2
        ev = np.zeros((B * m, B * n), f32)
        od = np.zeros((B * m, B * n), f32)
        for b in range(B):
            for i in range(m):
                ev[b * m + i, b * n + 2 * i] = 1.0
                od[b * m + i, b * n + 2 * i + 1] = 1.0
        return ev, od

    rdn1, rup1 = row_shifts(IMG_HW)
    rdn2, rup2 = row_shifts(HW2)
    eh1, oh1 = pool_rows(IMG_HW)
    eh2, oh2 = pool_rows(HW2)
    sel_hist = np.zeros((HW4, B, B * HW4), f32)        # picks pooled row (b*HW4 + i) for every b
    for i in range(HW4):
        for b in range(B):
            sel_hist[i, b, b * HW4 + i] = 1.0
    return (attn_mask, pool_m, rdn1, rup1, eh1, oh1, rdn2, rup2, eh2, oh2, sel_hist)


def multimodal_forward(params, mlp_input, traj_seq, hist_img, airspace_img):
    """Single fused gridless pallas_call.  airspace_img is accepted but unused (matches spec)."""
    del airspace_img
    B, S, _ = traj_seq.shape
    assert hist_img.shape[-2:] == (IMG_HW, IMG_HW) and hist_img.shape[-3] == 1, \
        "host-packed CNN weights assume 1x16x16 hist images"
    traj2d = traj_seq.reshape(B * S, TRAJ_FEAT)          # input-only layout glue
    img2d = hist_img.reshape(B * IMG_HW, IMG_HW)         # batch stacked along sublanes
    consts = _batch_consts(B, S)
    return pl.pallas_call(
        _fused_kernel,
        out_shape=jax.ShapeDtypeStruct((B, 2), jnp.float32),
    )(mlp_input, traj2d, img2d, *consts, *[params[k] for k in PARAM_ORDER])


# ----------------------------------------------------------------------------- #
# Parameters: raw (torch-like layouts) + one-time host repack into kernel layout
# ----------------------------------------------------------------------------- #
def init_raw_params(key):
    ks = iter(jax.random.split(key, 32))
    n = lambda shape, s=0.05: jax.random.normal(next(ks), shape, jnp.float32) * s
    z = lambda shape: jnp.zeros(shape, jnp.float32)
    return {
        "mlp_w1": n((MLP_DIM, 64)), "mlp_b1": z((64,)),
        "mlp_w2": n((64, D_MODEL)), "mlp_b2": z((D_MODEL,)),
        "emb_w": n((TRAJ_FEAT, D_MODEL)), "emb_b": z((D_MODEL,)),
        "wqkv": n((D_MODEL, 3 * D_MODEL)), "bqkv": z((3 * D_MODEL,)),
        "wo": n((D_MODEL, D_MODEL)), "bo": z((D_MODEL,)),
        "ln1_g": jnp.ones((D_MODEL,), jnp.float32), "ln1_b": z((D_MODEL,)),
        "ffn_w1": n((D_MODEL, DFF)), "ffn_b1": z((DFF,)),
        "ffn_w2": n((DFF, D_MODEL)), "ffn_b2": z((D_MODEL,)),
        "ln2_g": jnp.ones((D_MODEL,), jnp.float32), "ln2_b": z((D_MODEL,)),
        "conv1_w": n((3, 3, 1, C1)), "conv1_b": z((C1,)),       # HWIO
        "conv2_w": n((3, 3, C1, C2)), "conv2_b": z((C2,)),      # HWIO
        "fus_w1": n((2 * D_MODEL + C2 * HW4 * HW4, FUSION_DIM)),
        "fus_b1": z((FUSION_DIM,)),
        "fus_w2": n((FUSION_DIM, 2)), "fus_b2": z((2,)),
    }


def prepare_params(raw):
    """One-time host-side repack of weights into the fused-kernel layout."""
    f32 = np.float32
    p = {}
    # pass-through matmul weights
    for k in ("mlp_w1", "mlp_w2", "emb_w", "wo", "ffn_w1", "ffn_w2", "fus_w2"):
        p[k] = jnp.asarray(raw[k], jnp.float32)
    # biases / LN params as (1, N)
    for k in ("mlp_b1", "mlp_b2", "emb_b", "bo", "ln1_g", "ln1_b",
              "ffn_b1", "ffn_b2", "ln2_g", "ln2_b", "fus_b1", "fus_b2"):
        p[k] = jnp.asarray(raw[k], jnp.float32).reshape(1, -1)
    # fused QKV: fold 1/sqrt(dh) attention scale into the Q block
    scale = 1.0 / float(HEAD_DIM) ** 0.5
    wqkv = np.array(raw["wqkv"], f32)
    bqkv = np.array(raw["bqkv"], f32)
    wqkv[:, :D_MODEL] *= scale
    bqkv[:D_MODEL] *= scale
    p["wqkv"] = jnp.asarray(wqkv)
    p["bqkv"] = jnp.asarray(bqkv.reshape(1, -1))

    # conv layers: fold dx shift + channel expansion into banded (W_in, W_out*C) blocks per dy,
    # concatenated along lanes -> one matmul per conv layer in the kernel.
    w1 = np.array(raw["conv1_w"], f32)                           # (3,3,1,C1)
    W1 = np.zeros((3, IMG_HW, IMG_HW * C1), f32)
    for dy in range(3):
        for dx in range(3):
            for x in range(IMG_HW):
                xs = x + dx - 1
                if 0 <= xs < IMG_HW:
                    W1[dy, xs, x * C1:(x + 1) * C1] += w1[dy, dx, 0]
    p["w1cat"] = jnp.asarray(np.concatenate([W1[0], W1[1], W1[2]], axis=1))   # (16, 384)

    w2 = np.array(raw["conv2_w"], f32)                           # (3,3,C1,C2)
    W2 = np.zeros((3, HW2 * C1, HW2 * C2), f32)
    for dy in range(3):
        for dx in range(3):
            for x in range(HW2):
                xs = x + dx - 1
                if 0 <= xs < HW2:
                    W2[dy, xs * C1:(xs + 1) * C1, x * C2:(x + 1) * C2] += w2[dy, dx]
    p["w2cat"] = jnp.asarray(np.concatenate([W2[0], W2[1], W2[2]], axis=1))   # (64, 384)

    p["b1t"] = jnp.asarray(np.tile(np.array(raw["conv1_b"], f32), IMG_HW).reshape(1, -1))  # (1,128)
    p["b2t"] = jnp.asarray(np.tile(np.array(raw["conv2_b"], f32), HW2).reshape(1, -1))     # (1,128)

    # 2x2 max-pool lane-selection matrices (lanes laid out x*C + c; pick even / odd x)
    def pool_cols(n_x, c):
        m = n_x // 2
        ev = np.zeros((n_x * c, m * c), f32)
        od = np.zeros((n_x * c, m * c), f32)
        for xo in range(m):
            for ch in range(c):
                ev[(2 * xo) * c + ch, xo * c + ch] = 1.0
                od[(2 * xo + 1) * c + ch, xo * c + ch] = 1.0
        return jnp.asarray(ev), jnp.asarray(od)

    p["ew1"], p["ow1"] = pool_cols(IMG_HW, C1)    # (128, 64)
    p["ew2"], p["ow2"] = pool_cols(HW2, C2)       # (128, 64)

    # fusion layer 1: split into the three concat blocks; the hist block is reorganized so each
    # pooled row-block i gets its own (64, 256) weight (torch NCHW flatten order c*16+i*4+j).
    w1f = np.array(raw["fus_w1"], f32)
    p["fw_mlp"] = jnp.asarray(w1f[:D_MODEL])
    p["fw_tr"] = jnp.asarray(w1f[D_MODEL:2 * D_MODEL])
    hist = w1f[2 * D_MODEL:]
    fwh = np.zeros((HW4, HW4 * C2, FUSION_DIM), f32)
    for i in range(HW4):
        for j in range(HW4):
            for c in range(C2):
                fwh[i, j * C2 + c] = hist[c * HW4 * HW4 + i * HW4 + j]
    p["fw_hist"] = jnp.asarray(fwh)
    return p


# ----------------------------------------------------------------------------- #
# Pure-JAX reference of the same reconstructed architecture (for validation)
# ----------------------------------------------------------------------------- #
def reference_forward(raw, mlp_input, traj_seq, hist_img, airspace_img):
    del airspace_img
    relu = lambda t: jnp.maximum(t, 0.0)
    B, S, F = traj_seq.shape
    D, H, dh = D_MODEL, NHEAD, HEAD_DIM
    scale = 1.0 / float(dh) ** 0.5
    mlp_out = relu(relu(mlp_input @ raw["mlp_w1"] + raw["mlp_b1"]) @ raw["mlp_w2"] + raw["mlp_b2"])

    x = traj_seq.reshape(B * S, F) @ raw["emb_w"] + raw["emb_b"]
    qkv = (x @ raw["wqkv"] + raw["bqkv"]).reshape(B, S, 3 * D)
    heads = []
    for hh in range(H):
        q = qkv[:, :, hh * dh:(hh + 1) * dh]
        k = qkv[:, :, D + hh * dh:D + (hh + 1) * dh]
        v = qkv[:, :, 2 * D + hh * dh:2 * D + (hh + 1) * dh]
        s = jnp.einsum("bqd,bkd->bqk", q, k) * scale
        heads.append(jnp.einsum("bqk,bkd->bqd", jax.nn.softmax(s, axis=-1), v))
    attn = jnp.concatenate(heads, axis=-1).reshape(B * S, D) @ raw["wo"] + raw["bo"]

    def ln(t, g, b):
        mu = t.mean(-1, keepdims=True)
        var = ((t - mu) ** 2).mean(-1, keepdims=True)
        return (t - mu) / jnp.sqrt(var + LN_EPS) * g + b

    x1 = ln(x + attn, raw["ln1_g"], raw["ln1_b"])
    ffn = relu(x1 @ raw["ffn_w1"] + raw["ffn_b1"]) @ raw["ffn_w2"] + raw["ffn_b2"]
    x2 = ln(x1 + ffn, raw["ln2_g"], raw["ln2_b"])
    trans_out = x2.reshape(B, S, D).mean(axis=1)

    dn = ("NCHW", "HWIO", "NCHW")
    c1 = lax.conv_general_dilated(hist_img, raw["conv1_w"], (1, 1), [(1, 1), (1, 1)],
                                  dimension_numbers=dn)
    c1 = relu(c1 + raw["conv1_b"].reshape(1, C1, 1, 1))
    p1 = lax.reduce_window(c1, -jnp.inf, lax.max, (1, 1, 2, 2), (1, 1, 2, 2), "VALID")
    c2 = lax.conv_general_dilated(p1, raw["conv2_w"], (1, 1), [(1, 1), (1, 1)],
                                  dimension_numbers=dn)
    c2 = relu(c2 + raw["conv2_b"].reshape(1, C2, 1, 1))
    p2 = lax.reduce_window(c2, -jnp.inf, lax.max, (1, 1, 2, 2), (1, 1, 2, 2), "VALID")
    hist_out = p2.reshape(B, -1)

    fused = jnp.concatenate([mlp_out, trans_out, hist_out], axis=1)
    z = relu(fused @ raw["fus_w1"] + raw["fus_b1"])     # Dropout(0.3): identity at eval
    return z @ raw["fus_w2"] + raw["fus_b2"]


# ----------------------------------------------------------------------------- #
if __name__ == "__main__":
    key = jax.random.PRNGKey(0)
    k1, k2, k3, k4 = jax.random.split(key, 4)
    B, S = 2, 8
    mlp_input = jax.random.normal(k1, (B, MLP_DIM), jnp.float32)
    traj_seq = jax.random.normal(k2, (B, S, TRAJ_FEAT), jnp.float32)
    hist_img = jax.random.normal(k3, (B, 1, IMG_HW, IMG_HW), jnp.float32)       # NCHW
    airspace_img = jax.random.normal(k4, (B, 1, IMG_HW, IMG_HW), jnp.float32)   # unused

    raw = init_raw_params(jax.random.PRNGKey(42))
    params = prepare_params(raw)           # one-time host-side weight repack

    fwd = jax.jit(multimodal_forward)
    out = jax.block_until_ready(fwd(params, mlp_input, traj_seq, hist_img, airspace_img))

    assert out.shape == (B, 2) and out.dtype == jnp.float32
    assert bool(jnp.all(jnp.isfinite(out)))

    ref = reference_forward(raw, mlp_input, traj_seq, hist_img, airspace_img)
    max_diff = float(jnp.max(jnp.abs(out - ref)))
    assert bool(jnp.allclose(out, ref, atol=2e-3, rtol=2e-3)), f"mismatch vs reference: {max_diff}"

    print("KERNEL_OK")
</pallas_src>

<mosaic_0001>
module attributes {stable_mosaic.version = 11 : i64} {
  func.func @_fused_kernel(%arg0: memref<2x20xf32, #tpu.memory_space<vmem>>, %arg1: memref<16x8xf32, #tpu.memory_space<vmem>>, %arg2: memref<32x16xf32, #tpu.memory_space<vmem>>, %arg3: memref<16x16xf32, #tpu.memory_space<vmem>>, %arg4: memref<2x16xf32, #tpu.memory_space<vmem>>, %arg5: memref<32x32xf32, #tpu.memory_space<vmem>>, %arg6: memref<32x32xf32, #tpu.memory_space<vmem>>, %arg7: memref<16x32xf32, #tpu.memory_space<vmem>>, %arg8: memref<16x32xf32, #tpu.memory_space<vmem>>, %arg9: memref<16x16xf32, #tpu.memory_space<vmem>>, %arg10: memref<16x16xf32, #tpu.memory_space<vmem>>, %arg11: memref<8x16xf32, #tpu.memory_space<vmem>>, %arg12: memref<8x16xf32, #tpu.memory_space<vmem>>, %arg13: memref<4x2x8xf32, #tpu.memory_space<vmem>>, %arg14: memref<20x64xf32, #tpu.memory_space<vmem>>, %arg15: memref<1x64xf32, #tpu.memory_space<vmem>>, %arg16: memref<64x128xf32, #tpu.memory_space<vmem>>, %arg17: memref<1x128xf32, #tpu.memory_space<vmem>>, %arg18: memref<8x128xf32, #tpu.memory_space<vmem>>, %arg19: memref<1x128xf32, #tpu.memory_space<vmem>>, %arg20: memref<128x384xf32, #tpu.memory_space<vmem>>, %arg21: memref<1x384xf32, #tpu.memory_space<vmem>>, %arg22: memref<128x128xf32, #tpu.memory_space<vmem>>, %arg23: memref<1x128xf32, #tpu.memory_space<vmem>>, %arg24: memref<1x128xf32, #tpu.memory_space<vmem>>, %arg25: memref<1x128xf32, #tpu.memory_space<vmem>>, %arg26: memref<128x256xf32, #tpu.memory_space<vmem>>, %arg27: memref<1x256xf32, #tpu.memory_space<vmem>>, %arg28: memref<256x128xf32, #tpu.memory_space<vmem>>, %arg29: memref<1x128xf32, #tpu.memory_space<vmem>>, %arg30: memref<1x128xf32, #tpu.memory_space<vmem>>, %arg31: memref<1x128xf32, #tpu.memory_space<vmem>>, %arg32: memref<16x384xf32, #tpu.memory_space<vmem>>, %arg33: memref<1x128xf32, #tpu.memory_space<vmem>>, %arg34: memref<64x384xf32, #tpu.memory_space<vmem>>, %arg35: memref<1x128xf32, #tpu.memory_space<vmem>>, %arg36: memref<128x64xf32, #tpu.memory_space<vmem>>, %arg37: memref<128x64xf32, #tpu.memory_space<vmem>>, %arg38: memref<128x64xf32, #tpu.memory_space<vmem>>, %arg39: memref<128x64xf32, #tpu.memory_space<vmem>>, %arg40: memref<128x256xf32, #tpu.memory_space<vmem>>, %arg41: memref<128x256xf32, #tpu.memory_space<vmem>>, %arg42: memref<4x64x256xf32, #tpu.memory_space<vmem>>, %arg43: memref<1x256xf32, #tpu.memory_space<vmem>>, %arg44: memref<256x2xf32, #tpu.memory_space<vmem>>, %arg45: memref<1x2xf32, #tpu.memory_space<vmem>>, %arg46: memref<2x2xf32, #tpu.memory_space<vmem>>) attributes {dimension_semantics = [], scalar_prefetch = 0 : i64, scratch_operands = 0 : i64, tpu.core_type = #tpu.core_type<tc>} {
    %c0 = arith.constant 0 : index
    %c0_0 = arith.constant 0 : index
    %0 = vector.load %arg0[%c0, %c0_0] : memref<2x20xf32, #tpu.memory_space<vmem>>, vector<2x20xf32>
    %c0_1 = arith.constant 0 : index
    %c0_2 = arith.constant 0 : index
    %1 = vector.load %arg14[%c0_1, %c0_2] : memref<20x64xf32, #tpu.memory_space<vmem>>, vector<20x64xf32>
    %cst = arith.constant dense<0.000000e+00> : vector<2x64xf32>
    %2 = tpu.matmul %0, %1, %cst {dimension_numbers = #tpu.dot_dimension_numbers<[1], [0], [0], [1], [0, 0, 1, 1], [], []>} : vector<2x20xf32>, vector<20x64xf32>, vector<2x64xf32> -> vector<2x64xf32>
    %c0_3 = arith.constant 0 : index
    %c0_4 = arith.constant 0 : index
    %3 = vector.load %arg15[%c0_3, %c0_4] : memref<1x64xf32, #tpu.memory_space<vmem>>, vector<1x64xf32>
    %4 = vector.broadcast %3 : vector<1x64xf32> to vector<2x64xf32>
    %5 = arith.addf %2, %4 : vector<2x64xf32>
    %cst_5 = arith.constant 0.000000e+00 : f32
    %6 = vector.broadcast %cst_5 : f32 to vector<2x64xf32>
    %7 = arith.maximumf %5, %6 : vector<2x64xf32>
    %c0_6 = arith.constant 0 : index
    %c0_7 = arith.constant 0 : index
    %8 = vector.load %arg16[%c0_6, %c0_7] : memref<64x128xf32, #tpu.memory_space<vmem>>, vector<64x128xf32>
    %cst_8 = arith.constant dense<0.000000e+00> : vector<2x128xf32>
    %9 = tpu.matmul %7, %8, %cst_8 {dimension_numbers = #tpu.dot_dimension_numbers<[1], [0], [0], [1], [0, 0, 1, 1], [], []>} : vector<2x64xf32>, vector<64x128xf32>, vector<2x128xf32> -> vector<2x128xf32>
    %c0_9 = arith.constant 0 : index
    %c0_10 = arith.constant 0 : index
    %10 = vector.load %arg17[%c0_9, %c0_10] : memref<1x128xf32, #tpu.memory_space<vmem>>, vector<1x128xf32>
    %11 = vector.broadcast %10 : vector<1x128xf32> to vector<2x128xf32>
    %12 = arith.addf %9, %11 : vector<2x128xf32>
    %cst_11 = arith.constant 0.000000e+00 : f32
    %13 = vector.broadcast %cst_11 : f32 to vector<2x128xf32>
    %14 = arith.maximumf %12, %13 : vector<2x128xf32>
    %c0_12 = arith.constant 0 : index
    %c0_13 = arith.constant 0 : index
    %15 = vector.load %arg1[%c0_12, %c0_13] : memref<16x8xf32, #tpu.memory_space<vmem>>, vector<16x8xf32>
    %c0_14 = arith.constant 0 : index
    %c0_15 = arith.constant 0 : index
    %16 = vector.load %arg18[%c0_14, %c0_15] : memref<8x128xf32, #tpu.memory_space<vmem>>, vector<8x128xf32>
    %cst_16 = arith.constant dense<0.000000e+00> : vector<16x128xf32>
    %17 = tpu.matmul %15, %16, %cst_16 {dimension_numbers = #tpu.dot_dimension_numbers<[1], [0], [0], [1], [0, 0, 1, 1], [], []>} : vector<16x8xf32>, vector<8x128xf32>, vector<16x128xf32> -> vector<16x128xf32>
    %c0_17 = arith.constant 0 : index
    %c0_18 = arith.constant 0 : index
    %18 = vector.load %arg19[%c0_17, %c0_18] : memref<1x128xf32, #tpu.memory_space<vmem>>, vector<1x128xf32>
    %19 = vector.broadcast %18 : vector<1x128xf32> to vector<16x128xf32>
    %20 = arith.addf %17, %19 : vector<16x128xf32>
    %c0_19 = arith.constant 0 : index
    %c0_20 = arith.constant 0 : index
    %21 = vector.load %arg20[%c0_19, %c0_20] : memref<128x384xf32, #tpu.memory_space<vmem>>, vector<128x384xf32>
    %cst_21 = arith.constant dense<0.000000e+00> : vector<16x384xf32>
    %22 = tpu.matmul %20, %21, %cst_21 {dimension_numbers = #tpu.dot_dimension_numbers<[1], [0], [0], [1], [0, 0, 1, 1], [], []>} : vector<16x128xf32>, vector<128x384xf32>, vector<16x384xf32> -> vector<16x384xf32>
    %c0_22 = arith.constant 0 : index
    %c0_23 = arith.constant 0 : index
    %23 = vector.load %arg21[%c0_22, %c0_23] : memref<1x384xf32, #tpu.memory_space<vmem>>, vector<1x384xf32>
    %24 = vector.broadcast %23 : vector<1x384xf32> to vector<16x384xf32>
    %25 = arith.addf %22, %24 : vector<16x384xf32>
    %c0_24 = arith.constant 0 : index
    %c0_25 = arith.constant 0 : index
    %26 = vector.load %arg3[%c0_24, %c0_25] : memref<16x16xf32, #tpu.memory_space<vmem>>, vector<16x16xf32>
    %c0_26 = arith.constant 0 : index
    %c0_27 = arith.constant 0 : index
    %27 = vector.load %arg22[%c0_26, %c0_27] : memref<128x128xf32, #tpu.memory_space<vmem>>, vector<128x128xf32>
    %c0_28 = arith.constant 0 : index
    %c0_29 = arith.constant 0 : index
    %28 = vector.load %arg23[%c0_28, %c0_29] : memref<1x128xf32, #tpu.memory_space<vmem>>, vector<1x128xf32>
    %29 = vector.extract_strided_slice %25 {offsets = [0, 0], sizes = [16, 32], strides = [1, 1]} : vector<16x384xf32> to vector<16x32xf32>
    %30 = vector.extract_strided_slice %25 {offsets = [0, 128], sizes = [16, 32], strides = [1, 1]} : vector<16x384xf32> to vector<16x32xf32>
    %31 = vector.extract_strided_slice %25 {offsets = [0, 256], sizes = [16, 32], strides = [1, 1]} : vector<16x384xf32> to vector<16x32xf32>
    %cst_30 = arith.constant dense<0.000000e+00> : vector<16x16xf32>
    %32 = tpu.matmul %29, %30, %cst_30 {dimension_numbers = #tpu.dot_dimension_numbers<[1], [1], [0], [0], [0, 0, 1, 0], [], []>} : vector<16x32xf32>, vector<16x32xf32>, vector<16x16xf32> -> vector<16x16xf32>
    %33 = arith.addf %32, %26 : vector<16x16xf32>
    %cst_31 = arith.constant dense<0xFF800000> : vector<16xf32>
    %34 = vector.multi_reduction <maximumf>, %33, %cst_31 [1] : vector<16x16xf32> to vector<16xf32>
    %35 = vector.shape_cast %34 : vector<16xf32> to vector<16x1xf32>
    %36 = vector.broadcast %35 : vector<16x1xf32> to vector<16x16xf32>
    %37 = arith.subf %33, %36 : vector<16x16xf32>
    %38 = math.exp %37 : vector<16x16xf32>
    %cst_32 = arith.constant dense<0.000000e+00> : vector<16xf32>
    %39 = vector.multi_reduction <add>, %38, %cst_32 [1] : vector<16x16xf32> to vector<16xf32>
    %40 = vector.shape_cast %39 : vector<16xf32> to vector<16x1xf32>
    %41 = vector.broadcast %40 : vector<16x1xf32> to vector<16x16xf32>
    %42 = arith.divf %38, %41 : vector<16x16xf32>
    %cst_33 = arith.constant dense<0.000000e+00> : vector<16x32xf32>
    %43 = tpu.matmul %42, %31, %cst_33 {dimension_numbers = #tpu.dot_dimension_numbers<[1], [0], [0], [1], [0, 0, 1, 1], [], []>} : vector<16x16xf32>, vector<16x32xf32>, vector<16x32xf32> -> vector<16x32xf32>
    %44 = vector.extract_strided_slice %27 {offsets = [0, 0], sizes = [32, 128], strides = [1, 1]} : vector<128x128xf32> to vector<32x128xf32>
    %cst_34 = arith.constant dense<0.000000e+00> : vector<16x128xf32>
    %45 = tpu.matmul %43, %44, %cst_34 {dimension_numbers = #tpu.dot_dimension_numbers<[1], [0], [0], [1], [0, 0, 1, 1], [], []>} : vector<16x32xf32>, vector<32x128xf32>, vector<16x128xf32> -> vector<16x128xf32>
    %46 = vector.broadcast %28 : vector<1x128xf32> to vector<16x128xf32>
    %47 = arith.addf %46, %45 : vector<16x128xf32>
    %48 = vector.extract_strided_slice %25 {offsets = [0, 32], sizes = [16, 32], strides = [1, 1]} : vector<16x384xf32> to vector<16x32xf32>
    %49 = vector.extract_strided_slice %25 {offsets = [0, 160], sizes = [16, 32], strides = [1, 1]} : vector<16x384xf32> to vector<16x32xf32>
    %50 = vector.extract_strided_slice %25 {offsets = [0, 288], sizes = [16, 32], strides = [1, 1]} : vector<16x384xf32> to vector<16x32xf32>
    %cst_35 = arith.constant dense<0.000000e+00> : vector<16x16xf32>
    %51 = tpu.matmul %48, %49, %cst_35 {dimension_numbers = #tpu.dot_dimension_numbers<[1], [1], [0], [0], [0, 0, 1, 0], [], []>} : vector<16x32xf32>, vector<16x32xf32>, vector<16x16xf32> -> vector<16x16xf32>
    %52 = arith.addf %51, %26 : vector<16x16xf32>
    %cst_36 = arith.constant dense<0xFF800000> : vector<16xf32>
    %53 = vector.multi_reduction <maximumf>, %52, %cst_36 [1] : vector<16x16xf32> to vector<16xf32>
    %54 = vector.shape_cast %53 : vector<16xf32> to vector<16x1xf32>
    %55 = vector.broadcast %54 : vector<16x1xf32> to vector<16x16xf32>
    %56 = arith.subf %52, %55 : vector<16x16xf32>
    %57 = math.exp %56 : vector<16x16xf32>
    %cst_37 = arith.constant dense<0.000000e+00> : vector<16xf32>
    %58 = vector.multi_reduction <add>, %57, %cst_37 [1] : vector<16x16xf32> to vector<16xf32>
    %59 = vector.shape_cast %58 : vector<16xf32> to vector<16x1xf32>
    %60 = vector.broadcast %59 : vector<16x1xf32> to vector<16x16xf32>
    %61 = arith.divf %57, %60 : vector<16x16xf32>
    %cst_38 = arith.constant dense<0.000000e+00> : vector<16x32xf32>
    %62 = tpu.matmul %61, %50, %cst_38 {dimension_numbers = #tpu.dot_dimension_numbers<[1], [0], [0], [1], [0, 0, 1, 1], [], []>} : vector<16x16xf32>, vector<16x32xf32>, vector<16x32xf32> -> vector<16x32xf32>
    %63 = vector.extract_strided_slice %27 {offsets = [32, 0], sizes = [32, 128], strides = [1, 1]} : vector<128x128xf32> to vector<32x128xf32>
    %cst_39 = arith.constant dense<0.000000e+00> : vector<16x128xf32>
    %64 = tpu.matmul %62, %63, %cst_39 {dimension_numbers = #tpu.dot_dimension_numbers<[1], [0], [0], [1], [0, 0, 1, 1], [], []>} : vector<16x32xf32>, vector<32x128xf32>, vector<16x128xf32> -> vector<16x128xf32>
    %65 = arith.addf %47, %64 : vector<16x128xf32>
    %66 = vector.extract_strided_slice %25 {offsets = [0, 64], sizes = [16, 32], strides = [1, 1]} : vector<16x384xf32> to vector<16x32xf32>
    %67 = vector.extract_strided_slice %25 {offsets = [0, 192], sizes = [16, 32], strides = [1, 1]} : vector<16x384xf32> to vector<16x32xf32>
    %68 = vector.extract_strided_slice %25 {offsets = [0, 320], sizes = [16, 32], strides = [1, 1]} : vector<16x384xf32> to vector<16x32xf32>
    %cst_40 = arith.constant dense<0.000000e+00> : vector<16x16xf32>
    %69 = tpu.matmul %66, %67, %cst_40 {dimension_numbers = #tpu.dot_dimension_numbers<[1], [1], [0], [0], [0, 0, 1, 0], [], []>} : vector<16x32xf32>, vector<16x32xf32>, vector<16x16xf32> -> vector<16x16xf32>
    %70 = arith.addf %69, %26 : vector<16x16xf32>
    %cst_41 = arith.constant dense<0xFF800000> : vector<16xf32>
    %71 = vector.multi_reduction <maximumf>, %70, %cst_41 [1] : vector<16x16xf32> to vector<16xf32>
    %72 = vector.shape_cast %71 : vector<16xf32> to vector<16x1xf32>
    %73 = vector.broadcast %72 : vector<16x1xf32> to vector<16x16xf32>
    %74 = arith.subf %70, %73 : vector<16x16xf32>
    %75 = math.exp %74 : vector<16x16xf32>
    %cst_42 = arith.constant dense<0.000000e+00> : vector<16xf32>
    %76 = vector.multi_reduction <add>, %75, %cst_42 [1] : vector<16x16xf32> to vector<16xf32>
    %77 = vector.shape_cast %76 : vector<16xf32> to vector<16x1xf32>
    %78 = vector.broadcast %77 : vector<16x1xf32> to vector<16x16xf32>
    %79 = arith.divf %75, %78 : vector<16x16xf32>
    %cst_43 = arith.constant dense<0.000000e+00> : vector<16x32xf32>
    %80 = tpu.matmul %79, %68, %cst_43 {dimension_numbers = #tpu.dot_dimension_numbers<[1], [0], [0], [1], [0, 0, 1, 1], [], []>} : vector<16x16xf32>, vector<16x32xf32>, vector<16x32xf32> -> vector<16x32xf32>
    %81 = vector.extract_strided_slice %27 {offsets = [64, 0], sizes = [32, 128], strides = [1, 1]} : vector<128x128xf32> to vector<32x128xf32>
    %cst_44 = arith.constant dense<0.000000e+00> : vector<16x128xf32>
    %82 = tpu.matmul %80, %81, %cst_44 {dimension_numbers = #tpu.dot_dimension_numbers<[1], [0], [0], [1], [0, 0, 1, 1], [], []>} : vector<16x32xf32>, vector<32x128xf32>, vector<16x128xf32> -> vector<16x128xf32>
    %83 = arith.addf %65, %82 : vector<16x128xf32>
    %84 = vector.extract_strided_slice %25 {offsets = [0, 96], sizes = [16, 32], strides = [1, 1]} : vector<16x384xf32> to vector<16x32xf32>
    %85 = vector.extract_strided_slice %25 {offsets = [0, 224], sizes = [16, 32], strides = [1, 1]} : vector<16x384xf32> to vector<16x32xf32>
    %86 = vector.extract_strided_slice %25 {offsets = [0, 352], sizes = [16, 32], strides = [1, 1]} : vector<16x384xf32> to vector<16x32xf32>
    %cst_45 = arith.constant dense<0.000000e+00> : vector<16x16xf32>
    %87 = tpu.matmul %84, %85, %cst_45 {dimension_numbers = #tpu.dot_dimension_numbers<[1], [1], [0], [0], [0, 0, 1, 0], [], []>} : vector<16x32xf32>, vector<16x32xf32>, vector<16x16xf32> -> vector<16x16xf32>
    %88 = arith.addf %87, %26 : vector<16x16xf32>
    %cst_46 = arith.constant dense<0xFF800000> : vector<16xf32>
    %89 = vector.multi_reduction <maximumf>, %88, %cst_46 [1] : vector<16x16xf32> to vector<16xf32>
    %90 = vector.shape_cast %89 : vector<16xf32> to vector<16x1xf32>
    %91 = vector.broadcast %90 : vector<16x1xf32> to vector<16x16xf32>
    %92 = arith.subf %88, %91 : vector<16x16xf32>
    %93 = math.exp %92 : vector<16x16xf32>
    %cst_47 = arith.constant dense<0.000000e+00> : vector<16xf32>
    %94 = vector.multi_reduction <add>, %93, %cst_47 [1] : vector<16x16xf32> to vector<16xf32>
    %95 = vector.shape_cast %94 : vector<16xf32> to vector<16x1xf32>
    %96 = vector.broadcast %95 : vector<16x1xf32> to vector<16x16xf32>
    %97 = arith.divf %93, %96 : vector<16x16xf32>
    %cst_48 = arith.constant dense<0.000000e+00> : vector<16x32xf32>
    %98 = tpu.matmul %97, %86, %cst_48 {dimension_numbers = #tpu.dot_dimension_numbers<[1], [0], [0], [1], [0, 0, 1, 1], [], []>} : vector<16x16xf32>, vector<16x32xf32>, vector<16x32xf32> -> vector<16x32xf32>
    %99 = vector.extract_strided_slice %27 {offsets = [96, 0], sizes = [32, 128], strides = [1, 1]} : vector<128x128xf32> to vector<32x128xf32>
    %cst_49 = arith.constant dense<0.000000e+00> : vector<16x128xf32>
    %100 = tpu.matmul %98, %99, %cst_49 {dimension_numbers = #tpu.dot_dimension_numbers<[1], [0], [0], [1], [0, 0, 1, 1], [], []>} : vector<16x32xf32>, vector<32x128xf32>, vector<16x128xf32> -> vector<16x128xf32>
    %101 = arith.addf %83, %100 : vector<16x128xf32>
    %102 = arith.addf %20, %101 : vector<16x128xf32>
    %c0_50 = arith.constant 0 : index
    %c0_51 = arith.constant 0 : index
    %103 = vector.load %arg24[%c0_50, %c0_51] : memref<1x128xf32, #tpu.memory_space<vmem>>, vector<1x128xf32>
    %c0_52 = arith.constant 0 : index
    %c0_53 = arith.constant 0 : index
    %104 = vector.load %arg25[%c0_52, %c0_53] : memref<1x128xf32, #tpu.memory_space<vmem>>, vector<1x128xf32>
    %cst_54 = arith.constant dense<0.000000e+00> : vector<16xf32>
    %105 = vector.multi_reduction <add>, %102, %cst_54 [1] : vector<16x128xf32> to vector<16xf32>
    %106 = vector.shape_cast %105 : vector<16xf32> to vector<16x1xf32>
    %cst_55 = arith.constant 1.280000e+02 : f32
    %107 = vector.broadcast %cst_55 : f32 to vector<16x1xf32>
    %108 = arith.divf %106, %107 : vector<16x1xf32>
    %109 = vector.broadcast %108 : vector<16x1xf32> to vector<16x128xf32>
    %110 = arith.subf %102, %109 : vector<16x128xf32>
    %111 = arith.mulf %110, %110 : vector<16x128xf32>
    %cst_56 = arith.constant dense<0.000000e+00> : vector<16xf32>
    %112 = vector.multi_reduction <add>, %111, %cst_56 [1] : vector<16x128xf32> to vector<16xf32>
    %113 = vector.shape_cast %112 : vector<16xf32> to vector<16x1xf32>
    %cst_57 = arith.constant 1.280000e+02 : f32
    %114 = vector.broadcast %cst_57 : f32 to vector<16x1xf32>
    %115 = arith.divf %113, %114 : vector<16x1xf32>
    %116 = vector.broadcast %108 : vector<16x1xf32> to vector<16x128xf32>
    %117 = arith.subf %102, %116 : vector<16x128xf32>
    %cst_58 = arith.constant 9.99999974E-6 : f32
    %118 = vector.broadcast %cst_58 : f32 to vector<16x1xf32>
    %119 = arith.addf %115, %118 : vector<16x1xf32>
    %120 = math.rsqrt %119 : vector<16x1xf32>
    %121 = vector.broadcast %120 : vector<16x1xf32> to vector<16x128xf32>
    %122 = arith.mulf %117, %121 : vector<16x128xf32>
    %123 = vector.broadcast %103 : vector<1x128xf32> to vector<16x128xf32>
    %124 = arith.mulf %122, %123 : vector<16x128xf32>
    %125 = vector.broadcast %104 : vector<1x128xf32> to vector<16x128xf32>
    %126 = arith.addf %124, %125 : vector<16x128xf32>
    %c0_59 = arith.constant 0 : index
    %c0_60 = arith.constant 0 : index
    %127 = vector.load %arg26[%c0_59, %c0_60] : memref<128x256xf32, #tpu.memory_space<vmem>>, vector<128x256xf32>
    %cst_61 = arith.constant dense<0.000000e+00> : vector<16x256xf32>
    %128 = tpu.matmul %126, %127, %cst_61 {dimension_numbers = #tpu.dot_dimension_numbers<[1], [0], [0], [1], [0, 0, 1, 1], [], []>} : vector<16x128xf32>, vector<128x256xf32>, vector<16x256xf32> -> vector<16x256xf32>
    %c0_62 = arith.constant 0 : index
    %c0_63 = arith.constant 0 : index
    %129 = vector.load %arg27[%c0_62, %c0_63] : memref<1x256xf32, #tpu.memory_space<vmem>>, vector<1x256xf32>
    %130 = vector.broadcast %129 : vector<1x256xf32> to vector<16x256xf32>
    %131 = arith.addf %128, %130 : vector<16x256xf32>
    %cst_64 = arith.constant 0.000000e+00 : f32
    %132 = vector.broadcast %cst_64 : f32 to vector<16x256xf32>
    %133 = arith.maximumf %131, %132 : vector<16x256xf32>
    %c0_65 = arith.constant 0 : index
    %c0_66 = arith.constant 0 : index
    %134 = vector.load %arg28[%c0_65, %c0_66] : memref<256x128xf32, #tpu.memory_space<vmem>>, vector<256x128xf32>
    %cst_67 = arith.constant dense<0.000000e+00> : vector<16x128xf32>
    %135 = tpu.matmul %133, %134, %cst_67 {dimension_numbers = #tpu.dot_dimension_numbers<[1], [0], [0], [1], [0, 0, 1, 1], [], []>} : vector<16x256xf32>, vector<256x128xf32>, vector<16x128xf32> -> vector<16x128xf32>
    %c0_68 = arith.constant 0 : index
    %c0_69 = arith.constant 0 : index
    %136 = vector.load %arg29[%c0_68, %c0_69] : memref<1x128xf32, #tpu.memory_space<vmem>>, vector<1x128xf32>
    %137 = vector.broadcast %136 : vector<1x128xf32> to vector<16x128xf32>
    %138 = arith.addf %135, %137 : vector<16x128xf32>
    %139 = arith.addf %126, %138 : vector<16x128xf32>
    %c0_70 = arith.constant 0 : index
    %c0_71 = arith.constant 0 : index
    %140 = vector.load %arg30[%c0_70, %c0_71] : memref<1x128xf32, #tpu.memory_space<vmem>>, vector<1x128xf32>
    %c0_72 = arith.constant 0 : index
    %c0_73 = arith.constant 0 : index
    %141 = vector.load %arg31[%c0_72, %c0_73] : memref<1x128xf32, #tpu.memory_space<vmem>>, vector<1x128xf32>
    %cst_74 = arith.constant dense<0.000000e+00> : vector<16xf32>
    %142 = vector.multi_reduction <add>, %139, %cst_74 [1] : vector<16x128xf32> to vector<16xf32>
    %143 = vector.shape_cast %142 : vector<16xf32> to vector<16x1xf32>
    %cst_75 = arith.constant 1.280000e+02 : f32
    %144 = vector.broadcast %cst_75 : f32 to vector<16x1xf32>
    %145 = arith.divf %143, %144 : vector<16x1xf32>
    %146 = vector.broadcast %145 : vector<16x1xf32> to vector<16x128xf32>
    %147 = arith.subf %139, %146 : vector<16x128xf32>
    %148 = arith.mulf %147, %147 : vector<16x128xf32>
    %cst_76 = arith.constant dense<0.000000e+00> : vector<16xf32>
    %149 = vector.multi_reduction <add>, %148, %cst_76 [1] : vector<16x128xf32> to vector<16xf32>
    %150 = vector.shape_cast %149 : vector<16xf32> to vector<16x1xf32>
    %cst_77 = arith.constant 1.280000e+02 : f32
    %151 = vector.broadcast %cst_77 : f32 to vector<16x1xf32>
    %152 = arith.divf %150, %151 : vector<16x1xf32>
    %153 = vector.broadcast %145 : vector<16x1xf32> to vector<16x128xf32>
    %154 = arith.subf %139, %153 : vector<16x128xf32>
    %cst_78 = arith.constant 9.99999974E-6 : f32
    %155 = vector.broadcast %cst_78 : f32 to vector<16x1xf32>
    %156 = arith.addf %152, %155 : vector<16x1xf32>
    %157 = math.rsqrt %156 : vector<16x1xf32>
    %158 = vector.broadcast %157 : vector<16x1xf32> to vector<16x128xf32>
    %159 = arith.mulf %154, %158 : vector<16x128xf32>
    %160 = vector.broadcast %140 : vector<1x128xf32> to vector<16x128xf32>
    %161 = arith.mulf %159, %160 : vector<16x128xf32>
    %162 = vector.broadcast %141 : vector<1x128xf32> to vector<16x128xf32>
    %163 = arith.addf %161, %162 : vector<16x128xf32>
    %c0_79 = arith.constant 0 : index
    %c0_80 = arith.constant 0 : index
    %164 = vector.load %arg4[%c0_79, %c0_80] : memref<2x16xf32, #tpu.memory_space<vmem>>, vector<2x16xf32>
    %cst_81 = arith.constant dense<0.000000e+00> : vector<2x128xf32>
    %165 = tpu.matmul %164, %163, %cst_81 {dimension_numbers = #tpu.dot_dimension_numbers<[1], [0], [0], [1], [0, 0, 1, 1], [], []>} : vector<2x16xf32>, vector<16x128xf32>, vector<2x128xf32> -> vector<2x128xf32>
    %c0_82 = arith.constant 0 : index
    %c0_83 = arith.constant 0 : index
    %166 = vector.load %arg2[%c0_82, %c0_83] : memref<32x16xf32, #tpu.memory_space<vmem>>, vector<32x16xf32>
    %c0_84 = arith.constant 0 : index
    %c0_85 = arith.constant 0 : index
    %167 = vector.load %arg32[%c0_84, %c0_85] : memref<16x384xf32, #tpu.memory_space<vmem>>, vector<16x384xf32>
    %cst_86 = arith.constant dense<0.000000e+00> : vector<32x384xf32>
    %168 = tpu.matmul %166, %167, %cst_86 {dimension_numbers = #tpu.dot_dimension_numbers<[1], [0], [0], [1], [0, 0, 1, 1], [], []>} : vector<32x16xf32>, vector<16x384xf32>, vector<32x384xf32> -> vector<32x384xf32>
    %c0_87 = arith.constant 0 : index
    %c0_88 = arith.constant 0 : index
    %169 = vector.load %arg5[%c0_87, %c0_88] : memref<32x32xf32, #tpu.memory_space<vmem>>, vector<32x32xf32>
    %170 = vector.extract_strided_slice %168 {offsets = [0, 0], sizes = [32, 128], strides = [1, 1]} : vector<32x384xf32> to vector<32x128xf32>
    %cst_89 = arith.constant dense<0.000000e+00> : vector<32x128xf32>
    %171 = tpu.matmul %169, %170, %cst_89 {dimension_numbers = #tpu.dot_dimension_numbers<[1], [0], [0], [1], [0, 0, 1, 1], [], []>} : vector<32x32xf32>, vector<32x128xf32>, vector<32x128xf32> -> vector<32x128xf32>
    %172 = vector.extract_strided_slice %168 {offsets = [0, 128], sizes = [32, 128], strides = [1, 1]} : vector<32x384xf32> to vector<32x128xf32>
    %173 = arith.addf %171, %172 : vector<32x128xf32>
    %c0_90 = arith.constant 0 : index
    %c0_91 = arith.constant 0 : index
    %174 = vector.load %arg6[%c0_90, %c0_91] : memref<32x32xf32, #tpu.memory_space<vmem>>, vector<32x32xf32>
    %175 = vector.extract_strided_slice %168 {offsets = [0, 256], sizes = [32, 128], strides = [1, 1]} : vector<32x384xf32> to vector<32x128xf32>
    %cst_92 = arith.constant dense<0.000000e+00> : vector<32x128xf32>
    %176 = tpu.matmul %174, %175, %cst_92 {dimension_numbers = #tpu.dot_dimension_numbers<[1], [0], [0], [1], [0, 0, 1, 1], [], []>} : vector<32x32xf32>, vector<32x128xf32>, vector<32x128xf32> -> vector<32x128xf32>
    %177 = arith.addf %173, %176 : vector<32x128xf32>
    %c0_93 = arith.constant 0 : index
    %c0_94 = arith.constant 0 : index
    %178 = vector.load %arg33[%c0_93, %c0_94] : memref<1x128xf32, #tpu.memory_space<vmem>>, vector<1x128xf32>
    %179 = vector.broadcast %178 : vector<1x128xf32> to vector<32x128xf32>
    %180 = arith.addf %177, %179 : vector<32x128xf32>
    %cst_95 = arith.constant 0.000000e+00 : f32
    %181 = vector.broadcast %cst_95 : f32 to vector<32x128xf32>
    %182 = arith.maximumf %180, %181 : vector<32x128xf32>
    %c0_96 = arith.constant 0 : index
    %c0_97 = arith.constant 0 : index
    %183 = vector.load %arg7[%c0_96, %c0_97] : memref<16x32xf32, #tpu.memory_space<vmem>>, vector<16x32xf32>
    %cst_98 = arith.constant dense<0.000000e+00> : vector<16x128xf32>
    %184 = tpu.matmul %183, %182, %cst_98 {dimension_numbers = #tpu.dot_dimension_numbers<[1], [0], [0], [1], [0, 0, 1, 1], [], []>} : vector<16x32xf32>, vector<32x128xf32>, vector<16x128xf32> -> vector<16x128xf32>
    %c0_99 = arith.constant 0 : index
    %c0_100 = arith.constant 0 : index
    %185 = vector.load %arg8[%c0_99, %c0_100] : memref<16x32xf32, #tpu.memory_space<vmem>>, vector<16x32xf32>
    %cst_101 = arith.constant dense<0.000000e+00> : vector<16x128xf32>
    %186 = tpu.matmul %185, %182, %cst_101 {dimension_numbers = #tpu.dot_dimension_numbers<[1], [0], [0], [1], [0, 0, 1, 1], [], []>} : vector<16x32xf32>, vector<32x128xf32>, vector<16x128xf32> -> vector<16x128xf32>
    %187 = arith.maximumf %184, %186 : vector<16x128xf32>
    %c0_102 = arith.constant 0 : index
    %c0_103 = arith.constant 0 : index
    %188 = vector.load %arg36[%c0_102, %c0_103] : memref<128x64xf32, #tpu.memory_space<vmem>>, vector<128x64xf32>
    %cst_104 = arith.constant dense<0.000000e+00> : vector<16x64xf32>
    %189 = tpu.matmul %187, %188, %cst_104 {dimension_numbers = #tpu.dot_dimension_numbers<[1], [0], [0], [1], [0, 0, 1, 1], [], []>} : vector<16x128xf32>, vector<128x64xf32>, vector<16x64xf32> -> vector<16x64xf32>
    %c0_105 = arith.constant 0 : index
    %c0_106 = arith.constant 0 : index
    %190 = vector.load %arg37[%c0_105, %c0_106] : memref<128x64xf32, #tpu.memory_space<vmem>>, vector<128x64xf32>
    %cst_107 = arith.constant dense<0.000000e+00> : vector<16x64xf32>
    %191 = tpu.matmul %187, %190, %cst_107 {dimension_numbers = #tpu.dot_dimension_numbers<[1], [0], [0], [1], [0, 0, 1, 1], [], []>} : vector<16x128xf32>, vector<128x64xf32>, vector<16x64xf32> -> vector<16x64xf32>
    %192 = arith.maximumf %189, %191 : vector<16x64xf32>
    %c0_108 = arith.constant 0 : index
    %c0_109 = arith.constant 0 : index
    %193 = vector.load %arg34[%c0_108, %c0_109] : memref<64x384xf32, #tpu.memory_space<vmem>>, vector<64x384xf32>
    %cst_110 = arith.constant dense<0.000000e+00> : vector<16x384xf32>
    %194 = tpu.matmul %192, %193, %cst_110 {dimension_numbers = #tpu.dot_dimension_numbers<[1], [0], [0], [1], [0, 0, 1, 1], [], []>} : vector<16x64xf32>, vector<64x384xf32>, vector<16x384xf32> -> vector<16x384xf32>
    %c0_111 = arith.constant 0 : index
    %c0_112 = arith.constant 0 : index
    %195 = vector.load %arg9[%c0_111, %c0_112] : memref<16x16xf32, #tpu.memory_space<vmem>>, vector<16x16xf32>
    %196 = vector.extract_strided_slice %194 {offsets = [0, 0], sizes = [16, 128], strides = [1, 1]} : vector<16x384xf32> to vector<16x128xf32>
    %cst_113 = arith.constant dense<0.000000e+00> : vector<16x128xf32>
    %197 = tpu.matmul %195, %196, %cst_113 {dimension_numbers = #tpu.dot_dimension_numbers<[1], [0], [0], [1], [0, 0, 1, 1], [], []>} : vector<16x16xf32>, vector<16x128xf32>, vector<16x128xf32> -> vector<16x128xf32>
    %198 = vector.extract_strided_slice %194 {offsets = [0, 128], sizes = [16, 128], strides = [1, 1]} : vector<16x384xf32> to vector<16x128xf32>
    %199 = arith.addf %197, %198 : vector<16x128xf32>
    %c0_114 = arith.constant 0 : index
    %c0_115 = arith.constant 0 : index
    %200 = vector.load %arg10[%c0_114, %c0_115] : memref<16x16xf32, #tpu.memory_space<vmem>>, vector<16x16xf32>
    %201 = vector.extract_strided_slice %194 {offsets = [0, 256], sizes = [16, 128], strides = [1, 1]} : vector<16x384xf32> to vector<16x128xf32>
    %cst_116 = arith.constant dense<0.000000e+00> : vector<16x128xf32>
    %202 = tpu.matmul %200, %201, %cst_116 {dimension_numbers = #tpu.dot_dimension_numbers<[1], [0], [0], [1], [0, 0, 1, 1], [], []>} : vector<16x16xf32>, vector<16x128xf32>, vector<16x128xf32> -> vector<16x128xf32>
    %203 = arith.addf %199, %202 : vector<16x128xf32>
    %c0_117 = arith.constant 0 : index
    %c0_118 = arith.constant 0 : index
    %204 = vector.load %arg35[%c0_117, %c0_118] : memref<1x128xf32, #tpu.memory_space<vmem>>, vector<1x128xf32>
    %205 = vector.broadcast %204 : vector<1x128xf32> to vector<16x128xf32>
    %206 = arith.addf %203, %205 : vector<16x128xf32>
    %cst_119 = arith.constant 0.000000e+00 : f32
    %207 = vector.broadcast %cst_119 : f32 to vector<16x128xf32>
    %208 = arith.maximumf %206, %207 : vector<16x128xf32>
    %c0_120 = arith.constant 0 : index
    %c0_121 = arith.constant 0 : index
    %209 = vector.load %arg11[%c0_120, %c0_121] : memref<8x16xf32, #tpu.memory_space<vmem>>, vector<8x16xf32>
    %cst_122 = arith.constant dense<0.000000e+00> : vector<8x128xf32>
    %210 = tpu.matmul %209, %208, %cst_122 {dimension_numbers = #tpu.dot_dimension_numbers<[1], [0], [0], [1], [0, 0, 1, 1], [], []>} : vector<8x16xf32>, vector<16x128xf32>, vector<8x128xf32> -> vector<8x128xf32>
    %c0_123 = arith.constant 0 : index
    %c0_124 = arith.constant 0 : index
    %211 = vector.load %arg12[%c0_123, %c0_124] : memref<8x16xf32, #tpu.memory_space<vmem>>, vector<8x16xf32>
    %cst_125 = arith.constant dense<0.000000e+00> : vector<8x128xf32>
    %212 = tpu.matmul %211, %208, %cst_125 {dimension_numbers = #tpu.dot_dimension_numbers<[1], [0], [0], [1], [0, 0, 1, 1], [], []>} : vector<8x16xf32>, vector<16x128xf32>, vector<8x128xf32> -> vector<8x128xf32>
    %213 = arith.maximumf %210, %212 : vector<8x128xf32>
    %c0_126 = arith.constant 0 : index
    %c0_127 = arith.constant 0 : index
    %214 = vector.load %arg38[%c0_126, %c0_127] : memref<128x64xf32, #tpu.memory_space<vmem>>, vector<128x64xf32>
    %cst_128 = arith.constant dense<0.000000e+00> : vector<8x64xf32>
    %215 = tpu.matmul %213, %214, %cst_128 {dimension_numbers = #tpu.dot_dimension_numbers<[1], [0], [0], [1], [0, 0, 1, 1], [], []>} : vector<8x128xf32>, vector<128x64xf32>, vector<8x64xf32> -> vector<8x64xf32>
    %c0_129 = arith.constant 0 : index
    %c0_130 = arith.constant 0 : index
    %216 = vector.load %arg39[%c0_129, %c0_130] : memref<128x64xf32, #tpu.memory_space<vmem>>, vector<128x64xf32>
    %cst_131 = arith.constant dense<0.000000e+00> : vector<8x64xf32>
    %217 = tpu.matmul %213, %216, %cst_131 {dimension_numbers = #tpu.dot_dimension_numbers<[1], [0], [0], [1], [0, 0, 1, 1], [], []>} : vector<8x128xf32>, vector<128x64xf32>, vector<8x64xf32> -> vector<8x64xf32>
    %218 = arith.maximumf %215, %217 : vector<8x64xf32>
    %c0_132 = arith.constant 0 : index
    %c0_133 = arith.constant 0 : index
    %219 = vector.load %arg40[%c0_132, %c0_133] : memref<128x256xf32, #tpu.memory_space<vmem>>, vector<128x256xf32>
    %cst_134 = arith.constant dense<0.000000e+00> : vector<2x256xf32>
    %220 = tpu.matmul %14, %219, %cst_134 {dimension_numbers = #tpu.dot_dimension_numbers<[1], [0], [0], [1], [0, 0, 1, 1], [], []>} : vector<2x128xf32>, vector<128x256xf32>, vector<2x256xf32> -> vector<2x256xf32>
    %c0_135 = arith.constant 0 : index
    %c0_136 = arith.constant 0 : index
    %221 = vector.load %arg41[%c0_135, %c0_136] : memref<128x256xf32, #tpu.memory_space<vmem>>, vector<128x256xf32>
    %cst_137 = arith.constant dense<0.000000e+00> : vector<2x256xf32>
    %222 = tpu.matmul %165, %221, %cst_137 {dimension_numbers = #tpu.dot_dimension_numbers<[1], [0], [0], [1], [0, 0, 1, 1], [], []>} : vector<2x128xf32>, vector<128x256xf32>, vector<2x256xf32> -> vector<2x256xf32>
    %223 = arith.addf %220, %222 : vector<2x256xf32>
    %c0_138 = arith.constant 0 : index
    %c0_139 = arith.constant 0 : index
    %224 = vector.load %arg43[%c0_138, %c0_139] : memref<1x256xf32, #tpu.memory_space<vmem>>, vector<1x256xf32>
    %225 = vector.broadcast %224 : vector<1x256xf32> to vector<2x256xf32>
    %226 = arith.addf %223, %225 : vector<2x256xf32>
    %c0_140 = arith.constant 0 : index
    %c0_141 = arith.constant 0 : index
    %c0_142 = arith.constant 0 : index
    %227 = vector.load %arg13[%c0_140, %c0_141, %c0_142] : memref<4x2x8xf32, #tpu.memory_space<vmem>>, vector<1x2x8xf32>
    %228 = vector.shape_cast %227 : vector<1x2x8xf32> to vector<2x8xf32>
    %cst_143 = arith.constant dense<0.000000e+00> : vector<2x64xf32>
    %229 = tpu.matmul %228, %218, %cst_143 {dimension_numbers = #tpu.dot_dimension_numbers<[1], [0], [0], [1], [0, 0, 1, 1], [], []>} : vector<2x8xf32>, vector<8x64xf32>, vector<2x64xf32> -> vector<2x64xf32>
    %c0_144 = arith.constant 0 : index
    %c0_145 = arith.constant 0 : index
    %c0_146 = arith.constant 0 : index
    %230 = vector.load %arg42[%c0_144, %c0_145, %c0_146] : memref<4x64x256xf32, #tpu.memory_space<vmem>>, vector<1x64x256xf32>
    %231 = vector.shape_cast %230 : vector<1x64x256xf32> to vector<64x256xf32>
    %cst_147 = arith.constant dense<0.000000e+00> : vector<2x256xf32>
    %232 = tpu.matmul %229, %231, %cst_147 {dimension_numbers = #tpu.dot_dimension_numbers<[1], [0], [0], [1], [0, 0, 1, 1], [], []>} : vector<2x64xf32>, vector<64x256xf32>, vector<2x256xf32> -> vector<2x256xf32>
    %233 = arith.addf %226, %232 : vector<2x256xf32>
    %c1 = arith.constant 1 : index
    %c0_148 = arith.constant 0 : index
    %c0_149 = arith.constant 0 : index
    %234 = vector.load %arg13[%c1, %c0_148, %c0_149] : memref<4x2x8xf32, #tpu.memory_space<vmem>>, vector<1x2x8xf32>
    %235 = vector.shape_cast %234 : vector<1x2x8xf32> to vector<2x8xf32>
    %cst_150 = arith.constant dense<0.000000e+00> : vector<2x64xf32>
    %236 = tpu.matmul %235, %218, %cst_150 {dimension_numbers = #tpu.dot_dimension_numbers<[1], [0], [0], [1], [0, 0, 1, 1], [], []>} : vector<2x8xf32>, vector<8x64xf32>, vector<2x64xf32> -> vector<2x64xf32>
    %c1_151 = arith.constant 1 : index
    %c0_152 = arith.constant 0 : index
    %c0_153 = arith.constant 0 : index
    %237 = vector.load %arg42[%c1_151, %c0_152, %c0_153] : memref<4x64x256xf32, #tpu.memory_space<vmem>>, vector<1x64x256xf32>
    %238 = vector.shape_cast %237 : vector<1x64x256xf32> to vector<64x256xf32>
    %cst_154 = arith.constant dense<0.000000e+00> : vector<2x256xf32>
    %239 = tpu.matmul %236, %238, %cst_154 {dimension_numbers = #tpu.dot_dimension_numbers<[1], [0], [0], [1], [0, 0, 1, 1], [], []>} : vector<2x64xf32>, vector<64x256xf32>, vector<2x256xf32> -> vector<2x256xf32>
    %240 = arith.addf %233, %239 : vector<2x256xf32>
    %c2 = arith.constant 2 : index
    %c0_155 = arith.constant 0 : index
    %c0_156 = arith.constant 0 : index
    %241 = vector.load %arg13[%c2, %c0_155, %c0_156] : memref<4x2x8xf32, #tpu.memory_space<vmem>>, vector<1x2x8xf32>
    %242 = vector.shape_cast %241 : vector<1x2x8xf32> to vector<2x8xf32>
    %cst_157 = arith.constant dense<0.000000e+00> : vector<2x64xf32>
    %243 = tpu.matmul %242, %218, %cst_157 {dimension_numbers = #tpu.dot_dimension_numbers<[1], [0], [0], [1], [0, 0, 1, 1], [], []>} : vector<2x8xf32>, vector<8x64xf32>, vector<2x64xf32> -> vector<2x64xf32>
    %c2_158 = arith.constant 2 : index
    %c0_159 = arith.constant 0 : index
    %c0_160 = arith.constant 0 : index
    %244 = vector.load %arg42[%c2_158, %c0_159, %c0_160] : memref<4x64x256xf32, #tpu.memory_space<vmem>>, vector<1x64x256xf32>
    %245 = vector.shape_cast %244 : vector<1x64x256xf32> to vector<64x256xf32>
    %cst_161 = arith.constant dense<0.000000e+00> : vector<2x256xf32>
    %246 = tpu.matmul %243, %245, %cst_161 {dimension_numbers = #tpu.dot_dimension_numbers<[1], [0], [0], [1], [0, 0, 1, 1], [], []>} : vector<2x64xf32>, vector<64x256xf32>, vector<2x256xf32> -> vector<2x256xf32>
    %247 = arith.addf %240, %246 : vector<2x256xf32>
    %c3 = arith.constant 3 : index
    %c0_162 = arith.constant 0 : index
    %c0_163 = arith.constant 0 : index
    %248 = vector.load %arg13[%c3, %c0_162, %c0_163] : memref<4x2x8xf32, #tpu.memory_space<vmem>>, vector<1x2x8xf32>
    %249 = vector.shape_cast %248 : vector<1x2x8xf32> to vector<2x8xf32>
    %cst_164 = arith.constant dense<0.000000e+00> : vector<2x64xf32>
    %250 = tpu.matmul %249, %218, %cst_164 {dimension_numbers = #tpu.dot_dimension_numbers<[1], [0], [0], [1], [0, 0, 1, 1], [], []>} : vector<2x8xf32>, vector<8x64xf32>, vector<2x64xf32> -> vector<2x64xf32>
    %c3_165 = arith.constant 3 : index
    %c0_166 = arith.constant 0 : index
    %c0_167 = arith.constant 0 : index
    %251 = vector.load %arg42[%c3_165, %c0_166, %c0_167] : memref<4x64x256xf32, #tpu.memory_space<vmem>>, vector<1x64x256xf32>
    %252 = vector.shape_cast %251 : vector<1x64x256xf32> to vector<64x256xf32>
    %cst_168 = arith.constant dense<0.000000e+00> : vector<2x256xf32>
    %253 = tpu.matmul %250, %252, %cst_168 {dimension_numbers = #tpu.dot_dimension_numbers<[1], [0], [0], [1], [0, 0, 1, 1], [], []>} : vector<2x64xf32>, vector<64x256xf32>, vector<2x256xf32> -> vector<2x256xf32>
    %254 = arith.addf %247, %253 : vector<2x256xf32>
    %cst_169 = arith.constant 0.000000e+00 : f32
    %255 = vector.broadcast %cst_169 : f32 to vector<2x256xf32>
    %256 = arith.maximumf %254, %255 : vector<2x256xf32>
    %c0_170 = arith.constant 0 : index
    %c0_171 = arith.constant 0 : index
    %257 = vector.load %arg44[%c0_170, %c0_171] : memref<256x2xf32, #tpu.memory_space<vmem>>, vector<256x2xf32>
    %cst_172 = arith.constant dense<0.000000e+00> : vector<2x2xf32>
    %258 = tpu.matmul %256, %257, %cst_172 {dimension_numbers = #tpu.dot_dimension_numbers<[1], [0], [0], [1], [0, 0, 1, 1], [], []>} : vector<2x256xf32>, vector<256x2xf32>, vector<2x2xf32> -> vector<2x2xf32>
    %c0_173 = arith.constant 0 : index
    %c0_174 = arith.constant 0 : index
    %259 = vector.load %arg45[%c0_173, %c0_174] : memref<1x2xf32, #tpu.memory_space<vmem>>, vector<1x2xf32>
    %260 = vector.broadcast %259 : vector<1x2xf32> to vector<2x2xf32>
    %261 = arith.addf %258, %260 : vector<2x2xf32>
    %c0_175 = arith.constant 0 : index
    %c0_176 = arith.constant 0 : index
    %262 = vector.load %arg46[%c0_175, %c0_176] : memref<2x2xf32, #tpu.memory_space<vmem>>, vector<2x2xf32>
    tpu.vector_store %arg46[%c0_175, %c0_176], %261 {strides = array<i32>} : memref<2x2xf32, #tpu.memory_space<vmem>>, vector<2x2xf32>,
    return
  }
}

</mosaic_0001>

<bundles_post_ra>
// kernel: multimodal_forward.1
= control target key start
LH: loop header
LB: loop body
LE: loop exit
PB: predicated region body
PF: predicated region fallthrough
CT: control target
= control target key end

     0   :  { %s7522_s6 = smov 1   ;;  %s7523_s10 = smov 2   ;;  %s8548_s0 = inlined_call_operand.smem [shape: u32[47], index: -1, kind: input, shape index: {}] }
   0x1   :  { %s7620_s5 = sld [smem:[%s8548_s0]]   ;;  %s7524_s14 = smov 3  }
   0x2   :  { %s7625_s9 = sld [smem:[%s8548_s0 + %s7522_s6]]   ;;  %s7525_s18 = smov 4  }
   0x3   :  { %s7630_s13 = sld [smem:[%s8548_s0 + %s7523_s10]]   ;;  %s7526_s22 = smov 5  }
   0x4   :  { %s7635_s17 = sld [smem:[%s8548_s0 + %s7524_s14]]   ;;  %s7527_s26 = smov 6  }
   0x5   :  { %s7640_s21 = sld [smem:[%s8548_s0 + %s7525_s18]]   ;;  %s7528_s30 = smov 7  }
   0x6   :  { %s7645_s25 = sld [smem:[%s8548_s0 + %s7526_s22]]   ;;  %s7529_s4 = smov 8  }
   0x7   :  { %8575 = sst [smem:[#allocation68_spill]] %s7620_s5  ;;  %s7530_s10 = smov 9  }
   0x8   :  { %8576 = sst [smem:[#allocation69_spill]] %s7625_s9  ;;  %s7531_s15 = smov 10  }
   0x9   :  { %8577 = sst [smem:[#allocation70_spill]] %s7630_s13  ;;  %s7532_s20 = smov 11  }
   0xa   :  { %s7650_s29 = sld [smem:[%s8548_s0 + %s7527_s26]]   ;;  %s7533_s26 = smov 12  }
   0xb   :  { %8578 = sst [smem:[#allocation71_spill]] %s7640_s21  ;;  %s7534_s1 = smov 13  }
   0xc   :  { %s7655_s3 = sld [smem:[%s8548_s0 + %s7528_s30]]   ;;  %s7535_s7 = smov 14  }
   0xd   :  { %s7660_s8 = sld [smem:[%s8548_s0 + %s7529_s4]]   ;;  %s7537_s22 = smov 16  }
   0xe   :  { %s7665_s14 = sld [smem:[%s8548_s0 + %s7530_s10]]   ;;  %s7538_s28 = smov 17  }
   0xf   :  { %s7670_s19 = sld [smem:[%s8548_s0 + %s7531_s15]]   ;;  %s7536_s15 = smov 15  }
  0x10   :  { %8579 = sst [smem:[#allocation72_spill]] %s7650_s29 }
  0x11   :  { %s7675_s24 = sld [smem:[%s8548_s0 + %s7532_s20]]  }
  0x12   :  { %8580 = sst [smem:[#allocation73_spill]] %s7655_s3 }
  0x13   :  { %s7680_s30 = sld [smem:[%s8548_s0 + %s7533_s26]]  }
  0x14   :  { %8581 = sst [smem:[#allocation74_spill]] %s7665_s14 }
  0x15   :  { %8582 = sst [smem:[#allocation75_spill]] %s7670_s19 }
  0x16   :  { %s7685_s6 = sld [smem:[%s8548_s0 + %s7534_s1]]  }
  0x17   :  { %8583 = sst [smem:[#allocation76_spill]] %s7675_s24 }
  0x18   :  { %s7690_s12 = sld [smem:[%s8548_s0 + %s7535_s7]]   ;;  %s7539_s7 = smov 18  }
  0x19   :  { %8584 = sst [smem:[#allocation77_spill]] %s7680_s30 }
  0x1a   :  { %s7695_s20 = sld [smem:[%s8548_s0 + %s7536_s15]]   ;;  %s7540_s15 = smov 19  }
  0x1b   :  { %s7700_s27 = sld [smem:[%s8548_s0 + %s7537_s22]]   ;;  %s7541_s22 = smov 20  }
  0x1c   :  { %8585 = sst [smem:[#allocation78_spill]] %s7685_s6 }
  0x1d   :  { %s7705_s4 = sld [smem:[%s8548_s0 + %s7538_s28]]   ;;  %s7542_s28 = smov 21  }
  0x1e   :  { %s7710_s6 = sld [smem:[%s8548_s0 + %s7539_s7]]   ;;  %s7543_s7 = smov 22  }
  0x1f   :  { %s7715_s30 = sld [smem:[%s8548_s0 + %s7540_s15]]   ;;  %s7544_s15 = smov 23  }
  0x20   :  { %8586 = sst [smem:[#allocation79_spill]] %s7695_s20 }
  0x21   :  { %s7720_s24 = sld [smem:[%s8548_s0 + %s7541_s22]]   ;;  %s7545_s22 = smov 24  }
  0x22   :  { %s7725_s19 = sld [smem:[%s8548_s0 + %s7542_s28]]   ;;  %s7546_s28 = smov 25  }
  0x23   :  { %8587 = sst [smem:[#allocation80_spill]] %s7705_s4 }
  0x24   :  { %s7730_s29 = sld [smem:[%s8548_s0 + %s7543_s7]]   ;;  %s7547_s7 = smov 26  }
  0x25   :  { %8588 = sst [smem:[#allocation81_spill]] %s7715_s30 }
  0x26   :  { %s7735_s13 = sld [smem:[%s8548_s0 + %s7544_s15]]   ;;  %s7548_s15 = smov 27  }
  0x27   :  { %8589 = sst [smem:[#allocation82_spill]] %s7720_s24 }
  0x28   :  { %s7740_s5 = sld [smem:[%s8548_s0 + %s7545_s22]]   ;;  %s7549_s22 = smov 28  }
  0x29   :  { %s7745_s24 = sld [smem:[%s8548_s0 + %s7546_s28]]   ;;  %s7550_s28 = smov 29  }
  0x2a   :  { %8590 = sst [smem:[#allocation83_spill]] %s7730_s29 }
  0x2b   :  { %s7750_s29 = sld [smem:[%s8548_s0 + %s7547_s7]]   ;;  %s7551_s7 = smov 30  }
  0x2c   :  { %s7755_s30 = sld [smem:[%s8548_s0 + %s7548_s15]]   ;;  %s7552_s15 = smov 31  }
  0x2d   :  { %s7765_s4 = sld [smem:[%s8548_s0 + %s7550_s28]]   ;;  %s7554_s28 = smov 33  }
  0x2e   :  { %8591 = sst [smem:[#allocation84_spill]] %s7740_s5 }
  0x2f   :  { %s7760_s5 = sld [smem:[%s8548_s0 + %s7549_s22]]   ;;  %s7553_s22 = smov 32  }
  0x30   :  { %s7775_s20 = sld [smem:[%s8548_s0 + %s7552_s15]]   ;;  %s7556_s15 = smov 35  }
  0x31   :  { %8592 = sst [smem:[#allocation85_spill]] %s7750_s29 }
  0x32   :  { %s7770_s29 = sld [smem:[%s8548_s0 + %s7551_s7]]   ;;  %s7555_s7 = smov 34  }
  0x33   :  { %s7785_s14 = sld [smem:[%s8548_s0 + %s7554_s28]]   ;;  %s7558_s28 = smov 37  }
  0x34   :  { %s7795_s3 = sld [smem:[%s8548_s0 + %s7556_s15]]   ;;  %s7560_s15 = smov 39  }
  0x35   :  { %8593 = sst [smem:[#allocation86_spill]] %s7760_s5 }
  0x36   :  { %s7780_s5 = sld [smem:[%s8548_s0 + %s7553_s22]]   ;;  %s7557_s22 = smov 36  }
  0x37   :  { %s7805_s21 = sld [smem:[%s8548_s0 + %s7558_s28]]   ;;  %s7562_s28 = smov 41  }
  0x38   :  { %8594 = sst [smem:[#allocation87_spill]] %s7770_s29 }
  0x39   :  { %s7790_s29 = sld [smem:[%s8548_s0 + %s7555_s7]]   ;;  %s7559_s7 = smov 38  }
  0x3a   :  { %8597 = sst [smem:[#allocation90_spill]] %s7795_s3 }
  0x3b   :  { %s7815_s3 = sld [smem:[%s8548_s0 + %s7560_s15]]   ;;  %s7564_s15 = smov 43  }
  0x3c   :  { %8595 = sst [smem:[#allocation88_spill]] %s7780_s5 }
  0x3d   :  { %s7800_s5 = sld [smem:[%s8548_s0 + %s7557_s22]]   ;;  %s7561_s22 = smov 40  }
  0x3e   :  { %8599 = sst [smem:[#allocation92_spill]] %s7805_s21 }
  0x3f   :  { %8596 = sst [smem:[#allocation89_spill]] %s7790_s29 }
  0x40   :  { %s7810_s29 = sld [smem:[%s8548_s0 + %s7559_s7]]   ;;  %s7563_s7 = smov 42  }
  0x41   :  { %8601 = sst [smem:[#allocation94_spill]] %s7815_s3 }
  0x42   :  { %s7825_s21 = sld [smem:[%s8548_s0 + %s7562_s28]]   ;;  %s7566_s28 = smov 45  }
  0x43   :  { %8598 = sst [smem:[#allocation91_spill]] %s7800_s5 }
  0x44   :  { %s7820_s5 = sld [smem:[%s8548_s0 + %s7561_s22]]   ;;  %s7565_s22 = smov 44  }
  0x45   :  { %s7835_s3 = sld [smem:[%s8548_s0 + %s7564_s15]]  }
  0x46   :  { %8600 = sst [smem:[#allocation93_spill]] %s7810_s29 }
  0x47   :  { %s7830_s29 = sld [smem:[%s8548_s0 + %s7563_s7]]   ;;  %s7567_s7 = smov 46  }
  0x48   :  { %8602 = sst [smem:[#allocation95_spill]] %s7825_s21 }
  0x49   :  { %s7840_s9 = sld [smem:[%s8548_s0 + %s7565_s22]]  }
  0x4a   :  { %s7845_s21 = sld [smem:[%s8548_s0 + %s7566_s28]]  }
  0x4d   :  { %8603 = sst [smem:[#allocation96_spill]] %s7830_s29 }
  0x4e   :  { %s7850_s29 = sld [smem:[%s8548_s0 + %s7567_s7]]  }
  0x4f   :  { %98 = vsyncpa [#allocation3], 0 }
  0x50   :  { %99 = vsyncpa [#allocation6], 0 }
  0x51   :  { %100 = vsyncpa [#allocation9], 0 }
  0x52   :  { %101 = vsyncpa [#allocation12], 0 }
  0x53   :  { %102 = vsyncpa [#allocation15], 0 }
  0x54   :  { %103 = vsyncpa [#allocation18], 0 }
  0x55   :  { %104 = vsyncpa [#allocation21], 0 }
  0x56   :  { %105 = vsyncpa [#allocation24], 0 }
  0x57   :  { %106 = vsyncpa [#allocation27], 0 }
  0x58   :  { %107 = vsyncpa [#allocation30], 0 }
  0x59   :  { %108 = vsyncpa [#allocation33], 0 }
  0x5a   :  { %109 = vsyncpa [#allocation36], 0 }
  0x5b   :  { %110 = vsyncpa [#allocation39], 0 }
  0x5c   :  { %111 = vsyncpa [#allocation42], 0 }
  0x5d   :  { %112 = vsyncpa [#allocation45], 0 }
  0x5e   :  { %113 = vsyncpa [#allocation48], 0 }
  0x5f   :  { %114 = vsyncpa [#allocation4], 0  ;;  %s7568_s0 = smov [#allocation5]   ;;  %s7569_s16 = smov [#allocation8]  }
  0x60   :  { %s136_s15 = sshll.u32 %s7568_s0, 4  ;;  %s158_s18 = sshll.u32 %s7569_s16, 4  ;;  %s137_s15 = int_to_ptr.vmem [resolvable:$true] %s136_s15  ;;  %s7852_s18 = int_to_ptr.vmem [resolvable:$true] %s158_s18 }
  0x61   :  { %s6784_s22 = scalar_lea.hbm %s7635_s17, 256 }
  0x62   :  { %p6785_p0 = scmp.ne.s32.totalorder %s7635_s17, %s6784_s22  ;;  %p6788_p1 = scmp.lt.u32.totalorder %s6784_s22, %s7635_s17 }
  0x64   :  { %p6790_p2 = pnand %p6788_p1, %p6785_p0 }
  0x66   :  { %6793 = shalt.err (!%p6790_p2)
}
  0x67   :  { %s6794_s23 = scalar_lea.vmem %s137_s15, 256  ;;  %p6799_p4 = scmp.lt.s32.totalorder %s137_s15, %s137_s15 }
  0x68   :  { %p6795_p3 = scmp.ne.s32.totalorder %s137_s15, %s6794_s23  ;;  %p6800_p5 = scmp.lt.s32.totalorder %s6794_s23, %s6794_s23 }
  0x6a   :  { %p6801_p6 = por %p6800_p5, %p6799_p4 }
  0x6c   :  { %p6802_p7 = pnand %p6801_p6, %p6795_p3 }
  0x6e   :  { %6805 = shalt.err (!%p6802_p7)
}
  0x6f   :  { %s7570_s26 = smov 128   ;;  %s7571_s28 = smov 8  }
  0x70   :  { %142 = dma.hbm_to_vmem [thread:$0]  %s7635_s17, 256, %s137_s15, [#allocation6], %s7570_s26, %s7570_s26, %s7571_s28  }
  0x71   :  { %s6806_s1 = scalar_lea.hbm %s7645_s25, 512 }
  0x72   :  { %p6807_p8 = scmp.ne.s32.totalorder %s7645_s25, %s6806_s1  ;;  %p6810_p9 = scmp.lt.u32.totalorder %s6806_s1, %s7645_s25 }
  0x74   :  { %p6812_p10 = pnand %p6810_p9, %p6807_p8 }
  0x76   :  { %6815 = shalt.err (!%p6812_p10)
}
  0x77   :  { %s6816_s2 = scalar_lea.vmem %s7852_s18, 512  ;;  %p6821_p12 = scmp.lt.s32.totalorder %s7852_s18, %s7852_s18 }
  0x78   :  { %p6817_p11 = scmp.ne.s32.totalorder %s7852_s18, %s6816_s2  ;;  %p6822_p13 = scmp.lt.s32.totalorder %s6816_s2, %s6816_s2 }
  0x7a   :  { %p6823_p0 = por %p6822_p13, %p6821_p12 }
  0x7c   :  { %p6824_p1 = pnand %p6823_p0, %p6817_p11 }
  0x7e   :  { %6827 = shalt.err (!%p6824_p1)
}
  0x7f   :  { %164 = dma.hbm_to_vmem [thread:$0]  %s7645_s25, 512, %s7852_s18, [#allocation9], %s7570_s26, %s7570_s26, %s7571_s28  }
  0x80   :  { %s7572_s17 = smov [#allocation11]   ;;  %s7573_s10 = smov [#allocation14]  }
  0x81   :  { %s184_s7 = sshll.u32 %s7572_s17, 4  ;;  %s216_s11 = sshll.u32 %s7573_s10, 4  ;;  %s185_s7 = int_to_ptr.vmem [resolvable:$true] %s184_s7  ;;  %s7873_s11 = int_to_ptr.vmem [resolvable:$true] %s216_s11 }
  0x82   :  { %s6828_s0 = scalar_lea.hbm %s7660_s8, 256 }
  0x83   :  { %p6829_p2 = scmp.ne.s32.totalorder %s7660_s8, %s6828_s0  ;;  %p6832_p3 = scmp.lt.u32.totalorder %s6828_s0, %s7660_s8 }
  0x85   :  { %p6834_p4 = pnand %p6832_p3, %p6829_p2 }
  0x87   :  { %6837 = shalt.err (!%p6834_p4)
}
  0x88   :  { %s6838_s15 = scalar_lea.vmem %s185_s7, 256  ;;  %p6843_p6 = scmp.lt.s32.totalorder %s185_s7, %s185_s7 }
  0x89   :  { %p6839_p5 = scmp.ne.s32.totalorder %s185_s7, %s6838_s15  ;;  %p6844_p7 = scmp.lt.s32.totalorder %s6838_s15, %s6838_s15 }
  0x8b   :  { %p6845_p8 = por %p6844_p7, %p6843_p6 }
  0x8d   :  { %p6846_p9 = pnand %p6845_p8, %p6839_p5 }
  0x8f   :  { %6849 = shalt.err (!%p6846_p9)
}
  0x90   :  { %190 = dma.hbm_to_vmem [thread:$0]  %s7660_s8, 256, %s185_s7, [#allocation12], %s7570_s26, %s7570_s26, %s7571_s28  }
  0x91   :  { %s6850_s25 = scalar_lea.hbm %s7690_s12, 384 }
  0x92   :  { %p6851_p10 = scmp.ne.s32.totalorder %s7690_s12, %s6850_s25  ;;  %p6854_p11 = scmp.lt.u32.totalorder %s6850_s25, %s7690_s12 }
  0x94   :  { %p6856_p12 = pnand %p6854_p11, %p6851_p10 }
  0x96   :  { %6859 = shalt.err (!%p6856_p12)
}
  0x97   :  { %s6860_s16 = scalar_lea.vmem %s7873_s11, 384  ;;  %p6865_p0 = scmp.lt.s32.totalorder %s7873_s11, %s7873_s11 }
  0x98   :  { %p6861_p13 = scmp.ne.s32.totalorder %s7873_s11, %s6860_s16  ;;  %p6866_p1 = scmp.lt.s32.totalorder %s6860_s16, %s6860_s16 }
  0x9a   :  { %p6867_p2 = por %p6866_p1, %p6865_p0 }
  0x9c   :  { %p6868_p3 = pnand %p6867_p2, %p6861_p13 }
  0x9e   :  { %6871 = shalt.err (!%p6868_p3)
}
  0x9f   :  { %222 = dma.hbm_to_vmem [thread:$0]  %s7690_s12, 384, %s7873_s11, [#allocation15], %s7570_s26, %s7570_s26, %s7571_s28  }
  0xa0   :  { %s7574_s8 = smov [#allocation17]   ;;  %s7575_s22 = smov [#allocation20]  }
  0xa1   :  { %s238_s18 = sshll.u32 %s7574_s8, 4  ;;  %s261_s23 = sshll.u32 %s7575_s22, 4  ;;  %s239_s18 = int_to_ptr.vmem [resolvable:$true] %s238_s18  ;;  %s262_s23 = int_to_ptr.vmem [resolvable:$true] %s261_s23 }
  0xa2   :  { %s6872_s1 = scalar_lea.hbm %s7700_s27, 1024 }
  0xa3   :  { %p6873_p4 = scmp.ne.s32.totalorder %s7700_s27, %s6872_s1  ;;  %p6876_p5 = scmp.lt.u32.totalorder %s6872_s1, %s7700_s27 }
  0xa5   :  { %p6878_p6 = pnand %p6876_p5, %p6873_p4 }
  0xa7   :  { %6881 = shalt.err (!%p6878_p6)
}
  0xa8   :  { %s6882_s2 = scalar_lea.vmem %s239_s18, 1024  ;;  %p6887_p8 = scmp.lt.s32.totalorder %s239_s18, %s239_s18 }
  0xa9   :  { %p6883_p7 = scmp.ne.s32.totalorder %s239_s18, %s6882_s2  ;;  %p6888_p9 = scmp.lt.s32.totalorder %s6882_s2, %s6882_s2 }
  0xab   :  { %p6889_p10 = por %p6888_p9, %p6887_p8 }
  0xad   :  { %p6890_p11 = pnand %p6889_p10, %p6883_p7 }
  0xaf   :  { %6893 = shalt.err (!%p6890_p11)
}
  0xb0   :  { %244 = dma.hbm_to_vmem [thread:$0]  %s7700_s27, 1024, %s239_s18, [#allocation18], %s7570_s26, %s7570_s26, %s7571_s28  }
  0xb1   :  { %s6894_s12 = scalar_lea.hbm %s7710_s6, 128 }
  0xb2   :  { %p6895_p12 = scmp.ne.s32.totalorder %s7710_s6, %s6894_s12  ;;  %p6898_p13 = scmp.lt.u32.totalorder %s6894_s12, %s7710_s6 }
  0xb4   :  { %p6900_p0 = pnand %p6898_p13, %p6895_p12 }
  0xb6   :  { %6903 = shalt.err (!%p6900_p0)
}
  0xb7   :  { %s6904_s17 = scalar_lea.vmem %s262_s23, 128  ;;  %p6909_p2 = scmp.lt.s32.totalorder %s262_s23, %s262_s23 }
  0xb8   :  { %p6905_p1 = scmp.ne.s32.totalorder %s262_s23, %s6904_s17  ;;  %p6910_p3 = scmp.lt.s32.totalorder %s6904_s17, %s6904_s17 }
  0xba   :  { %p6911_p4 = por %p6910_p3, %p6909_p2 }
  0xbc   :  { %p6912_p5 = pnand %p6911_p4, %p6905_p1 }
  0xbe   :  { %6915 = shalt.err (!%p6912_p5)
}
  0xbf   :  { %264 = dma.hbm_to_vmem [thread:$0]  %s7710_s6, 128, %s262_s23, [#allocation21]  }
  0xc0   :  { %s7576_s7 = smov [#allocation23]   ;;  %s7577_s27 = smov [#allocation26]  }
  0xc1   :  { %s283_s10 = sshll.u32 %s7576_s7, 4  ;;  %s305_s11 = sshll.u32 %s7577_s27, 4  ;;  %s284_s10 = int_to_ptr.vmem [resolvable:$true] %s283_s10  ;;  %s306_s11 = int_to_ptr.vmem [resolvable:$true] %s305_s11 }
  0xc2   :  { %s6916_s0 = scalar_lea.hbm %s7725_s19, 48 }
  0xc3   :  { %p6917_p6 = scmp.ne.s32.totalorder %s7725_s19, %s6916_s0  ;;  %p6920_p7 = scmp.lt.u32.totalorder %s6916_s0, %s7725_s19 }
  0xc5   :  { %p6922_p8 = pnand %p6920_p7, %p6917_p6 }
  0xc7   :  { %6925 = shalt.err (!%p6922_p8)
}
  0xc8   :  { %s6926_s15 = scalar_lea.vmem %s284_s10, 48  ;;  %s6930_s25 = scalar_lea.vmem %s284_s10, 64 }
  0xc9   :  { %p6927_p9 = scmp.ne.s32.totalorder %s284_s10, %s6926_s15  ;;  %p6931_p10 = scmp.lt.s32.totalorder %s284_s10, %s284_s10 }
  0xca   :  { %p6932_p11 = scmp.lt.s32.totalorder %s6930_s25, %s6926_s15 }
  0xcc   :  { %p6933_p12 = por %p6932_p11, %p6931_p10 }
  0xce   :  { %p6934_p13 = pnand %p6933_p12, %p6927_p9 }
  0xd0   :  { %6937 = shalt.err (!%p6934_p13)
}
  0xd1   :  { %286 = dma.hbm_to_vmem [thread:$0]  %s7725_s19, 48, %s284_s10, [#allocation24]  }
  0xd2   :  { %s6938_s6 = scalar_lea.hbm %s7735_s13, 16 }
  0xd3   :  { %p6939_p0 = scmp.ne.s32.totalorder %s7735_s13, %s6938_s6  ;;  %p6942_p1 = scmp.lt.u32.totalorder %s6938_s6, %s7735_s13 }
  0xd5   :  { %p6944_p2 = pnand %p6942_p1, %p6939_p0 }
  0xd7   :  { %6947 = shalt.err (!%p6944_p2)
}
  0xd8   :  { %s6948_s16 = scalar_lea.vmem %s306_s11, 16  ;;  %s6952_s8 = scalar_lea.vmem %s306_s11, 32 }
  0xd9   :  { %p6949_p3 = scmp.ne.s32.totalorder %s306_s11, %s6948_s16  ;;  %p6953_p4 = scmp.lt.s32.totalorder %s306_s11, %s306_s11 }
  0xda   :  { %p6954_p5 = scmp.lt.s32.totalorder %s6952_s8, %s6948_s16 }
  0xdc   :  { %p6955_p6 = por %p6954_p5, %p6953_p4 }
  0xde   :  { %p6956_p7 = pnand %p6955_p6, %p6949_p3 }
  0xe0   :  { %6959 = shalt.err (!%p6956_p7)
}
  0xe1   :  { %308 = dma.hbm_to_vmem [thread:$0]  %s7735_s13, 16, %s306_s11, [#allocation27]  }
  0xe2   :  { %s7578_s18 = smov [#allocation29]   ;;  %s7579_s22 = smov [#allocation32]  }
  0xe3   :  { %s325_s19 = sshll.u32 %s7578_s18, 4  ;;  %s347_s23 = sshll.u32 %s7579_s22, 4  ;;  %s326_s19 = int_to_ptr.vmem [resolvable:$true] %s325_s19  ;;  %s348_s23 = int_to_ptr.vmem [resolvable:$true] %s347_s23 }
  0xe4   :  { %s6960_s1 = scalar_lea.hbm %s7745_s24, 16 }
  0xe5   :  { %p6961_p8 = scmp.ne.s32.totalorder %s7745_s24, %s6960_s1  ;;  %p6964_p9 = scmp.lt.u32.totalorder %s6960_s1, %s7745_s24 }
  0xe7   :  { %p6966_p10 = pnand %p6964_p9, %p6961_p8 }
  0xe9   :  { %6969 = shalt.err (!%p6966_p10)
}
  0xea   :  { %s6970_s2 = scalar_lea.vmem %s326_s19, 16  ;;  %s6974_s12 = scalar_lea.vmem %s326_s19, 32 }
  0xeb   :  { %p6971_p11 = scmp.ne.s32.totalorder %s326_s19, %s6970_s2  ;;  %p6975_p12 = scmp.lt.s32.totalorder %s326_s19, %s326_s19 }
  0xec   :  { %p6976_p13 = scmp.lt.s32.totalorder %s6974_s12, %s6970_s2 }
  0xee   :  { %p6977_p0 = por %p6976_p13, %p6975_p12 }
  0xf0   :  { %p6978_p1 = pnand %p6977_p0, %p6971_p11 }
  0xf2   :  { %6981 = shalt.err (!%p6978_p1)
}
  0xf3   :  { %328 = dma.hbm_to_vmem [thread:$0]  %s7745_s24, 16, %s326_s19, [#allocation30]  }
  0xf4   :  { %s6982_s13 = scalar_lea.hbm %s7755_s30, 32 }
  0xf5   :  { %p6983_p2 = scmp.ne.s32.totalorder %s7755_s30, %s6982_s13  ;;  %p6986_p3 = scmp.lt.u32.totalorder %s6982_s13, %s7755_s30 }
  0xf7   :  { %p6988_p4 = pnand %p6986_p3, %p6983_p2 }
  0xf9   :  { %6991 = shalt.err (!%p6988_p4)
}
  0xfa   :  { %s6992_s17 = scalar_lea.vmem %s348_s23, 32  ;;  %p6997_p6 = scmp.lt.s32.totalorder %s348_s23, %s348_s23 }
  0xfb   :  { %p6993_p5 = scmp.ne.s32.totalorder %s348_s23, %s6992_s17  ;;  %p6998_p7 = scmp.lt.s32.totalorder %s6992_s17, %s6992_s17 }
  0xfd   :  { %p6999_p8 = por %p6998_p7, %p6997_p6 }
  0xff   :  { %p7000_p9 = pnand %p6999_p8, %p6993_p5 }
 0x101   :  { %7003 = shalt.err (!%p7000_p9)
}
 0x102   :  { %350 = dma.hbm_to_vmem [thread:$0]  %s7755_s30, 32, %s348_s23, [#allocation33]  }
 0x103   :  { %s7580_s7 = smov [#allocation35]   ;;  %s7581_s24 = smov [#allocation38]  }
 0x104   :  { %s369_s10 = sshll.u32 %s7580_s7, 4  ;;  %s389_s27 = sshll.u32 %s7581_s24, 4  ;;  %s370_s10 = int_to_ptr.vmem [resolvable:$true] %s369_s10  ;;  %s390_s27 = int_to_ptr.vmem [resolvable:$true] %s389_s27 }
 0x105   :  { %s7004_s11 = scalar_lea.hbm %s7765_s4, 16 }
 0x106   :  { %p7005_p10 = scmp.ne.s32.totalorder %s7765_s4, %s7004_s11  ;;  %p7008_p11 = scmp.lt.u32.totalorder %s7004_s11, %s7765_s4 }
 0x108   :  { %p7010_p12 = pnand %p7008_p11, %p7005_p10 }
 0x10a   :  { %7013 = shalt.err (!%p7010_p12)
}
 0x10b   :  { %s7014_s0 = scalar_lea.vmem %s370_s10, 16  ;;  %s7018_s15 = scalar_lea.vmem %s370_s10, 32 }
 0x10c   :  { %p7015_p13 = scmp.ne.s32.totalorder %s370_s10, %s7014_s0  ;;  %p7019_p0 = scmp.lt.s32.totalorder %s370_s10, %s370_s10 }
 0x10d   :  { %p7020_p1 = scmp.lt.s32.totalorder %s7018_s15, %s7014_s0 }
 0x10f   :  { %p7021_p2 = por %p7020_p1, %p7019_p0 }
 0x111   :  { %p7022_p3 = pnand %p7021_p2, %p7015_p13 }
 0x113   :  { %7025 = shalt.err (!%p7022_p3)
}
 0x114   :  { %372 = dma.hbm_to_vmem [thread:$0]  %s7765_s4, 16, %s370_s10, [#allocation36]  }
 0x115   :  { %s7026_s30 = scalar_lea.hbm %s7775_s20, 16 }
 0x116   :  { %p7027_p4 = scmp.ne.s32.totalorder %s7775_s20, %s7026_s30  ;;  %p7030_p5 = scmp.lt.u32.totalorder %s7026_s30, %s7775_s20 }
 0x118   :  { %p7032_p6 = pnand %p7030_p5, %p7027_p4 }
 0x11a   :  { %7035 = shalt.err (!%p7032_p6)
}
 0x11b   :  { %s7036_s25 = scalar_lea.vmem %s390_s27, 16  ;;  %s7040_s6 = scalar_lea.vmem %s390_s27, 32 }
 0x11c   :  { %p7037_p7 = scmp.ne.s32.totalorder %s390_s27, %s7036_s25  ;;  %p7041_p8 = scmp.lt.s32.totalorder %s390_s27, %s390_s27 }
 0x11d   :  { %p7042_p9 = scmp.lt.s32.totalorder %s7040_s6, %s7036_s25 }
 0x11f   :  { %p7043_p10 = por %p7042_p9, %p7041_p8 }
 0x121   :  { %p7044_p11 = pnand %p7043_p10, %p7037_p7 }
 0x123   :  { %7047 = shalt.err (!%p7044_p11)
}
 0x124   :  { %392 = dma.hbm_to_vmem [thread:$0]  %s7775_s20, 16, %s390_s27, [#allocation39]  }
 0x125   :  { %s7582_s16 = smov [#allocation41]   ;;  %s7048_s8 = scalar_lea.hbm %s7785_s14, 16 }
 0x126   :  { %s411_s4 = sshll.u32 %s7582_s16, 4  ;;  %p7049_p12 = scmp.ne.s32.totalorder %s7785_s14, %s7048_s8  ;;  %s412_s4 = int_to_ptr.vmem [resolvable:$true] %s411_s4 }
 0x127   :  { %p7052_p13 = scmp.lt.u32.totalorder %s7048_s8, %s7785_s14 }
 0x129   :  { %p7054_p0 = pnand %p7052_p13, %p7049_p12 }
 0x12b   :  { %7057 = shalt.err (!%p7054_p0)
}
 0x12c   :  { %s7058_s18 = scalar_lea.vmem %s412_s4, 16  ;;  %s7062_s19 = scalar_lea.vmem %s412_s4, 32 }
 0x12d   :  { %p7059_p1 = scmp.ne.s32.totalorder %s412_s4, %s7058_s18  ;;  %p7063_p2 = scmp.lt.s32.totalorder %s412_s4, %s412_s4 }
 0x12e   :  { %p7064_p3 = scmp.lt.s32.totalorder %s7062_s19, %s7058_s18 }
 0x130   :  { %p7065_p4 = por %p7064_p3, %p7063_p2 }
 0x132   :  { %p7066_p5 = pnand %p7065_p4, %p7059_p1 }
 0x134   :  { %7069 = shalt.err (!%p7066_p5)
}
 0x135   :  { %414 = dma.hbm_to_vmem [thread:$0]  %s7785_s14, 16, %s412_s4, [#allocation42]  }
 0x136   :  { %s7583_s20 = smov [#allocation44]   ;;  %s7584_s23 = smov [#allocation47]  }
 0x137   :  { %s440_s22 = sshll.u32 %s7583_s20, 4  ;;  %s467_s1 = sshll.u32 %s7584_s23, 4  ;;  %s441_s22 = int_to_ptr.vmem [resolvable:$true] %s440_s22  ;;  %s468_s1 = int_to_ptr.vmem [resolvable:$true] %s467_s1 }
 0x138   :  { %s7070_s2 = scalar_lea.hbm %s7820_s5, 4096 }
 0x139   :  { %p7071_p6 = scmp.ne.s32.totalorder %s7820_s5, %s7070_s2  ;;  %p7074_p7 = scmp.lt.u32.totalorder %s7070_s2, %s7820_s5 }
 0x13b   :  { %p7076_p8 = pnand %p7074_p7, %p7071_p6 }
 0x13d   :  { %7079 = shalt.err (!%p7076_p8)
}
 0x13e   :  { %s7080_s12 = scalar_lea.vmem %s441_s22, 4096  ;;  %p7085_p10 = scmp.lt.s32.totalorder %s441_s22, %s441_s22 }
 0x13f   :  { %p7081_p9 = scmp.ne.s32.totalorder %s441_s22, %s7080_s12  ;;  %p7086_p11 = scmp.lt.s32.totalorder %s7080_s12, %s7080_s12 }
 0x141   :  { %p7087_p12 = por %p7086_p11, %p7085_p10 }
 0x143   :  { %p7088_p13 = pnand %p7087_p12, %p7081_p9 }
 0x145   :  { %7091 = shalt.err (!%p7088_p13)
}
 0x146   :  { %s7585_s13 = smov 256   ;;  %s7586_s14 = smov 16  }
 0x147   :  { %446 = dma.hbm_to_vmem [thread:$0]  %s7820_s5, 4096, %s441_s22, [#allocation45], %s7585_s13, %s7585_s13, %s7586_s14  }
 0x148   :  { %s7092_s17 = scalar_lea.hbm %s7835_s3, 32 }
 0x149   :  { %p7093_p0 = scmp.ne.s32.totalorder %s7835_s3, %s7092_s17  ;;  %p7096_p1 = scmp.lt.u32.totalorder %s7092_s17, %s7835_s3 }
 0x14b   :  { %p7098_p2 = pnand %p7096_p1, %p7093_p0 }
 0x14d   :  { %7101 = shalt.err (!%p7098_p2)
}
 0x14e   :  { %s7102_s7 = scalar_lea.vmem %s468_s1, 32  ;;  %p7107_p4 = scmp.lt.s32.totalorder %s468_s1, %s468_s1 }
 0x14f   :  { %p7103_p3 = scmp.ne.s32.totalorder %s468_s1, %s7102_s7  ;;  %p7108_p5 = scmp.lt.s32.totalorder %s7102_s7, %s7102_s7 }
 0x151   :  { %p7109_p6 = por %p7108_p5, %p7107_p4 }
 0x153   :  { %p7110_p7 = pnand %p7109_p6, %p7103_p3 }
 0x155   :  { %7113 = shalt.err (!%p7110_p7)
}
 0x156   :  { %s8604_s10 = sld [smem:[#allocation69_spill]]  ;;  %s7587_s24 = smov [#allocation2]  }
 0x157   :  { %470 = dma.hbm_to_vmem [thread:$0]  %s7835_s3, 32, %s468_s1, [#allocation48]  }
 0x158   :  { %s122_s5 = sshll.u32 %s7587_s24, 4  ;;  %s7588_s27 = smov [#allocation7]   ;;  %s123_s5 = int_to_ptr.vmem [resolvable:$true] %s122_s5 }
 0x159   :  { %s149_s11 = sshll.u32 %s7588_s27, 4  ;;  %s150_s11 = int_to_ptr.vmem [resolvable:$true] %s149_s11 }
 0x15c   :  { %s7114_s0 = scalar_lea.hbm %s8604_s10, 256 }
 0x15d   :  { %p7115_p8 = scmp.ne.s32.totalorder %s8604_s10, %s7114_s0  ;;  %p7118_p9 = scmp.lt.u32.totalorder %s7114_s0, %s8604_s10 }
 0x15f   :  { %p7120_p10 = pnand %p7118_p9, %p7115_p8 }
 0x161   :  { %7123 = shalt.err (!%p7120_p10)
}
 0x162   :  { %s7124_s15 = scalar_lea.vmem %s123_s5, 256  ;;  %p7129_p12 = scmp.lt.s32.totalorder %s123_s5, %s123_s5 }
 0x163   :  { %p7125_p11 = scmp.ne.s32.totalorder %s123_s5, %s7124_s15  ;;  %p7130_p13 = scmp.lt.s32.totalorder %s7124_s15, %s7124_s15 }
 0x165   :  { %p7131_p0 = por %p7130_p13, %p7129_p12 }
 0x167   :  { %p7132_p1 = pnand %p7131_p0, %p7125_p11 }
 0x169   :  { %7135 = shalt.err (!%p7132_p1)
}
 0x16a   :  { %s8605_s3 = sld [smem:[#allocation71_spill]] }
 0x16b   :  { %128 = dma.hbm_to_vmem [thread:$0]  %s8604_s10, 256, %s123_s5, [#allocation3], %s7570_s26, %s7570_s26, %s7571_s28  }
 0x170   :  { %s7136_s30 = scalar_lea.hbm %s8605_s3, 32 }
 0x171   :  { %p7137_p2 = scmp.ne.s32.totalorder %s8605_s3, %s7136_s30  ;;  %p7140_p3 = scmp.lt.u32.totalorder %s7136_s30, %s8605_s3 }
 0x173   :  { %p7142_p4 = pnand %p7140_p3, %p7137_p2 }
 0x175   :  { %7145 = shalt.err (!%p7142_p4)
}
 0x176   :  { %s7146_s25 = scalar_lea.vmem %s150_s11, 32  ;;  %p7151_p6 = scmp.lt.s32.totalorder %s150_s11, %s150_s11 }
 0x177   :  { %p7147_p5 = scmp.ne.s32.totalorder %s150_s11, %s7146_s25  ;;  %p7152_p7 = scmp.lt.s32.totalorder %s7146_s25, %s7146_s25 }
 0x179   :  { %p7153_p8 = por %p7152_p7, %p7151_p6 }
 0x17b   :  { %p7154_p9 = pnand %p7153_p8, %p7147_p5 }
 0x17d   :  { %7157 = shalt.err (!%p7154_p9)
}
 0x17e   :  { %s8606_s6 = sld [smem:[#allocation73_spill]]  ;;  %s7589_s16 = smov [#allocation10]  }
 0x17f   :  { %152 = dma.hbm_to_vmem [thread:$0]  %s8605_s3, 32, %s150_s11, [#allocation6]  }
 0x180   :  { %s172_s4 = sshll.u32 %s7589_s16, 4  ;;  %s7590_s8 = smov [#allocation13]   ;;  %s173_s4 = int_to_ptr.vmem [resolvable:$true] %s172_s4 }
 0x181   :  { %s196_s18 = sshll.u32 %s7590_s8, 4  ;;  %s197_s18 = int_to_ptr.vmem [resolvable:$true] %s196_s18 }
 0x184   :  { %s7158_s19 = scalar_lea.hbm %s8606_s6, 256 }
 0x185   :  { %p7159_p10 = scmp.ne.s32.totalorder %s8606_s6, %s7158_s19  ;;  %p7162_p11 = scmp.lt.u32.totalorder %s7158_s19, %s8606_s6 }
 0x187   :  { %p7164_p12 = pnand %p7162_p11, %p7159_p10 }
 0x189   :  { %7167 = shalt.err (!%p7164_p12)
}
 0x18a   :  { %s7168_s20 = scalar_lea.vmem %s173_s4, 256  ;;  %p7173_p0 = scmp.lt.s32.totalorder %s173_s4, %s173_s4 }
 0x18b   :  { %p7169_p13 = scmp.ne.s32.totalorder %s173_s4, %s7168_s20  ;;  %p7174_p1 = scmp.lt.s32.totalorder %s7168_s20, %s7168_s20 }
 0x18d   :  { %p7175_p2 = por %p7174_p1, %p7173_p0 }
 0x18f   :  { %p7176_p3 = pnand %p7175_p2, %p7169_p13 }
 0x191   :  { %7179 = shalt.err (!%p7176_p3)
}
 0x192   :  { %s8607_s22 = sld [smem:[#allocation74_spill]] }
 0x193   :  { %178 = dma.hbm_to_vmem [thread:$0]  %s8606_s6, 256, %s173_s4, [#allocation9], %s7570_s26, %s7570_s26, %s7571_s28  }
 0x198   :  { %s7180_s23 = scalar_lea.hbm %s8607_s22, 256 }
 0x199   :  { %p7181_p4 = scmp.ne.s32.totalorder %s8607_s22, %s7180_s23  ;;  %p7184_p5 = scmp.lt.u32.totalorder %s7180_s23, %s8607_s22 }
 0x19b   :  { %p7186_p6 = pnand %p7184_p5, %p7181_p4 }
 0x19d   :  { %7189 = shalt.err (!%p7186_p6)
}
 0x19e   :  { %s7190_s1 = scalar_lea.vmem %s197_s18, 256  ;;  %p7195_p8 = scmp.lt.s32.totalorder %s197_s18, %s197_s18 }
 0x19f   :  { %p7191_p7 = scmp.ne.s32.totalorder %s197_s18, %s7190_s1  ;;  %p7196_p9 = scmp.lt.s32.totalorder %s7190_s1, %s7190_s1 }
 0x1a1   :  { %p7197_p10 = por %p7196_p9, %p7195_p8 }
 0x1a3   :  { %p7198_p11 = pnand %p7197_p10, %p7191_p7 }
 0x1a5   :  { %7201 = shalt.err (!%p7198_p11)
}
 0x1a6   :  { %s8608_s2 = sld [smem:[#allocation79_spill]]  ;;  %s7591_s12 = smov [#allocation16]  }
 0x1a7   :  { %202 = dma.hbm_to_vmem [thread:$0]  %s8607_s22, 256, %s197_s18, [#allocation12], %s7570_s26, %s7570_s26, %s7571_s28  }
 0x1a8   :  { %s229_s17 = sshll.u32 %s7591_s12, 4  ;;  %s7592_s7 = smov [#allocation19]   ;;  %s230_s17 = int_to_ptr.vmem [resolvable:$true] %s229_s17 }
 0x1a9   :  { %s251_s10 = sshll.u32 %s7592_s7, 4  ;;  %s252_s10 = int_to_ptr.vmem [resolvable:$true] %s251_s10 }
 0x1ac   :  { %s7202_s24 = scalar_lea.hbm %s8608_s2, 16 }
 0x1ad   :  { %p7203_p12 = scmp.ne.s32.totalorder %s8608_s2, %s7202_s24  ;;  %p7206_p13 = scmp.lt.u32.totalorder %s7202_s24, %s8608_s2 }
 0x1af   :  { %p7208_p0 = pnand %p7206_p13, %p7203_p12 }
 0x1b1   :  { %7211 = shalt.err (!%p7208_p0)
}
 0x1b2   :  { %s7212_s5 = scalar_lea.vmem %s230_s17, 16  ;;  %s7216_s27 = scalar_lea.vmem %s230_s17, 32 }
 0x1b3   :  { %p7213_p1 = scmp.ne.s32.totalorder %s230_s17, %s7212_s5  ;;  %p7217_p2 = scmp.lt.s32.totalorder %s230_s17, %s230_s17 }
 0x1b4   :  { %p7218_p3 = scmp.lt.s32.totalorder %s7216_s27, %s7212_s5 }
 0x1b6   :  { %p7219_p4 = por %p7218_p3, %p7217_p2 }
 0x1b8   :  { %p7220_p5 = pnand %p7219_p4, %p7213_p1 }
 0x1ba   :  { %7223 = shalt.err (!%p7220_p5)
}
 0x1bb   :  { %s8609_s11 = sld [smem:[#allocation80_spill]] }
 0x1bc   :  { %232 = dma.hbm_to_vmem [thread:$0]  %s8608_s2, 16, %s230_s17, [#allocation15]  }
 0x1c1   :  { %s7224_s0 = scalar_lea.hbm %s8609_s11, 16 }
 0x1c2   :  { %p7225_p6 = scmp.ne.s32.totalorder %s8609_s11, %s7224_s0  ;;  %p7228_p7 = scmp.lt.u32.totalorder %s7224_s0, %s8609_s11 }
 0x1c4   :  { %p7230_p8 = pnand %p7228_p7, %p7225_p6 }
 0x1c6   :  { %7233 = shalt.err (!%p7230_p8)
}
 0x1c7   :  { %s7234_s15 = scalar_lea.vmem %s252_s10, 16  ;;  %s7238_s3 = scalar_lea.vmem %s252_s10, 32 }
 0x1c8   :  { %p7235_p9 = scmp.ne.s32.totalorder %s252_s10, %s7234_s15  ;;  %p7239_p10 = scmp.lt.s32.totalorder %s252_s10, %s252_s10 }
 0x1c9   :  { %p7240_p11 = scmp.lt.s32.totalorder %s7238_s3, %s7234_s15 }
 0x1cb   :  { %p7241_p12 = por %p7240_p11, %p7239_p10 }
 0x1cd   :  { %p7242_p13 = pnand %p7241_p12, %p7235_p9 }
 0x1cf   :  { %7245 = shalt.err (!%p7242_p13)
}
 0x1d0   :  { %s8610_s30 = sld [smem:[#allocation81_spill]]  ;;  %s7593_s25 = smov [#allocation22]  }
 0x1d1   :  { %254 = dma.hbm_to_vmem [thread:$0]  %s8609_s11, 16, %s252_s10, [#allocation18]  }
 0x1d2   :  { %s271_s6 = sshll.u32 %s7593_s25, 4  ;;  %s7594_s16 = smov [#allocation25]   ;;  %s272_s6 = int_to_ptr.vmem [resolvable:$true] %s271_s6 }
 0x1d3   :  { %s292_s4 = sshll.u32 %s7594_s16, 4  ;;  %s293_s4 = int_to_ptr.vmem [resolvable:$true] %s292_s4 }
 0x1d6   :  { %s7246_s8 = scalar_lea.hbm %s8610_s30, 16 }
 0x1d7   :  { %p7247_p0 = scmp.ne.s32.totalorder %s8610_s30, %s7246_s8  ;;  %p7250_p1 = scmp.lt.u32.totalorder %s7246_s8, %s8610_s30 }
 0x1d9   :  { %p7252_p2 = pnand %p7250_p1, %p7247_p0 }
 0x1db   :  { %7255 = shalt.err (!%p7252_p2)
}
 0x1dc   :  { %s7256_s18 = scalar_lea.vmem %s272_s6, 16  ;;  %s7260_s19 = scalar_lea.vmem %s272_s6, 32 }
 0x1dd   :  { %p7257_p3 = scmp.ne.s32.totalorder %s272_s6, %s7256_s18  ;;  %p7261_p4 = scmp.lt.s32.totalorder %s272_s6, %s272_s6 }
 0x1de   :  { %p7262_p5 = scmp.lt.s32.totalorder %s7260_s19, %s7256_s18 }
 0x1e0   :  { %p7263_p6 = por %p7262_p5, %p7261_p4 }
 0x1e2   :  { %p7264_p7 = pnand %p7263_p6, %p7257_p3 }
 0x1e4   :  { %7267 = shalt.err (!%p7264_p7)
}
 0x1e5   :  { %s8611_s20 = sld [smem:[#allocation83_spill]] }
 0x1e6   :  { %274 = dma.hbm_to_vmem [thread:$0]  %s8610_s30, 16, %s272_s6, [#allocation21]  }
 0x1eb   :  { %s7268_s22 = scalar_lea.hbm %s8611_s20, 2048 }
 0x1ec   :  { %p7269_p8 = scmp.ne.s32.totalorder %s8611_s20, %s7268_s22  ;;  %p7272_p9 = scmp.lt.u32.totalorder %s7268_s22, %s8611_s20 }
 0x1ee   :  { %p7274_p10 = pnand %p7272_p9, %p7269_p8 }
 0x1f0   :  { %7277 = shalt.err (!%p7274_p10)
}
 0x1f1   :  { %s7278_s23 = scalar_lea.vmem %s293_s4, 2048  ;;  %p7283_p12 = scmp.lt.s32.totalorder %s293_s4, %s293_s4 }
 0x1f2   :  { %p7279_p11 = scmp.ne.s32.totalorder %s293_s4, %s7278_s23  ;;  %p7284_p13 = scmp.lt.s32.totalorder %s7278_s23, %s7278_s23 }
 0x1f4   :  { %p7285_p0 = por %p7284_p13, %p7283_p12 }
 0x1f6   :  { %p7286_p1 = pnand %p7285_p0, %p7279_p11 }
 0x1f8   :  { %7289 = shalt.err (!%p7286_p1)
}
 0x1f9   :  { %s8612_s1 = sld [smem:[#allocation84_spill]]  ;;  %s7595_s2 = smov [#allocation28]  }
 0x1fa   :  { %298 = dma.hbm_to_vmem [thread:$0]  %s8611_s20, 2048, %s293_s4, [#allocation24], %s7570_s26, %s7570_s26, %s7571_s28  }
 0x1fb   :  { %s315_s12 = sshll.u32 %s7595_s2, 4  ;;  %s7596_s17 = smov [#allocation31]   ;;  %s316_s12 = int_to_ptr.vmem [resolvable:$true] %s315_s12 }
 0x1fc   :  { %s334_s7 = sshll.u32 %s7596_s17, 4  ;;  %s335_s7 = int_to_ptr.vmem [resolvable:$true] %s334_s7 }
 0x1ff   :  { %s7290_s10 = scalar_lea.hbm %s8612_s1, 16 }
 0x200   :  { %p7291_p2 = scmp.ne.s32.totalorder %s8612_s1, %s7290_s10  ;;  %p7294_p3 = scmp.lt.u32.totalorder %s7290_s10, %s8612_s1 }
 0x202   :  { %p7296_p4 = pnand %p7294_p3, %p7291_p2 }
 0x204   :  { %7299 = shalt.err (!%p7296_p4)
}
 0x205   :  { %s7300_s24 = scalar_lea.vmem %s316_s12, 16  ;;  %s7304_s5 = scalar_lea.vmem %s316_s12, 32 }
 0x206   :  { %p7301_p5 = scmp.ne.s32.totalorder %s316_s12, %s7300_s24  ;;  %p7305_p6 = scmp.lt.s32.totalorder %s316_s12, %s316_s12 }
 0x207   :  { %p7306_p7 = scmp.lt.s32.totalorder %s7304_s5, %s7300_s24 }
 0x209   :  { %p7307_p8 = por %p7306_p7, %p7305_p6 }
 0x20b   :  { %p7308_p9 = pnand %p7307_p8, %p7301_p5 }
 0x20d   :  { %7311 = shalt.err (!%p7308_p9)
}
 0x20e   :  { %s8613_s27 = sld [smem:[#allocation85_spill]] }
 0x20f   :  { %318 = dma.hbm_to_vmem [thread:$0]  %s8612_s1, 16, %s316_s12, [#allocation27]  }
 0x214   :  { %s7312_s11 = scalar_lea.hbm %s8613_s27, 4096 }
 0x215   :  { %p7313_p10 = scmp.ne.s32.totalorder %s8613_s27, %s7312_s11  ;;  %p7316_p11 = scmp.lt.u32.totalorder %s7312_s11, %s8613_s27 }
 0x217   :  { %p7318_p12 = pnand %p7316_p11, %p7313_p10 }
 0x219   :  { %7321 = shalt.err (!%p7318_p12)
}
 0x21a   :  { %s7322_s0 = scalar_lea.vmem %s335_s7, 4096  ;;  %p7327_p0 = scmp.lt.s32.totalorder %s335_s7, %s335_s7 }
 0x21b   :  { %p7323_p13 = scmp.ne.s32.totalorder %s335_s7, %s7322_s0  ;;  %p7328_p1 = scmp.lt.s32.totalorder %s7322_s0, %s7322_s0 }
 0x21d   :  { %p7329_p2 = por %p7328_p1, %p7327_p0 }
 0x21f   :  { %p7330_p3 = pnand %p7329_p2, %p7323_p13 }
 0x221   :  { %7333 = shalt.err (!%p7330_p3)
}
 0x222   :  { %s8614_s15 = sld [smem:[#allocation86_spill]]  ;;  %s7597_s3 = smov [#allocation34]  }
 0x223   :  { %340 = dma.hbm_to_vmem [thread:$0]  %s8613_s27, 4096, %s335_s7, [#allocation30], %s7585_s13, %s7585_s13, %s7586_s14  }
 0x224   :  { %s356_s30 = sshll.u32 %s7597_s3, 4  ;;  %s7598_s25 = smov [#allocation37]   ;;  %s357_s30 = int_to_ptr.vmem [resolvable:$true] %s356_s30 }
 0x225   :  { %s379_s6 = sshll.u32 %s7598_s25, 4  ;;  %s380_s6 = int_to_ptr.vmem [resolvable:$true] %s379_s6 }
 0x228   :  { %s7334_s16 = scalar_lea.hbm %s8614_s15, 4096 }
 0x229   :  { %p7335_p4 = scmp.ne.s32.totalorder %s8614_s15, %s7334_s16  ;;  %p7338_p5 = scmp.lt.u32.totalorder %s7334_s16, %s8614_s15 }
 0x22b   :  { %p7340_p6 = pnand %p7338_p5, %p7335_p4 }
 0x22d   :  { %7343 = shalt.err (!%p7340_p6)
}
 0x22e   :  { %s7344_s4 = scalar_lea.vmem %s357_s30, 4096  ;;  %p7349_p8 = scmp.lt.s32.totalorder %s357_s30, %s357_s30 }
 0x22f   :  { %p7345_p7 = scmp.ne.s32.totalorder %s357_s30, %s7344_s4  ;;  %p7350_p9 = scmp.lt.s32.totalorder %s7344_s4, %s7344_s4 }
 0x231   :  { %p7351_p10 = por %p7350_p9, %p7349_p8 }
 0x233   :  { %p7352_p11 = pnand %p7351_p10, %p7345_p7 }
 0x235   :  { %7355 = shalt.err (!%p7352_p11)
}
 0x236   :  { %s8615_s8 = sld [smem:[#allocation87_spill]] }
 0x237   :  { %362 = dma.hbm_to_vmem [thread:$0]  %s8614_s15, 4096, %s357_s30, [#allocation33], %s7570_s26, %s7570_s26, %s7571_s28  }
 0x23c   :  { %s7356_s18 = scalar_lea.hbm %s8615_s8, 16 }
 0x23d   :  { %p7357_p12 = scmp.ne.s32.totalorder %s8615_s8, %s7356_s18  ;;  %p7360_p13 = scmp.lt.u32.totalorder %s7356_s18, %s8615_s8 }
 0x23f   :  { %p7362_p0 = pnand %p7360_p13, %p7357_p12 }
 0x241   :  { %7365 = shalt.err (!%p7362_p0)
}
 0x242   :  { %s7366_s19 = scalar_lea.vmem %s380_s6, 16  ;;  %s7370_s20 = scalar_lea.vmem %s380_s6, 32 }
 0x243   :  { %p7367_p1 = scmp.ne.s32.totalorder %s380_s6, %s7366_s19  ;;  %p7371_p2 = scmp.lt.s32.totalorder %s380_s6, %s380_s6 }
 0x244   :  { %p7372_p3 = scmp.lt.s32.totalorder %s7370_s20, %s7366_s19 }
 0x246   :  { %p7373_p4 = por %p7372_p3, %p7371_p2 }
 0x248   :  { %p7374_p5 = pnand %p7373_p4, %p7367_p1 }
 0x24a   :  { %7377 = shalt.err (!%p7374_p5)
}
 0x24b   :  { %s8616_s22 = sld [smem:[#allocation88_spill]]  ;;  %s7599_s26 = smov [#allocation40]  }
 0x24c   :  { %382 = dma.hbm_to_vmem [thread:$0]  %s8615_s8, 16, %s380_s6, [#allocation36]  }
 0x24d   :  { %s398_s28 = sshll.u32 %s7599_s26, 4  ;;  %s399_s28 = int_to_ptr.vmem [resolvable:$true] %s398_s28 }
 0x251   :  { %s7378_s23 = scalar_lea.hbm %s8616_s22, 768 }
 0x252   :  { %p7379_p6 = scmp.ne.s32.totalorder %s8616_s22, %s7378_s23  ;;  %p7382_p7 = scmp.lt.u32.totalorder %s7378_s23, %s8616_s22 }
 0x254   :  { %p7384_p8 = pnand %p7382_p7, %p7379_p6 }
 0x256   :  { %7387 = shalt.err (!%p7384_p8)
}
 0x257   :  { %s7388_s1 = scalar_lea.vmem %s399_s28, 768  ;;  %p7393_p10 = scmp.lt.s32.totalorder %s399_s28, %s399_s28 }
 0x258   :  { %p7389_p9 = scmp.ne.s32.totalorder %s399_s28, %s7388_s1  ;;  %p7394_p11 = scmp.lt.s32.totalorder %s7388_s1, %s7388_s1 }
 0x25a   :  { %p7395_p12 = por %p7394_p11, %p7393_p10 }
 0x25c   :  { %p7396_p13 = pnand %p7395_p12, %p7389_p9 }
 0x25e   :  { %7399 = shalt.err (!%p7396_p13)
}
 0x25f   :  { %s7600_s2 = smov 384   ;;  %s8617_s12 = sld [smem:[#allocation90_spill]] }
 0x260   :  { %s7601_s17 = smov 24   ;;  %s7602_s7 = smov [#allocation43]  }
 0x261   :  { %404 = dma.hbm_to_vmem [thread:$0]  %s8616_s22, 768, %s399_s28, [#allocation39], %s7600_s2, %s7600_s2, %s7601_s17  }
 0x262   :  { %s423_s10 = sshll.u32 %s7602_s7, 4  ;;  %s7603_s24 = smov [#allocation46]   ;;  %s424_s10 = int_to_ptr.vmem [resolvable:$true] %s423_s10 }
 0x263   :  { %s452_s5 = sshll.u32 %s7603_s24, 4  ;;  %s8014_s5 = int_to_ptr.vmem [resolvable:$true] %s452_s5 }
 0x265   :  { %s7400_s27 = scalar_lea.hbm %s8617_s12, 16 }
 0x266   :  { %p7401_p0 = scmp.ne.s32.totalorder %s8617_s12, %s7400_s27  ;;  %p7404_p1 = scmp.lt.u32.totalorder %s7400_s27, %s8617_s12 }
 0x268   :  { %p7406_p2 = pnand %p7404_p1, %p7401_p0 }
 0x26a   :  { %7409 = shalt.err (!%p7406_p2)
}
 0x26b   :  { %s7410_s11 = scalar_lea.vmem %s424_s10, 16  ;;  %s7414_s0 = scalar_lea.vmem %s424_s10, 32 }
 0x26c   :  { %p7411_p3 = scmp.ne.s32.totalorder %s424_s10, %s7410_s11  ;;  %p7415_p4 = scmp.lt.s32.totalorder %s424_s10, %s424_s10 }
 0x26d   :  { %p7416_p5 = scmp.lt.s32.totalorder %s7414_s0, %s7410_s11 }
 0x26f   :  { %p7417_p6 = por %p7416_p5, %p7415_p4 }
 0x271   :  { %p7418_p7 = pnand %p7417_p6, %p7411_p3 }
 0x273   :  { %7421 = shalt.err (!%p7418_p7)
}
 0x274   :  { %s8618_s15 = sld [smem:[#allocation95_spill]] }
 0x275   :  { %426 = dma.hbm_to_vmem [thread:$0]  %s8617_s12, 16, %s424_s10, [#allocation42]  }
 0x27a   :  { %s7422_s3 = scalar_lea.hbm %s8618_s15, 4096 }
 0x27b   :  { %p7423_p8 = scmp.ne.s32.totalorder %s8618_s15, %s7422_s3  ;;  %p7426_p9 = scmp.lt.u32.totalorder %s7422_s3, %s8618_s15 }
 0x27d   :  { %p7428_p10 = pnand %p7426_p9, %p7423_p8 }
 0x27f   :  { %7431 = shalt.err (!%p7428_p10)
}
 0x280   :  { %s7432_s30 = scalar_lea.vmem %s8014_s5, 4096  ;;  %p7437_p12 = scmp.lt.s32.totalorder %s8014_s5, %s8014_s5 }
 0x281   :  { %p7433_p11 = scmp.ne.s32.totalorder %s8014_s5, %s7432_s30  ;;  %p7438_p13 = scmp.lt.s32.totalorder %s7432_s30, %s7432_s30 }
 0x283   :  { %p7439_p0 = por %p7438_p13, %p7437_p12 }
 0x285   :  { %p7440_p1 = pnand %p7439_p0, %p7433_p11 }
 0x287   :  { %7443 = shalt.err (!%p7440_p1)
}
 0x288   :  { %458 = dma.hbm_to_vmem [thread:$0]  %s8618_s15, 4096, %s8014_s5, [#allocation45], %s7585_s13, %s7585_s13, %s7586_s14  }
 0x289   :  { %s7604_s25 = smov [#allocation49]   ;;  %s7444_s16 = scalar_lea.hbm %s7845_s21, 16 }
 0x28a   :  { %s479_s6 = sshll.u32 %s7604_s25, 4  ;;  %p7445_p2 = scmp.ne.s32.totalorder %s7845_s21, %s7444_s16  ;;  %s480_s6 = int_to_ptr.vmem [resolvable:$true] %s479_s6 }
 0x28b   :  { %p7448_p3 = scmp.lt.u32.totalorder %s7444_s16, %s7845_s21 }
 0x28d   :  { %p7450_p4 = pnand %p7448_p3, %p7445_p2 }
 0x28f   :  { %7453 = shalt.err (!%p7450_p4)
}
 0x290   :  { %s7454_s4 = scalar_lea.vmem %s480_s6, 16  ;;  %s7458_s8 = scalar_lea.vmem %s480_s6, 32 }
 0x291   :  { %p7455_p5 = scmp.ne.s32.totalorder %s480_s6, %s7454_s4  ;;  %p7459_p6 = scmp.lt.s32.totalorder %s480_s6, %s480_s6 }
 0x292   :  { %p7460_p7 = scmp.lt.s32.totalorder %s7458_s8, %s7454_s4 }
 0x294   :  { %p7461_p8 = por %p7460_p7, %p7459_p6 }
 0x296   :  { %p7462_p9 = pnand %p7461_p8, %p7455_p5 }
 0x298   :  { %7465 = shalt.err (!%p7462_p9)
}
 0x299   :  { %482 = dma.hbm_to_vmem [thread:$0]  %s7845_s21, 16, %s480_s6, [#allocation48]  }
 0x29a   :  { %7488 = dma.done.wait [#allocation3], 256  }
 0x29b   :  { %7489 = vsyncadd [#allocation3], 4294967040 }
 0x29c   :  { %7490 = dma.done.wait [#allocation6], 288  }
 0x29d   :  { %7491 = vsyncadd [#allocation6], 4294967008 }
 0x29e   :  { %7492 = dma.done.wait [#allocation9], 768  }
 0x29f   :  { %7493 = vsyncadd [#allocation9], 4294966528 }
 0x2a0   :  { %7494 = dma.done.wait [#allocation12], 512  }
 0x2a1   :  { %7495 = vsyncadd [#allocation12], 4294966784 }
 0x2a2   :  { %7496 = dma.done.wait [#allocation15], 400  }
 0x2a3   :  { %7497 = vsyncadd [#allocation15], 4294966896 }
 0x2a4   :  { %7498 = dma.done.wait [#allocation18], 1040  }
 0x2a5   :  { %7499 = vsyncadd [#allocation18], 4294966256 }
 0x2a6   :  { %7500 = dma.done.wait [#allocation21], 144  }
 0x2a7   :  { %7501 = vsyncadd [#allocation21], 4294967152 }
 0x2a8   :  { %7502 = dma.done.wait [#allocation24], 2096  }
 0x2a9   :  { %7503 = vsyncadd [#allocation24], 4294965200 }
 0x2aa   :  { %7504 = dma.done.wait [#allocation27], 32  }
 0x2ab   :  { %7505 = vsyncadd [#allocation27], 4294967264 }
 0x2ac   :  { %7506 = dma.done.wait [#allocation30], 4112  }
 0x2ad   :  { %7507 = vsyncadd [#allocation30], 4294963184 }
 0x2ae   :  { %7508 = dma.done.wait [#allocation33], 4128  }
 0x2af   :  { %7509 = vsyncadd [#allocation33], 4294963168 }
 0x2b0   :  { %7510 = dma.done.wait [#allocation36], 32  }
 0x2b1   :  { %7511 = vsyncadd [#allocation36], 4294967264 }
 0x2b2   :  { %7512 = dma.done.wait [#allocation39], 784  }
 0x2b3   :  { %7513 = vsyncadd [#allocation39], 4294966512 }
 0x2b4   :  { %7514 = dma.done.wait [#allocation42], 32  }
 0x2b5   :  { %7515 = vsyncadd [#allocation42], 4294967264 }
 0x2b6   :  { %7516 = dma.done.wait [#allocation45], 8192  }
 0x2b7   :  { %7517 = vsyncadd [#allocation45], 4294959104 }
 0x2b8   :  { %7518 = dma.done.wait [#allocation48], 48  }
 0x2b9   :  { %7519 = vsyncadd [#allocation48], 4294967248  ;;  %s8619_s21 = sld [smem:[#allocation82_spill]]  ;;  %v7605_v0 = vmov 0.0|0.0   ;;  %s8620_s13 = sld [smem:[#allocation68_spill]]  ;;  %vm7606_vm0 = vmmov 0  }
 0x2ba   :  { %6028 = vmatprep.subr.bf16.mxu0 %v7605_v0  ;;  %v7607_v1 = vmov 0.0   ;;  %6031 = vmatprep.subr.bf16.mxu1 %v7605_v0  ;;  %v577_v2 = vld [vmem:[#allocation14] sm:$0xff]  ;;  %v578_v3 = vld [vmem:[#allocation14 + $0x8] sm:$0xff]  ;;  %v579_v7 = vld [vmem:[#allocation14 + $0x10] sm:$0xf]  ;;  %vm591_vm1 = vcmask 1043456  }
 0x2bb   :  { %5592 = vmatprep.mubr.msk.f32.mxu0 %vm7606_vm0, %v7607_v1  ;;  %5611 = vmatprep.mubr.msk.f32.mxu1 %vm7606_vm0, %v7607_v1  ;;  %v6029_v4 = vpack.c.bf16 %v578_v3, %v577_v2  ;;  %vm587_vm2 = vcmask 162816   ;;  %v758_v9 = vld [vmem:[#allocation20] sm:$0xff]  ;;  %v756_v10 = vld [vmem:[#allocation2] sm:$0xff]  ;;  %vm766_vm3 = vcmask 64512   ;;  %vm681_vm4 = vcmask 523264   ;;  %s7608_s14 = smov 96  }
 0x2bc   :  { %v666_v16 = vld [vmem:[#allocation17] sm:$0xff]  ;;  %v667_v17 = vld [vmem:[#allocation17 + $0x8] sm:$0xff]  ;;  %v668_v21 = vld [vmem:[#allocation17 + $0x10] sm:$0xff]  ;;  %vm1084_vm5 = vcmask 261120   ;;  %s7609_s18 = smov 64   ;;  %vm1172_vm7 = vcmask 130048  }
 0x2bd   :  { %6030 = vmatpush3.bf16.msra.mxu0 %v6029_v4  ;;  %v6032_v18 = vpack.c.bf16 %v667_v17, %v666_v16  ;;  %v757_v19 = vld [vmem:[#allocation2 + $0x8] sm:$0xff]  ;;  %v671_v30 = vld [vmem:[#allocation17 + $0x28] sm:$0xff]  ;;  %v672_v58 = vld [vmem:[#allocation17 + $0x30] sm:$0xff]  ;;  %s7610_s19 = smov 32   ;;  %s8623_s20 = sld [smem:[#allocation70_spill]]  ;;  %vm5067_vm8 = vcmask 9216  }
 0x2be   :  { %5590 = vmatprep.subr.mxu0 %v7607_v1  ;;  %v669_v22 = vld [vmem:[#allocation17 + $0x18] sm:$0xff]  ;;  %v670_v29 = vld [vmem:[#allocation17 + $0x20] sm:$0xff]  ;;  %vm8128_vm6 = vmpackc.low %vm1084_vm5, %vm1084_vm5  ;;  %s8624_s22 = sld [smem:[#allocation72_spill]]  ;;  %s8625_s26 = sld [smem:[#allocation91_spill]] }
 0x2bf   :  { %v849_v5 = vld [vmem:[%s8619_s21 + $0x8] sm:$0xff]  ;;  %v852_v6 = vld [vmem:[%s8619_s21 + $0x20] sm:$0xff]  ;;  %v851_v13 = vld [vmem:[%s8619_s21 + $0x18] sm:$0xff]  ;;  %6033 = vmatpush3.bf16.msra.mxu1 %v6032_v18  ;;  %v6035_v27 = vpack.c.bf16 %v669_v22, %v668_v21  ;;  %v6038_v35 = vpack.c.bf16 %v671_v30, %v670_v29  ;;  %s8626_s28 = sld [smem:[#allocation92_spill]]  ;;  %s8627_s23 = sld [smem:[#allocation89_spill]] }
 0x2c0   :  { %v576_v8 = vld [vmem:[%s8620_s13] sm:$0x3]  ;;  %v6043_v11 = vpack.c.bf16 %v852_v6, %v849_v5  ;;  %v855_v14 = vld [vmem:[%s8619_s21 + $0x38] sm:$0xff]  ;;  %v858_v15 = vld [vmem:[%s8619_s21 + $0x50] sm:$0xff]  ;;  %6034 = vmatprep.subr.bf16.mxu1 %v7605_v0  ;;  %s8628_s1 = sld [smem:[#allocation75_spill]]  ;;  %s8629_s2 = sld [smem:[#allocation93_spill]] }
 0x2c1   :  { %v848_v12 = vld [vmem:[%s8619_s21] sm:$0xff]  ;;  %5591 = vmatpush3.msk.msra.mxu0 %vm591_vm1, %v579_v7  ;;  %v6047_v23 = vpack.c.bf16 %v858_v15, %v855_v14  ;;  %v854_v24 = vld [vmem:[%s8619_s21 + $0x30] sm:$0xff]  ;;  %v857_v25 = vld [vmem:[%s8619_s21 + $0x48] sm:$0xff]  ;;  %s8630_s12 = sld [smem:[#allocation94_spill]]  ;;  %s8631_s17 = sld [smem:[#allocation76_spill]] }
 0x2c2   :  { %5593 = vmatmul.mubr.msk.f32.vlgmr.msra.gmra.mrb[0].mxu0 %vm587_vm2, %v576_v8  ;;  %5614 = vmatprep.subr.mxu0 %v758_v9  ;;  %v6045_v20 = vpack.c.bf16 %v851_v13, %v848_v12  ;;  %v861_v26 = vld [vmem:[%s8619_s21 + $0x68] sm:$0xff]  ;;  %v864_v28 = vld [vmem:[%s8619_s21 + $0x80] sm:$0xff]  ;;  %v6049_v31 = vpack.c.bf16 %v857_v25, %v854_v24  ;;  %v863_v34 = vld [vmem:[%s8619_s21 + $0x78] sm:$0xff]  ;;  %s8632_s7 = sld [smem:[#allocation77_spill]]  ;;  %s8633_s10 = sld [smem:[#allocation96_spill]] }
 0x2c3   :  { %5615 = vmatpush3.msra.mxu0 %v758_v9  ;;  %5616 = vmatprep.mubr.msk.f32.mxu0 %vm766_vm3, %v756_v10  ;;  %v6051_v32 = vpack.c.bf16 %v864_v28, %v861_v26  ;;  %v860_v33 = vld [vmem:[%s8619_s21 + $0x60] sm:$0xff]  ;;  %v867_v36 = vld [vmem:[%s8619_s21 + $0x98] sm:$0xff]  ;;  %v870_v37 = vld [vmem:[%s8619_s21 + $0xb0] sm:$0xff]  ;;  %s8634_s24 = sld [smem:[#allocation78_spill]] }
 0x2c4   :  { %6044 = vmatprep.subr.bf16.mxu0 %v6043_v11  ;;  %6036 = vmatpush3.bf16.msra.mxu1 %v6035_v27  ;;  %v6053_v38 = vpack.c.bf16 %v863_v34, %v860_v33  ;;  %v6055_v39 = vpack.c.bf16 %v870_v37, %v867_v36  ;;  %v866_v40 = vld [vmem:[%s8619_s21 + $0x90] sm:$0xff]  ;;  %v869_v41 = vld [vmem:[%s8619_s21 + $0xa8] sm:$0xff]  ;;  %v876_v43 = vld [vmem:[%s8619_s21 + $0xe0] sm:$0xff] }
 0x2c5   :  { %6037 = vmatprep.subr.bf16.mxu1 %v7605_v0  ;;  %v873_v42 = vld [vmem:[%s8619_s21 + $0xc8] sm:$0xff]  ;;  %v6057_v44 = vpack.c.bf16 %v869_v41, %v866_v40  ;;  %v872_v46 = vld [vmem:[%s8619_s21 + $0xc0] sm:$0xff]  ;;  %v875_v47 = vld [vmem:[%s8619_s21 + $0xd8] sm:$0xff] }
 0x2c6   :  { %5617 = vmatmul.mubr.msk.f32.vlgmr.msra.gmra.mrb[2].mxu0 %vm766_vm3, %v757_v19  ;;  %v6059_v45 = vpack.c.bf16 %v876_v43, %v873_v42  ;;  %v879_v48 = vld [vmem:[%s8619_s21 + $0xf8] sm:$0xff]  ;;  %v882_v49 = vld [vmem:[%s8619_s21 + $0x110] sm:$0xff]  ;;  %v6061_v50 = vpack.c.bf16 %v875_v47, %v872_v46  ;;  %v881_v53 = vld [vmem:[%s8619_s21 + $0x108] sm:$0xff]  ;;  %v898_v42 = vlaneseq }
 0x2c7   :  { %6046 = vmatpush1.bf16.msra.mxu0 %v6045_v20  ;;  %977 = vmatprep.mubr.f32.mxu0 %v7607_v1  ;;  %v6063_v51 = vpack.c.bf16 %v882_v49, %v879_v48  ;;  %v878_v52 = vld [vmem:[%s8619_s21 + $0xf0] sm:$0xff]  ;;  %v885_v55 = vld [vmem:[%s8619_s21 + $0x128] sm:$0xff]  ;;  %v888_v56 = vld [vmem:[%s8619_s21 + $0x140] sm:$0xff] }
 0x2c8   :  { %6048 = vmatprep.subr.bf16.mxu0 %v6047_v23  ;;  %6039 = vmatpush3.bf16.msra.mxu1 %v6038_v35  ;;  %v6065_v54 = vpack.c.bf16 %v881_v53, %v878_v52  ;;  %v6067_v57 = vpack.c.bf16 %v888_v56, %v885_v55  ;;  %v673_v59 = vld [vmem:[#allocation17 + $0x38] sm:$0xff]  ;;  %v887_v62 = vld [vmem:[%s8619_s21 + $0x138] sm:$0xff]  ;;  %v894_v3 = vld [vmem:[%s8619_s21 + $0x170] sm:$0xff]  ;;  %v899_v43 = vshrl.u32 %v898_v42, 7 }
 0x2c9   :  { %6040 = vmatprep.subr.bf16.mxu1 %v7605_v0  ;;  %v884_v60 = vld [vmem:[%s8619_s21 + $0x120] sm:$0xff]  ;;  %v6041_v61 = vpack.c.bf16 %v673_v59, %v672_v58  ;;  %v891_v2 = vld [vmem:[%s8619_s21 + $0x158] sm:$0xff]  ;;  %v850_v4 = vld [vmem:[%s8619_s21 + $0x10] sm:$0xff] }
 0x2ca   :  { %v6069_v63 = vpack.c.bf16 %v887_v62, %v884_v60  ;;  %v6071_v5 = vpack.c.bf16 %v894_v3, %v891_v2  ;;  %v853_v6 = vld [vmem:[%s8619_s21 + $0x28] sm:$0xff]  ;;  %v890_v7 = vld [vmem:[%s8619_s21 + $0x150] sm:$0xff]  ;;  %v856_v13 = vld [vmem:[%s8619_s21 + $0x40] sm:$0xff]  ;;  %v8113_v49 = vsub.s32 1, %v899_v43  ;;  %v908_v62 = vsub.s32 2, %v899_v43 }
 0x2cb   :  { %6050 = vmatpush1.bf16.msra.mxu0 %v6049_v31  ;;  %v893_v8 = vld [vmem:[%s8619_s21 + $0x168] sm:$0xff]  ;;  %v6075_v9 = vpack.c.bf16 %v853_v6, %v850_v4  ;;  %v859_v14 = vld [vmem:[%s8619_s21 + $0x58] sm:$0xff]  ;;  %v5150_v18 = vld [vmem:[#allocation22] ss:$0 sm:$0xff] }
 0x2cc   :  { %6052 = vmatprep.subr.bf16.mxu0 %v6051_v32  ;;  %6042 = vmatpush3.bf16.msra.mxu1 %v6041_v61  ;;  %v6073_v10 = vpack.c.bf16 %v893_v8, %v890_v7  ;;  %v5145_v11 = vld [vmem:[#allocation16] ss:$0 sm:$0xff]  ;;  %v6079_v19 = vpack.c.bf16 %v859_v14, %v856_v13  ;;  %v862_v21 = vld [vmem:[%s8619_s21 + $0x70] sm:$0xff]  ;;  %v868_v26 = vld [vmem:[%s8619_s21 + $0xa0] sm:$0xff] }
 0x2cd   :  { %6076 = vmatprep.subr.bf16.mxu1 %v6075_v9  ;;  %v865_v22 = vld [vmem:[%s8619_s21 + $0x88] sm:$0xff]  ;;  %v871_v27 = vld [vmem:[%s8619_s21 + $0xb8] sm:$0xff]  ;;  %v874_v30 = vld [vmem:[%s8619_s21 + $0xd0] sm:$0xff] }
 0x2ce   :  { %v6083_v25 = vpack.c.bf16 %v865_v22, %v862_v21  ;;  %v6087_v29 = vpack.c.bf16 %v871_v27, %v868_v26  ;;  %v877_v31 = vld [vmem:[%s8619_s21 + $0xe8] sm:$0xff]  ;;  %v880_v33 = vld [vmem:[%s8619_s21 + $0x100] sm:$0xff]  ;;  %v883_v34 = vld [vmem:[%s8619_s21 + $0x118] sm:$0xff] }
 0x2cf   :  { %6054 = vmatpush1.bf16.msra.mxu0 %v6053_v38  ;;  %v6091_v32 = vpack.c.bf16 %v877_v31, %v874_v30  ;;  %v6095_v35 = vpack.c.bf16 %v883_v34, %v880_v33  ;;  %v886_v36 = vld [vmem:[%s8619_s21 + $0x130] sm:$0xff]  ;;  %v889_v37 = vld [vmem:[%s8619_s21 + $0x148] sm:$0xff]  ;;  %v895_v40 = vld [vmem:[%s8619_s21 + $0x178] sm:$0xff] }
 0x2d0   :  { %6056 = vmatprep.subr.bf16.mxu0 %v6055_v39  ;;  %v6099_v38 = vpack.c.bf16 %v889_v37, %v886_v36  ;;  %v892_v39 = vld [vmem:[%s8619_s21 + $0x160] sm:$0xff]  ;;  %v8164_v21 = vld [vmem:[#allocation5] sm:$0xff] }
 0x2d1   :  { %v6103_v41 = vpack.c.bf16 %v895_v40, %v892_v39 }
 0x2d3   :  { %6058 = vmatpush1.bf16.msra.mxu0 %v6057_v44  ;;  %v8108_v44 = vsub.s32 0, %v899_v43 }
 0x2d4   :  { %6060 = vmatprep.subr.bf16.mxu0 %v6059_v45  ;;  %v896_v45 = vld [vmem:[#allocation23] sm:$0x7] }
 0x2d5   :  { %v901_v47 = vrot.slane %v896_v45, %v8108_v44  ;;  %v905_v53 = vrot.slane %v896_v45, %v8113_v49 }
 0x2d7   :  { %6062 = vmatpush1.bf16.msra.mxu0 %v6061_v50 }
 0x2d8   :  { %6064 = vmatprep.subr.bf16.mxu0 %v6063_v51 }
 0x2db   :  { %6066 = vmatpush1.bf16.msra.mxu0 %v6065_v54 }
 0x2dc   :  { %6068 = vmatprep.subr.bf16.mxu0 %v6067_v57 }
 0x2df   :  { %6070 = vmatpush1.bf16.msra.mxu0 %v6069_v63  ;;  %v909_v63 = vrot.slane %v896_v45, %v908_v62 }
 0x2e0   :  { %6072 = vmatprep.subr.bf16.mxu0 %v6071_v5 }
 0x2e3   :  { %6074 = vmatpush1.bf16.msra.mxu0 %v6073_v10 }
 0x395   :  { %v661_v12 = vpop.f32.mrb[0].mxu0 }
 0x396   :  { %v662_v15 = vadd.f32 %v5145_v11, %v661_v12  ;;  %v5594_v16 = vpop.f32.mrb[1].mxu0 }
 0x398   :  { %v665_v17 = vmax.f32 %v662_v15, 0.0 }
 0x399   :  { %v5618_v20 = vpop.f32.mrb[2].mxu0 }
 0x39a   :  { %5612 = vmatmul.mubr.msk.f32.vlgmr.msra.gmra.mrb[0].mxu1 %vm681_vm4, %v665_v17  ;;  %v839_v23 = vpop.f32.mrb[3].mxu0  ;;  %v8096_v28 = vadd.f32 %v5618_v20, %v5150_v18  ;;  %v8162_v20 = vld [vmem:[#allocation5 + $0x8] sm:$0xff] }
 0x39b   :  { %v8089_v24 = vadd.f32 %v5150_v18, %v839_v23  ;;  %6078 = vmatpush3.bf16.msra.mxu1 %v6075_v9 }
 0x39c   :  { %6080 = vmatprep.subr.bf16.mxu1 %v6079_v19 }
 0x39d   :  { %978 = vmatmul.mubr.f32.vlgmr.msra.gmra.mrb[4].mxu0 %v8089_v24  ;;  %5651 = vmatprep.mubr.f32.mxu1 %v8089_v24 }
 0x39e   :  { %983 = vmatprep.mubr.f32.mxu0 %v7607_v1 }
 0x39f   :  { %6082 = vmatpush3.bf16.msra.mxu1 %v6079_v19 }
 0x3a0   :  { %6084 = vmatprep.subr.bf16.mxu1 %v6083_v25 }
 0x3a1   :  { %984 = vmatmul.mubr.f32.gmra.mrb[6].mxu0 %v8096_v28 }
 0x3a3   :  { %6086 = vmatpush3.bf16.msra.mxu1 %v6083_v25 }
 0x3a4   :  { %6088 = vmatprep.subr.bf16.mxu1 %v6087_v29 }
 0x3a7   :  { %6090 = vmatpush3.bf16.msra.mxu1 %v6087_v29 }
 0x3a8   :  { %6092 = vmatprep.subr.bf16.mxu1 %v6091_v32 }
 0x3ab   :  { %6094 = vmatpush3.bf16.msra.mxu1 %v6091_v32 }
 0x3ac   :  { %6096 = vmatprep.subr.bf16.mxu1 %v6095_v35 }
 0x3af   :  { %6098 = vmatpush3.bf16.msra.mxu1 %v6095_v35 }
 0x3b0   :  { %6100 = vmatprep.subr.bf16.mxu1 %v6099_v38 }
 0x3b3   :  { %6102 = vmatpush3.bf16.msra.mxu1 %v6099_v38 }
 0x3b4   :  { %6104 = vmatprep.subr.bf16.mxu1 %v6103_v41 }
 0x3b7   :  { %6106 = vmatpush3.bf16.msra.mxu1 %v6103_v41 }
 0x3ba   :  { %5652 = vmatmul.mubr.f32.vlgmr.msra.gmra.mrb[2].mxu1 %v8096_v28 }
 0x46d   :  { %v8110_v46 = vpop.f32.mrb[0].mxu1 }
 0x46e   :  { %v5613_v48 = vpop.f32.mrb[1].mxu1 }
 0x470   :  { %v979_v50 = vpop.f32.mrb[4].mxu0 }
 0x471   :  { %v8115_v51 = vadd.f32 %v979_v50, %v901_v47  ;;  %v981_v52 = vpop.f32.mrb[5].mxu0 }
 0x472   :  { %v982_v57 = vadd.f32 %v981_v52, %v905_v53 }
 0x473   :  { %1365 = vrot.lane.b32.xlu1 %v8115_v51, %s7608_s14  ;;  %5658 = vmatprep.mubr.msk.f32.mxu0 %vm1084_vm5, %v8115_v51 }
 0x474   :  { %v985_v54 = vpop.f32.mrb[6].mxu0 }
 0x475   :  { %v8122_v55 = vadd.f32 %v985_v54, %v901_v47  ;;  %v987_v56 = vpop.f32.mrb[7].mxu0 }
 0x476   :  { %v988_v58 = vadd.f32 %v987_v56, %v905_v53 }
 0x477   :  { %1367 = vrot.lane.b32.xlu1 %v8122_v55, %s7608_s14 }
 0x478   :  { %v8132_v60 = vpack.i.bf16 %v988_v58, %v982_v57  ;;  %v6107_v61 = vpack.c.bf16 %v988_v58, %v982_v57 }
 0x47a   :  { %6715 = vrot.lane.b32.xlu0 %v8132_v60, %s7608_s14  ;;  %6109 = vmatprep.subr.msk.bf16.mxu0 %vm8128_vm6, %v6107_v61 }
 0x47b   :  { %6112 = vmatpush3.bf16.xpose.msk.msra.mxu0 %vm8128_vm6, %v6107_v61  ;;  %1652 = vrot.lane.b32.xlu1 %v8122_v55, %s7609_s18 }
 0x47e   :  { %6720 = vrot.lane.b32.xlu0 %v8132_v60, %s7609_s18 }
 0x482   :  { %1650 = vrot.lane.b32.xlu0 %v8115_v51, %s7609_s18  ;;  %5659 = vmatmul.mubr.msk.f32.vlgmr.msra.gmra.mrb[8].mxu0 %vm1084_vm5, %v8122_v55 }
 0x48d   :  { %v5653_v2 = vpop.f32.mrb[2].mxu1 }
 0x48e   :  { %v1062_v3 = vadd.f32 %v5653_v2, %v909_v63  ;;  %v1056_v4 = vpop.f32.mrb[3].mxu1 }
 0x48f   :  { %v1057_v5 = vadd.f32 %v1056_v4, %v909_v63 }
 0x491   :  { %v6113_v6 = vpack.c.bf16 %v1062_v3, %v1057_v5  ;;  %v8148_v7 = vpack.i.bf16 %v1062_v3, %v1057_v5 }
 0x493   :  { %6114 = vmatprep.subr.bf16.mxu0 %v6113_v6 }
 0x494   :  { %6116 = vmatpush3.bf16.msra.mxu0 %v6113_v6 }
 0x4e5   :  { %v1366_v8 = vpop.permute.xlu1 %1365 }
 0x4e6   :  { %5683 = vmatprep.mubr.msk.f32.mxu1 %vm1084_vm5, %v1366_v8 }
 0x4e9   :  { %v1368_v17 = vpop.permute.xlu1 %1367 }
 0x4ec   :  { %v6716_v9 = vpop.permute.xlu0 %6715 }
 0x4ed   :  { %v6718_v10 = vunpack.i.h.bf16 %v6716_v9  ;;  %v6717_v11 = vunpack.i.l.bf16 %v6716_v9  ;;  %v1653_v19 = vpop.permute.xlu1 %1652 }
 0x4ef   :  { %v6125_v12 = vpack.c.bf16 %v6718_v10, %v6717_v11 }
 0x4f0   :  { %v6721_v13 = vpop.permute.xlu0 %6720 }
 0x4f1   :  { %v6723_v14 = vunpack.i.h.bf16 %v6721_v13  ;;  %v6722_v15 = vunpack.i.l.bf16 %v6721_v13  ;;  %6127 = vmatprep.subr.msk.bf16.mxu1 %vm8128_vm6, %v6125_v12 }
 0x4f2   :  { %6130 = vmatpush3.bf16.xpose.msk.msra.mxu1 %vm8128_vm6, %v6125_v12 }
 0x4f3   :  { %v6143_v16 = vpack.c.bf16 %v6723_v14, %v6722_v15 }
 0x4f4   :  { %v1651_v18 = vpop.permute.xlu0 %1650 }
 0x4f5   :  { %6145 = vmatprep.subr.msk.bf16.mxu1 %vm8128_vm6, %v6143_v16 }
 0x4f9   :  { %5684 = vmatmul.mubr.msk.f32.vlgmr.msra.gmra.mrb[4].mxu1 %vm1084_vm5, %v1368_v17  ;;  %v1068_v17 = vld [vmem:[#allocation25 + $0x8] sm:$0xff] }
 0x4fa   :  { %6148 = vmatpush3.bf16.xpose.msk.msra.mxu1 %vm8128_vm6, %v6143_v16  ;;  %5708 = vmatprep.mubr.msk.f32.mxu1 %vm1084_vm5, %v1651_v18  ;;  %v1067_v16 = vld [vmem:[#allocation25] sm:$0xff] }
 0x4fb   :  { %v6117_v18 = vpack.c.bf16 %v1068_v17, %v1067_v16 }
 0x4fd   :  { %6118 = vmatprep.subr.bf16.mxu0 %v6117_v18 }
 0x501   :  { %5709 = vmatmul.mubr.msk.f32.vlgmr.msra.gmra.mrb[6].mxu1 %vm1084_vm5, %v1653_v19  ;;  %v1070_v19 = vld [vmem:[#allocation25 + $0x18] sm:$0xff] }
 0x555   :  { %v5660_v22 = vpop.f32.mrb[8].mxu0 }
 0x556   :  { %v1169_v23 = vadd.f32 %v5660_v22, %v8162_v20  ;;  %v1163_v25 = vpop.f32.mrb[9].mxu0 }
 0x557   :  { %v1164_v26 = vadd.f32 %v1163_v25, %v8164_v21 }
 0x558   :  { %v1176_v27 = vsel %vm1172_vm7, %v1169_v23, -inf }
 0x559   :  { %1177 = vmax.xlane.f32.xlu1 %v1176_v27  ;;  %v1173_v29 = vsel %vm1172_vm7, %v1164_v26, -inf }
 0x55a   :  { %1174 = vmax.xlane.f32.xlu0 %v1173_v29 }
 0x56a   :  { %6725 = vrot.lane.b32.xlu1 %v8148_v7, %s7609_s18 }
 0x5cc   :  { %v5685_v30 = vpop.f32.mrb[4].mxu1 }
 0x5cd   :  { %v1447_v31 = vpop.f32.mrb[5].mxu1  ;;  %v1453_v13 = vadd.f32 %v5685_v30, %v8162_v20 }
 0x5ce   :  { %v1448_v14 = vadd.f32 %v1447_v31, %v8164_v21 }
 0x5cf   :  { %v1459_v15 = vsel %vm1172_vm7, %v1453_v13, -inf }
 0x5d4   :  { %v5710_v32 = vpop.f32.mrb[6].mxu1 }
 0x5d5   :  { %v1732_v33 = vpop.f32.mrb[7].mxu1  ;;  %v1738_v35 = vadd.f32 %v5710_v32, %v8162_v20 }
 0x5d6   :  { %v1733_v34 = vadd.f32 %v1732_v33, %v8164_v21 }
 0x5d7   :  { %v1744_v37 = vsel %vm1172_vm7, %v1738_v35, -inf }
 0x5d8   :  { %v1741_v36 = vsel %vm1172_vm7, %v1733_v34, -inf }
 0x5d9   :  { %1742 = vmax.xlane.f32.xlu0 %v1741_v36 }
 0x5dd   :  { %1745 = vmax.xlane.f32.xlu0 %v1744_v37 }
 0x5e6   :  { %v1178_v38 = vpop.xlane.xlu1 %1177 }
 0x5e7   :  { %v1180_v39 = vsub.f32 %v1169_v23, %v1178_v38  ;;  %v1175_v40 = vpop.xlane.xlu0 %1174 }
 0x5e8   :  { %v1179_v41 = vsub.f32 %v1164_v26, %v1175_v40 }
 0x5e9   :  { %v1183_v42 = vmul.f32 1.442695, %v1180_v39 }
 0x5ea   :  { %v1181_v43 = vmul.f32 1.442695, %v1179_v41  ;;  %v6726_v45 = vpop.permute.xlu1 %6725 }
 0x5eb   :  { %6744 = vpow2.f32 %v1183_v42  ;;  %v6728_v47 = vunpack.i.h.bf16 %v6726_v45  ;;  %v6727_v48 = vunpack.i.l.bf16 %v6726_v45 }
 0x5ec   :  { %6746 = vpow2.f32 %v1181_v43 }
 0x5ed   :  { %v6149_v50 = vpack.c.bf16 %v6728_v47, %v6727_v48 }
 0x5ef   :  { %6150 = vmatprep.subr.bf16.mxu1 %v6149_v50 }
 0x5f0   :  { %6152 = vmatpush3.bf16.msra.mxu1 %v6149_v50 }
 0x5f5   :  { %v6745_v52 = vpop.eup %6744 }
 0x5f6   :  { %v6747_v53 = vpop.eup %6746  ;;  %v1188_v54 = vsel %vm1172_vm7, %v6745_v52, 0.0 }
 0x5f7   :  { %1189 = vadd.xlane.f32.xlu0 %v1188_v54  ;;  %v1185_v56 = vsel %vm1172_vm7, %v6747_v53, 0.0 }
 0x5f8   :  { %1186 = vadd.xlane.f32.xlu1 %v1185_v56 }
 0x609   :  { %1933 = vrot.lane.b32.xlu1 %v8115_v51, %s7610_s19 }
 0x666   :  { %v1743_v57 = vpop.xlane.xlu0 %1742 }
 0x667   :  { %v1747_v58 = vsub.f32 %v1733_v34, %v1743_v57 }
 0x669   :  { %v1749_v61 = vmul.f32 1.442695, %v1747_v58 }
 0x66a   :  { %v1746_v62 = vpop.xlane.xlu0 %1745 }
 0x66b   :  { %6748 = vpow2.f32 %v1749_v61  ;;  %v1748_v63 = vsub.f32 %v1738_v35, %v1746_v62 }
 0x66d   :  { %v1751_v2 = vmul.f32 1.442695, %v1748_v63 }
 0x66f   :  { %6750 = vpow2.f32 %v1751_v2 }
 0x675   :  { %v6749_v3 = vpop.eup %6748 }
 0x676   :  { %v1753_v4 = vsel %vm1172_vm7, %v6749_v3, 0.0 }
 0x677   :  { %1754 = vadd.xlane.f32.xlu1 %v1753_v4 }
 0x679   :  { %v6751_v5 = vpop.eup %6750 }
 0x67a   :  { %v1756_v6 = vsel %vm1172_vm7, %v6751_v5, 0.0 }
 0x67b   :  { %1757 = vadd.xlane.f32.xlu0 %v1756_v6 }
 0x684   :  { %v1190_v8 = vpop.xlane.xlu0 %1189 }
 0x685   :  { %6752 = vrcp.f32 %v1190_v8  ;;  %v1187_v9 = vpop.xlane.xlu1 %1186 }
 0x686   :  { %6754 = vrcp.f32 %v1187_v9 }
 0x688   :  { %1935 = vrot.lane.b32.xlu1 %v8122_v55, %s7610_s19  ;;  %v1456_v55 = vsel %vm1172_vm7, %v1448_v14, -inf }
 0x689   :  { %v1934_v23 = vpop.permute.xlu1 %1933 }
 0x68f   :  { %v6753_v51 = vpop.eup %6752 }
 0x690   :  { %v6755_v10 = vpop.eup %6754  ;;  %v1194_v12 = vmul.f32 %v6753_v51, %v6745_v52 }
 0x691   :  { %6730 = vrot.lane.b32.xlu0 %v8132_v60, %s7610_s19  ;;  %v1192_v11 = vmul.f32 %v6755_v10, %v6747_v53  ;;  %v1069_v60 = vld [vmem:[#allocation25 + $0x10] sm:$0xff]  ;;  %v1071_v10 = vld [vmem:[#allocation25 + $0x20] sm:$0xff] }
 0x692   :  { %v6121_v22 = vpack.c.bf16 %v1070_v19, %v1069_v60 }
 0x693   :  { %5665 = vmatprep.mubr.msk.f32.mxu0 %vm1172_vm7, %v1192_v11  ;;  %v1072_v11 = vld [vmem:[#allocation25 + $0x28] sm:$0xff] }
 0x694   :  { %5666 = vmatmul.mubr.msk.f32.vlgmr.msra.gmra.mrb[10].mxu0 %vm1172_vm7, %v1194_v12  ;;  %v1073_v12 = vld [vmem:[#allocation25 + $0x30] sm:$0xff] }
 0x695   :  { %6120 = vmatpush3.bf16.msra.mxu0 %v6117_v18 }
 0x696   :  { %6122 = vmatprep.subr.bf16.mxu0 %v6121_v22 }
 0x699   :  { %6124 = vmatpush3.bf16.msra.mxu0 %v6121_v22 }
 0x6ac   :  { %1460 = vmax.xlane.f32.xlu1 %v1459_v15 }
 0x6b0   :  { %1457 = vmax.xlane.f32.xlu0 %v1456_v55  ;;  %v1075_v55 = vld [vmem:[#allocation25 + $0x40] sm:$0xff] }
 0x6bd   :  { %6735 = vrot.lane.b32.xlu1 %v8148_v7, %s7608_s14 }
 0x6c1   :  { %6740 = vrot.lane.b32.xlu1 %v8148_v7, %s7610_s19 }
 0x704   :  { %v1755_v25 = vpop.xlane.xlu1 %1754 }
 0x705   :  { %6756 = vrcp.f32 %v1755_v25 }
 0x708   :  { %v1758_v26 = vpop.xlane.xlu0 %1757  ;;  %v1936_v35 = vpop.permute.xlu1 %1935 }
 0x709   :  { %6758 = vrcp.f32 %v1758_v26 }
 0x70c   :  { %v6731_v27 = vpop.permute.xlu0 %6730 }
 0x70d   :  { %v6733_v29 = vunpack.i.h.bf16 %v6731_v27  ;;  %v6732_v30 = vunpack.i.l.bf16 %v6731_v27 }
 0x70f   :  { %v6757_v31 = vpop.eup %6756  ;;  %v6161_v32 = vpack.c.bf16 %v6733_v29, %v6732_v30  ;;  %v1077_v29 = vld [vmem:[#allocation25 + $0x50] sm:$0xff]  ;;  %v1078_v30 = vld [vmem:[#allocation25 + $0x58] sm:$0xff] }
 0x710   :  { %v1760_v33 = vmul.f32 %v6757_v31, %v6749_v3 }
 0x711   :  { %6163 = vmatprep.subr.msk.bf16.mxu1 %vm8128_vm6, %v6161_v32 }
 0x712   :  { %5715 = vmatprep.mubr.msk.f32.mxu1 %vm1172_vm7, %v1760_v33 }
 0x713   :  { %v6759_v34 = vpop.eup %6758 }
 0x714   :  { %v1762_v7 = vmul.f32 %v6759_v34, %v6751_v5  ;;  %v6157_v34 = vpack.c.bf16 %v1078_v30, %v1077_v29  ;;  %v2271_v29 = vld [vmem:[#allocation31 + $0x60] sm:$0xff]  ;;  %v2273_v30 = vld [vmem:[#allocation31 + $0x70] sm:$0xff] }
 0x716   :  { %5716 = vmatmul.mubr.msk.f32.vlgmr.msra.gmra.mrb[8].mxu1 %vm1172_vm7, %v1762_v7 }
 0x717   :  { %6166 = vmatpush3.bf16.xpose.msk.msra.mxu1 %vm8128_vm6, %v6161_v32  ;;  %5733 = vmatprep.mubr.msk.f32.mxu1 %vm1084_vm5, %v1934_v23 }
 0x718   :  { %6243 = vmatprep.subr.bf16.mxu1 %v7605_v0 }
 0x71e   :  { %5734 = vmatmul.mubr.msk.f32.vlgmr.msra.gmra.mrb[10].mxu1 %vm1084_vm5, %v1936_v35 }
 0x71f   :  { %5758 = vmatprep.mubr.msk.f32.mxu1 %vm7606_vm0, %v7607_v1 }
 0x739   :  { %v1461_v36 = vpop.xlane.xlu1 %1460 }
 0x73a   :  { %v1463_v37 = vsub.f32 %v1453_v13, %v1461_v36  ;;  %v6135_v13 = vpack.c.bf16 %v1072_v11, %v1071_v10  ;;  %v1079_v36 = vld [vmem:[#allocation25 + $0x60] sm:$0xff] }
 0x73b   :  { %v2263_v11 = vld [vmem:[#allocation31 + $0x20] sm:$0xff] }
 0x73c   :  { %v1466_v43 = vmul.f32 1.442695, %v1463_v37  ;;  %v1080_v37 = vld [vmem:[#allocation25 + $0x68] sm:$0xff] }
 0x73d   :  { %v6736_v38 = vpop.permute.xlu1 %6735  ;;  %v1458_v39 = vpop.xlane.xlu0 %1457 }
 0x73e   :  { %v6738_v40 = vunpack.i.h.bf16 %v6736_v38  ;;  %v6737_v41 = vunpack.i.l.bf16 %v6736_v38  ;;  %v1462_v42 = vsub.f32 %v1448_v14, %v1458_v39  ;;  %v1074_v14 = vld [vmem:[#allocation25 + $0x38] sm:$0xff]  ;;  %v6171_v39 = vpack.c.bf16 %v1080_v37, %v1079_v36  ;;  %v2280_v37 = vld [vmem:[#allocation31 + $0xa8] sm:$0xff] }
 0x73f   :  { %v6139_v15 = vpack.c.bf16 %v1074_v14, %v1073_v12  ;;  %v2265_v12 = vld [vmem:[#allocation31 + $0x30] sm:$0xff]  ;;  %v2270_v14 = vld [vmem:[#allocation31 + $0x58] sm:$0xff] }
 0x740   :  { %v6131_v59 = vpack.c.bf16 %v6738_v40, %v6737_v41  ;;  %v1464_v45 = vmul.f32 1.442695, %v1462_v42 }
 0x741   :  { %v6741_v31 = vpop.permute.xlu1 %6740 }
 0x742   :  { %6760 = vpow2.f32 %v1464_v45  ;;  %6132 = vmatprep.subr.bf16.mxu0 %v6131_v59  ;;  %v6743_v7 = vunpack.i.h.bf16 %v6741_v31  ;;  %v6742_v35 = vunpack.i.l.bf16 %v6741_v31  ;;  %v1082_v45 = vld [vmem:[#allocation25 + $0x78] sm:$0xff]  ;;  %v6193_v31 = vpack.c.bf16 %v2273_v30, %v2271_v29  ;;  %v2388_v29 = vld [vmem:[#allocation34 + $0x20] sm:$0xff]  ;;  %v2389_v30 = vld [vmem:[#allocation34 + $0x28] sm:$0xff] }
 0x743   :  { %6762 = vpow2.f32 %v1466_v43 }
 0x744   :  { %v6167_v38 = vpack.c.bf16 %v6743_v7, %v6742_v35  ;;  %v2275_v7 = vld [vmem:[#allocation31 + $0x80] sm:$0xff]  ;;  %v2277_v35 = vld [vmem:[#allocation31 + $0x90] sm:$0xff] }
 0x745   :  { %v6197_v36 = vpack.c.bf16 %v2277_v35, %v2275_v7  ;;  %v2391_v7 = vld [vmem:[#allocation34 + $0x38] sm:$0xff]  ;;  %v2408_v35 = vld [vmem:[#allocation34 + $0xc0] sm:$0xff] }
 0x74c   :  { %v6761_v47 = vpop.eup %6760 }
 0x74d   :  { %v1468_v48 = vsel %vm1172_vm7, %v6761_v47, 0.0  ;;  %v6763_v50 = vpop.eup %6762 }
 0x74e   :  { %1469 = vadd.xlane.f32.xlu0 %v1468_v48  ;;  %v1471_v52 = vsel %vm1172_vm7, %v6763_v50, 0.0 }
 0x752   :  { %1472 = vadd.xlane.f32.xlu0 %v1471_v52 }
 0x767   :  { %v5667_v53 = vpop.f32.mrb[10].mxu0 }
 0x768   :  { %v1267_v54 = vpop.f32.mrb[11].mxu0 }
 0x769   :  { %5676 = vmatprep.mubr.msk.f32.mxu0 %vm1084_vm5, %v1267_v54  ;;  %v5161_v54 = vld [vmem:[#allocation26] ss:$0 sm:$0xff] }
 0x76a   :  { %5677 = vmatmul.mubr.msk.f32.vlgmr.msra.gmra.mrb[12].mxu0 %vm1084_vm5, %v5667_v53 }
 0x76b   :  { %6134 = vmatpush3.bf16.msra.mxu0 %v6131_v59  ;;  %v1081_v59 = vld [vmem:[#allocation25 + $0x70] sm:$0xff] }
 0x76c   :  { %6136 = vmatprep.subr.bf16.mxu0 %v6135_v13 }
 0x7db   :  { %v1470_v56 = vpop.xlane.xlu0 %1469 }
 0x7dc   :  { %6764 = vrcp.f32 %v1470_v56 }
 0x7df   :  { %v1473_v57 = vpop.xlane.xlu0 %1472 }
 0x7e0   :  { %6766 = vrcp.f32 %v1473_v57 }
 0x7e6   :  { %v6765_v58 = vpop.eup %6764 }
 0x7e7   :  { %v1475_v61 = vmul.f32 %v6765_v58, %v6761_v47 }
 0x7e9   :  { %5690 = vmatprep.mubr.msk.f32.mxu0 %vm1172_vm7, %v1475_v61  ;;  %v5717_v62 = vpop.f32.mrb[8].mxu1 }
 0x7ea   :  { %v6767_v63 = vpop.eup %6766  ;;  %v1841_v2 = vpop.f32.mrb[9].mxu1 }
 0x7eb   :  { %v1477_v3 = vmul.f32 %v6767_v63, %v6763_v50  ;;  %v6175_v50 = vpack.c.bf16 %v1082_v45, %v1081_v59  ;;  %v2286_v59 = vld [vmem:[#allocation31 + $0xd8] sm:$0xff]  ;;  %v2283_v45 = vld [vmem:[#allocation31 + $0xc0] sm:$0xff] }
 0x7ed   :  { %5691 = vmatmul.mubr.msk.f32.vlgmr.msra.gmra.mrb[14].mxu0 %vm1172_vm7, %v1477_v3  ;;  %v2262_v3 = vld [vmem:[#allocation31 + $0x18] sm:$0xff] }
 0x7ee   :  { %6138 = vmatpush3.bf16.msra.mxu0 %v6135_v13  ;;  %v2268_v13 = vld [vmem:[#allocation31 + $0x48] sm:$0xff] }
 0x7ef   :  { %6140 = vmatprep.subr.bf16.mxu0 %v6139_v15 }
 0x7f1   :  { %v5735_v4 = vpop.f32.mrb[10].mxu1 }
 0x7f2   :  { %v2015_v5 = vpop.f32.mrb[11].mxu1  ;;  %v2021_v8 = vadd.f32 %v5735_v4, %v8162_v20  ;;  %6142 = vmatpush3.bf16.msra.mxu0 %v6139_v15  ;;  %v2259_v4 = vld [vmem:[#allocation31] sm:$0xff] }
 0x7f3   :  { %v2016_v6 = vadd.f32 %v2015_v5, %v8164_v21  ;;  %v1076_v21 = vld [vmem:[#allocation25 + $0x48] sm:$0xff] }
 0x7f4   :  { %v2027_v51 = vsel %vm1172_vm7, %v2021_v8, -inf  ;;  %v6153_v16 = vpack.c.bf16 %v1076_v21, %v1075_v55  ;;  %v2267_v15 = vld [vmem:[#allocation31 + $0x40] sm:$0xff]  ;;  %v2269_v55 = vld [vmem:[#allocation31 + $0x50] sm:$0xff] }
 0x7f5   :  { %v2024_v9 = vsel %vm1172_vm7, %v2016_v6, -inf  ;;  %v6189_v21 = vpack.c.bf16 %v2269_v55, %v2267_v15 }
 0x7f6   :  { %2025 = vmax.xlane.f32.xlu0 %v2024_v9  ;;  %6154 = vmatprep.subr.bf16.mxu0 %v6153_v16  ;;  %v2266_v9 = vld [vmem:[#allocation31 + $0x38] sm:$0xff] }
 0x7fa   :  { %2028 = vmax.xlane.f32.xlu0 %v2027_v51 }
 0x883   :  { %v2026_v20 = vpop.xlane.xlu0 %2025 }
 0x884   :  { %v2030_v17 = vsub.f32 %v2016_v6, %v2026_v20  ;;  %v2261_v6 = vld [vmem:[#allocation31 + $0x10] sm:$0xff] }
 0x885   :  { %v6181_v51 = vpack.c.bf16 %v2261_v6, %v2259_v4 }
 0x886   :  { %v2032_v18 = vmul.f32 1.442695, %v2030_v17 }
 0x887   :  { %v2029_v60 = vpop.xlane.xlu0 %2028 }
 0x888   :  { %6768 = vpow2.f32 %v2032_v18  ;;  %v2031_v19 = vsub.f32 %v2021_v8, %v2029_v60  ;;  %v2264_v8 = vld [vmem:[#allocation31 + $0x28] sm:$0xff] }
 0x889   :  { %v6183_v10 = vpack.c.bf16 %v2266_v9, %v2264_v8 }
 0x88a   :  { %v2034_v22 = vmul.f32 1.442695, %v2031_v19 }
 0x88c   :  { %6770 = vpow2.f32 %v2034_v22 }
 0x892   :  { %v6769_v23 = vpop.eup %6768 }
 0x893   :  { %v2036_v25 = vsel %vm1172_vm7, %v6769_v23, 0.0 }
 0x894   :  { %2037 = vadd.xlane.f32.xlu0 %v2036_v25  ;;  %v2272_v25 = vld [vmem:[#allocation31 + $0x68] sm:$0xff] }
 0x896   :  { %v6771_v26 = vpop.eup %6770 }
 0x897   :  { %v2039_v27 = vsel %vm1172_vm7, %v6771_v26, 0.0 }
 0x898   :  { %2040 = vadd.xlane.f32.xlu0 %v2039_v27 }
 0x8c0   :  { %v5692_v32 = vpop.f32.mrb[14].mxu0 }
 0x8c1   :  { %v1558_v33 = vpop.f32.mrb[15].mxu0 }
 0x8c2   :  { %5701 = vmatprep.mubr.msk.f32.mxu0 %vm1084_vm5, %v1558_v33  ;;  %v2278_v33 = vld [vmem:[#allocation31 + $0x98] sm:$0xff] }
 0x8c3   :  { %5702 = vmatmul.mubr.msk.f32.vlgmr.msra.gmra.mrb[12].mxu0 %vm1084_vm5, %v5692_v32  ;;  %v2276_v32 = vld [vmem:[#allocation31 + $0x88] sm:$0xff] }
 0x8c4   :  { %6156 = vmatpush3.bf16.msra.mxu0 %v6153_v16  ;;  %5726 = vmatprep.mubr.msk.f32.mxu0 %vm1084_vm5, %v1841_v2  ;;  %v2260_v2 = vld [vmem:[#allocation31 + $0x8] sm:$0xff] }
 0x8c5   :  { %6158 = vmatprep.subr.bf16.mxu0 %v6157_v34  ;;  %v6179_v5 = vpack.c.bf16 %v2262_v3, %v2260_v2 }
 0x8c8   :  { %6160 = vmatpush3.bf16.msra.mxu0 %v6157_v34  ;;  %v6195_v34 = vpack.c.bf16 %v2278_v33, %v2276_v32  ;;  %v6221_v32 = vpack.c.bf16 %v2389_v30, %v2388_v29 }
 0x8c9   :  { %6168 = vmatprep.subr.bf16.mxu0 %v6167_v38 }
 0x8cb   :  { %5727 = vmatmul.mubr.msk.f32.vlgmr.msra.gmra.mrb[12].mxu0 %vm1084_vm5, %v5717_v62 }
 0x8cc   :  { %6170 = vmatpush3.bf16.msra.mxu0 %v6167_v38  ;;  %v2282_v38 = vld [vmem:[#allocation31 + $0xb8] sm:$0xff] }
 0x8cd   :  { %6172 = vmatprep.subr.bf16.mxu0 %v6171_v39 }
 0x921   :  { %v2038_v40 = vpop.xlane.xlu0 %2037 }
 0x922   :  { %6772 = vrcp.f32 %v2038_v40  ;;  %v2279_v40 = vld [vmem:[#allocation31 + $0xa0] sm:$0xff] }
 0x925   :  { %v2041_v41 = vpop.xlane.xlu0 %2040 }
 0x926   :  { %6774 = vrcp.f32 %v2041_v41  ;;  %v2281_v41 = vld [vmem:[#allocation31 + $0xb0] sm:$0xff] }
 0x92c   :  { %v6773_v42 = vpop.eup %6772 }
 0x92d   :  { %v2043_v43 = vmul.f32 %v6773_v42, %v6769_v23  ;;  %v6201_v42 = vpack.c.bf16 %v2281_v41, %v2279_v40  ;;  %v2393_v40 = vld [vmem:[#allocation34 + $0x48] sm:$0xff]  ;;  %v2410_v41 = vld [vmem:[#allocation34 + $0xd0] sm:$0xff] }
 0x92f   :  { %5740 = vmatprep.mubr.msk.f32.mxu0 %vm1172_vm7, %v2043_v43  ;;  %v2284_v43 = vld [vmem:[#allocation31 + $0xc8] sm:$0xff] }
 0x930   :  { %v6775_v47 = vpop.eup %6774 }
 0x931   :  { %v2045_v48 = vmul.f32 %v6775_v47, %v6771_v26  ;;  %v2274_v26 = vld [vmem:[#allocation31 + $0x78] sm:$0xff]  ;;  %v6203_v47 = vpack.c.bf16 %v2286_v59, %v2284_v43 }
 0x932   :  { %v6191_v27 = vpack.c.bf16 %v2274_v26, %v2272_v25 }
 0x933   :  { %5741 = vmatmul.mubr.msk.f32.vlgmr.msra.gmra.mrb[16].mxu0 %vm1172_vm7, %v2045_v48  ;;  %v2285_v48 = vld [vmem:[#allocation31 + $0xd0] sm:$0xff] }
 0x934   :  { %6174 = vmatpush3.bf16.msra.mxu0 %v6171_v39  ;;  %v6199_v39 = vpack.c.bf16 %v2282_v38, %v2280_v37 }
 0x935   :  { %6176 = vmatprep.subr.bf16.mxu0 %v6175_v50 }
 0x938   :  { %6178 = vmatpush3.bf16.msra.mxu0 %v6175_v50  ;;  %v2288_v50 = vld [vmem:[#allocation31 + $0xe8] sm:$0xff] }
 0x939   :  { %6180 = vmatprep.subr.bf16.mxu0 %v6179_v5 }
 0xa06   :  { %v5742_v52 = vpop.f32.mrb[16].mxu0 }
 0xa07   :  { %v2124_v53 = vpop.f32.mrb[17].mxu0 }
 0xa08   :  { %5751 = vmatprep.mubr.msk.f32.mxu0 %vm1084_vm5, %v2124_v53  ;;  %v6205_v53 = vpack.c.bf16 %v2285_v48, %v2283_v45  ;;  %v2394_v45 = vld [vmem:[#allocation34 + $0x50] sm:$0xff]  ;;  %v2412_v48 = vld [vmem:[#allocation34 + $0xe0] sm:$0xff] }
 0xa09   :  { %5752 = vmatmul.mubr.msk.f32.vlgmr.msra.gmra.mrb[12].mxu0 %vm1084_vm5, %v5742_v52  ;;  %v2290_v52 = vld [vmem:[#allocation31 + $0xf8] sm:$0xff] }
 0xa0a   :  { %2367 = vmatprep.mubr.f32.mxu0 %v7607_v1  ;;  %6182 = vmatpush1.bf16.msra.mxu0 %v6181_v51  ;;  %v5186_v51 = vld [vmem:[#allocation28] ss:$0 sm:$0xff] }
 0xa0b   :  { %6184 = vmatprep.subr.bf16.mxu0 %v6183_v10 }
 0xadc   :  { %v5753_v56 = vpop.f32.mrb[12].mxu0 }
 0xadd   :  { %v6604_v57 = vadd.f32 %v5753_v56, %v5161_v54  ;;  %v2205_v58 = vpop.f32.mrb[13].mxu0  ;;  %v2287_v56 = vld [vmem:[#allocation31 + $0xe0] sm:$0xff] }
 0xade   :  { %v6605_v61 = vadd.f32 %v5161_v54, %v2205_v58  ;;  %v6207_v54 = vpack.c.bf16 %v2290_v52, %v2288_v50  ;;  %v2413_v50 = vld [vmem:[#allocation34 + $0xe8] sm:$0xff] }
 0xadf   :  { %v2217_v62 = vadd.f32 %v6604_v57, %v8096_v28  ;;  %v6185_v28 = vpack.c.bf16 %v2265_v12, %v2263_v11  ;;  %v2289_v57 = vld [vmem:[#allocation31 + $0xf0] sm:$0xff]  ;;  %v2384_v11 = vld [vmem:[#allocation34] sm:$0xff] }
 0xae0   :  { %v2216_v63 = vadd.f32 %v6605_v61, %v8089_v24  ;;  %v6187_v24 = vpack.c.bf16 %v2270_v14, %v2268_v13  ;;  %v6209_v58 = vpack.c.bf16 %v2289_v57, %v2287_v56  ;;  %v2400_v61 = vld [vmem:[#allocation34 + $0x80] sm:$0xff]  ;;  %v2385_v12 = vld [vmem:[#allocation34 + $0x8] sm:$0xff]  ;;  %v5187_v13 = vld [vmem:[#allocation29] ss:$0 sm:$0xff] }
 0xae1   :  { %2222 = vadd.xlane.f32.xlu1 %v2217_v62  ;;  %6186 = vmatpush1.bf16.msra.mxu0 %v6185_v28  ;;  %v2402_v14 = vld [vmem:[#allocation34 + $0x90] sm:$0xff]  ;;  %v2403_v28 = vld [vmem:[#allocation34 + $0x98] sm:$0xff]  ;;  %v6213_v55 = vpack.c.bf16 %v2385_v12, %v2384_v11  ;;  %v2397_v56 = vld [vmem:[#allocation34 + $0x68] sm:$0xff] }
 0xae2   :  { %2220 = vadd.xlane.f32.xlu0 %v2216_v63  ;;  %6188 = vmatprep.subr.bf16.mxu0 %v6187_v24 }
 0xae5   :  { %6190 = vmatpush1.bf16.msra.mxu0 %v6189_v21 }
 0xae6   :  { %6192 = vmatprep.subr.bf16.mxu0 %v6191_v27 }
 0xae9   :  { %6194 = vmatpush1.bf16.msra.mxu0 %v6193_v31  ;;  %v2406_v31 = vld [vmem:[#allocation34 + $0xb0] sm:$0xff] }
 0xaea   :  { %6196 = vmatprep.subr.bf16.mxu0 %v6195_v34  ;;  %v2390_v34 = vld [vmem:[#allocation34 + $0x30] sm:$0xff] }
 0xaeb   :  { %v6225_v37 = vpack.c.bf16 %v2391_v7, %v2390_v34 }
 0xaed   :  { %6198 = vmatpush1.bf16.msra.mxu0 %v6197_v36  ;;  %v2409_v36 = vld [vmem:[#allocation34 + $0xc8] sm:$0xff] }
 0xaee   :  { %6200 = vmatprep.subr.bf16.mxu0 %v6199_v39  ;;  %v6227_v38 = vpack.c.bf16 %v2409_v36, %v2408_v35  ;;  %v2392_v39 = vld [vmem:[#allocation34 + $0x40] sm:$0xff] }
 0xaef   :  { %v6229_v43 = vpack.c.bf16 %v2393_v40, %v2392_v39  ;;  %v2616_v40 = vld [vmem:[%s8623_s20 + $0x10] sm:$0xff] }
 0xaf1   :  { %6202 = vmatpush1.bf16.msra.mxu0 %v6201_v42  ;;  %v2411_v42 = vld [vmem:[#allocation34 + $0xd8] sm:$0xff] }
 0xaf2   :  { %6204 = vmatprep.subr.bf16.mxu0 %v6203_v47  ;;  %v6231_v59 = vpack.c.bf16 %v2411_v42, %v2410_v41  ;;  %v2395_v47 = vld [vmem:[#allocation34 + $0x58] sm:$0xff] }
 0xaf3   :  { %v6233_v52 = vpack.c.bf16 %v2395_v47, %v2394_v45  ;;  %v2617_v41 = vld [vmem:[%s8623_s20 + $0x18] sm:$0xff] }
 0xaf5   :  { %6206 = vmatpush1.bf16.msra.mxu0 %v6205_v53  ;;  %v6235_v53 = vpack.c.bf16 %v2413_v50, %v2412_v48 }
 0xaf6   :  { %6208 = vmatprep.subr.bf16.mxu0 %v6207_v54  ;;  %v2396_v54 = vld [vmem:[#allocation34 + $0x60] sm:$0xff] }
 0xaf7   :  { %v6237_v57 = vpack.c.bf16 %v2397_v56, %v2396_v54 }
 0xaf9   :  { %6210 = vmatpush1.bf16.msra.mxu0 %v6209_v58  ;;  %v2414_v58 = vld [vmem:[#allocation34 + $0xf0] sm:$0xff] }
 0xb6e   :  { %v2223_v16 = vpop.xlane.xlu1 %2222 }
 0xb6f   :  { %v2221_v20 = vpop.xlane.xlu0 %2220  ;;  %v2226_v17 = vmul.f32 0.0078125, %v2223_v16 }
 0xb70   :  { %v2225_v18 = vmul.f32 0.0078125, %v2221_v20  ;;  %v6215_v20 = vpack.c.bf16 %v2403_v28, %v2402_v14 }
 0xb71   :  { %v8230_v19 = vsub.f32 %v2217_v62, %v2226_v17  ;;  %v2401_v62 = vld [vmem:[#allocation34 + $0x88] sm:$0xff]  ;;  %v2386_v17 = vld [vmem:[#allocation34 + $0x10] sm:$0xff] }
 0xb72   :  { %v2227_v60 = vsub.f32 %v2216_v63, %v2225_v18  ;;  %v6211_v63 = vpack.c.bf16 %v2401_v62, %v2400_v61  ;;  %v2387_v18 = vld [vmem:[#allocation34 + $0x18] sm:$0xff] }
 0xb73   :  { %v2230_v23 = vmul.f32 %v8230_v19, %v8230_v19  ;;  %v6217_v25 = vpack.c.bf16 %v2387_v18, %v2386_v17  ;;  %v2415_v61 = vld [vmem:[#allocation34 + $0xf8] sm:$0xff] }
 0xb74   :  { %v2229_v22 = vmul.f32 %v2227_v60, %v2227_v60  ;;  %6212 = vmatprep.subr.bf16.mxu0 %v6211_v63  ;;  %v6239_v62 = vpack.c.bf16 %v2415_v61, %v2414_v58  ;;  %v2398_v63 = vld [vmem:[#allocation34 + $0x70] sm:$0xff]  ;;  %v5190_v58 = vld [vmem:[#allocation38] ss:$0 sm:$0xff] }
 0xb76   :  { %2231 = vadd.xlane.f32.xlu0 %v2229_v22  ;;  %v2404_v22 = vld [vmem:[#allocation34 + $0xa0] sm:$0xff] }
 0xb7a   :  { %2233 = vadd.xlane.f32.xlu0 %v2230_v23  ;;  %v2405_v23 = vld [vmem:[#allocation34 + $0xa8] sm:$0xff] }
 0xb7b   :  { %v6219_v27 = vpack.c.bf16 %v2405_v23, %v2404_v22 }
 0xc03   :  { %v2232_v2 = vpop.xlane.xlu0 %2231 }
 0xc04   :  { %v2235_v3 = vmul.f32 0.0078125, %v2232_v2  ;;  %v2399_v2 = vld [vmem:[#allocation34 + $0x78] sm:$0xff] }
 0xc06   :  { %v2237_v4 = vadd.f32 1e-05, %v2235_v3  ;;  %v6241_v3 = vpack.c.bf16 %v2399_v2, %v2398_v63  ;;  %v2622_v63 = vld [vmem:[#allocation40 + $0x20] sm:$0xff] }
 0xc07   :  { %v2234_v5 = vpop.xlane.xlu0 %2233 }
 0xc08   :  { %6776 = vrsqrt.f32 %v2237_v4  ;;  %v2236_v6 = vmul.f32 0.0078125, %v2234_v5  ;;  %v2291_v4 = vld [vmem:[#allocation32] sm:$0x3] }
 0xc09   :  { %v2296_v5 = vrot.slane %v2291_v4, %v8108_v44 }
 0xc0a   :  { %v2238_v8 = vadd.f32 1e-05, %v2236_v6  ;;  %v2300_v6 = vrot.slane %v2291_v4, %v8113_v49 }
 0xc0c   :  { %6778 = vrsqrt.f32 %v2238_v8 }
 0xc12   :  { %v6777_v9 = vpop.eup %6776 }
 0xc13   :  { %v2241_v10 = vmul.f32 %v6777_v9, %v2227_v60 }
 0xc15   :  { %v2249_v24 = vmul.f32 %v5186_v51, %v2241_v10 }
 0xc16   :  { %v6779_v15 = vpop.eup %6778 }
 0xc17   :  { %v8234_v21 = vadd.f32 %v5187_v13, %v2249_v24  ;;  %v2242_v16 = vmul.f32 %v6779_v15, %v8230_v19  ;;  %v2407_v19 = vld [vmem:[#allocation34 + $0xb8] sm:$0xff] }
 0xc18   :  { %v6223_v33 = vpack.c.bf16 %v2407_v19, %v2406_v31 }
 0xc19   :  { %2368 = vmatmul.mubr.f32.vlgmr.msra.gmra.mrb[18].mxu0 %v8234_v21  ;;  %v2250_v60 = vmul.f32 %v5186_v51, %v2242_v16 }
 0xc1a   :  { %2373 = vmatprep.mubr.f32.mxu0 %v7607_v1  ;;  %6214 = vmatpush3.bf16.msra.mxu0 %v6213_v55 }
 0xc1b   :  { %v8239_v26 = vadd.f32 %v5187_v13, %v2250_v60  ;;  %6216 = vmatprep.subr.bf16.mxu0 %v6215_v20  ;;  %v5188_v20 = vld [vmem:[#allocation35] ss:$0 sm:$0xff] }
 0xc1d   :  { %2374 = vmatmul.mubr.f32.gmra.mrb[20].mxu0 %v8239_v26 }
 0xc1e   :  { %6218 = vmatpush3.bf16.msra.mxu0 %v6217_v25 }
 0xc1f   :  { %6220 = vmatprep.subr.bf16.mxu0 %v6219_v27 }
 0xc22   :  { %6222 = vmatpush3.bf16.msra.mxu0 %v6221_v32 }
 0xc23   :  { %6224 = vmatprep.subr.bf16.mxu0 %v6223_v33 }
 0xc26   :  { %6226 = vmatpush3.bf16.msra.mxu0 %v6225_v37  ;;  %v2623_v37 = vld [vmem:[#allocation40 + $0x28] sm:$0xff] }
 0xc27   :  { %6228 = vmatprep.subr.bf16.mxu0 %v6227_v38  ;;  %v2614_v38 = vld [vmem:[%s8623_s20] sm:$0xff] }
 0xc2a   :  { %6230 = vmatpush3.bf16.msra.mxu0 %v6229_v43 }
 0xc2b   :  { %6232 = vmatprep.subr.bf16.mxu0 %v6231_v59 }
 0xc2e   :  { %6234 = vmatpush3.bf16.msra.mxu0 %v6233_v52 }
 0xc2f   :  { %6236 = vmatprep.subr.bf16.mxu0 %v6235_v53  ;;  %v5189_v53 = vld [vmem:[#allocation37] ss:$0 sm:$0xff] }
 0xc32   :  { %6238 = vmatpush3.bf16.msra.mxu0 %v6237_v57 }
 0xc33   :  { %6240 = vmatprep.subr.bf16.mxu0 %v6239_v62  ;;  %v2619_v62 = vld [vmem:[#allocation40 + $0x8] sm:$0xff] }
 0xc34   :  { %v6246_v4 = vpack.c.bf16 %v2622_v63, %v2619_v62 }
 0xc36   :  { %6242 = vmatpush3.bf16.msra.mxu0 %v6241_v3 }
 0xcec   :  { %v2369_v8 = vpop.f32.mrb[18].mxu0 }
 0xced   :  { %v2370_v9 = vadd.f32 %v2369_v8, %v2296_v5  ;;  %v2371_v51 = vpop.f32.mrb[19].mxu0 }
 0xcee   :  { %v2372_v10 = vadd.f32 %v2371_v51, %v2300_v6 }
 0xcef   :  { %v2380_v13 = vmax.f32 %v2370_v9, 0.0  ;;  %v2540_v9 = vld [vmem:[#allocation7] sm:$0x3] }
 0xcf0   :  { %v2381_v11 = vmax.f32 %v2372_v10, 0.0  ;;  %v2375_v12 = vpop.f32.mrb[20].mxu0 }
 0xcf1   :  { %v2376_v14 = vadd.f32 %v2375_v12, %v2296_v5  ;;  %v2377_v28 = vpop.f32.mrb[21].mxu0  ;;  %v2618_v5 = vld [vmem:[#allocation40] sm:$0xff] }
 0xcf2   :  { %v2378_v24 = vadd.f32 %v2377_v28, %v2300_v6  ;;  %2487 = vmatprep.mubr.f32.mxu0 %v2381_v11  ;;  %v2621_v6 = vld [vmem:[#allocation40 + $0x18] sm:$0xff] }
 0xcf3   :  { %2488 = vmatmul.mubr.f32.vlgmr.msra.gmra.mrb[22].mxu0 %v2380_v13  ;;  %v2382_v55 = vmax.f32 %v2376_v14, 0.0  ;;  %v6248_v51 = vpack.c.bf16 %v2621_v6, %v2618_v5  ;;  %v3200_v5 = vld [vmem:[%s8625_s26 + $0x8] sm:$0xff]  ;;  %v3290_v6 = vld [vmem:[%s8626_s28] sm:$0xff] }
 0xcf4   :  { %v2383_v15 = vmax.f32 %v2378_v24, 0.0  ;;  %v2810_v24 = vld [vmem:[#allocation8] sm:$0xff] }
 0xcf6   :  { %2492 = vmatprep.mubr.f32.mxu0 %v2383_v15  ;;  %v2911_v15 = vld [vmem:[%s8624_s22] sm:$0xff] }
 0xcf7   :  { %2493 = vmatmul.mubr.f32.gmra.mrb[24].mxu0 %v2382_v55  ;;  %v2912_v55 = vld [vmem:[%s8624_s22 + $0x8] sm:$0xff] }
 0xcf8   :  { %5765 = vmatprep.mubr.msk.f32.mxu0 %vm1172_vm7, %v2614_v38 }
 0xdc6   :  { %v5406_v16 = vpop.f32.mrb[22].mxu0 }
 0xdc7   :  { %v5407_v17 = vpop.f32.mrb[23].mxu0 }
 0xdc8   :  { %v5408_v18 = vadd.f32 %v5407_v17, %v5406_v16  ;;  %v2913_v16 = vld [vmem:[%s8624_s22 + $0x10] sm:$0xff] }
 0xdca   :  { %v2490_v22 = vadd.f32 %v5408_v18, %v5188_v20  ;;  %v5409_v23 = vpop.f32.mrb[24].mxu0 }
 0xdcb   :  { %v5410_v60 = vpop.f32.mrb[25].mxu0 }
 0xdcc   :  { %v5411_v25 = vadd.f32 %v5410_v60, %v5409_v23  ;;  %v2498_v27 = vadd.f32 %v2490_v22, %v8234_v21  ;;  %v2620_v21 = vld [vmem:[#allocation40 + $0x10] sm:$0xff] }
 0xdcd   :  { %v6250_v39 = vpack.c.bf16 %v2623_v37, %v2620_v21 }
 0xdce   :  { %v2495_v29 = vadd.f32 %v5411_v25, %v5188_v20  ;;  %2502 = vadd.xlane.f32.xlu0 %v2498_v27  ;;  %v2914_v20 = vld [vmem:[%s8624_s22 + $0x18] sm:$0xff] }
 0xdcf   :  { %6251 = vmatprep.subr.bf16.mxu0 %v6250_v39 }
 0xdd0   :  { %v2499_v30 = vadd.f32 %v2495_v29, %v8239_v26  ;;  %6253 = vmatpush3.bf16.msra.mxu0 %v6250_v39  ;;  %v2615_v26 = vld [vmem:[%s8623_s20 + $0x8] sm:$0xff]  ;;  %v3114_v39 = vld [vmem:[#allocation11] sm:$0xff] }
 0xdd2   :  { %2504 = vadd.xlane.f32.xlu0 %v2499_v30 }
 0xdd3   :  { %5766 = vmatmul.mubr.msk.f32.vlgmr.msra.gmra.mrb[26].mxu0 %vm1172_vm7, %v2615_v26 }
 0xdd4   :  { %5768 = vmatprep.mubr.msk.f32.mxu0 %vm1172_vm7, %v2616_v40 }
 0xdd7   :  { %5769 = vmatmul.mubr.msk.f32.gmra.mrb[28].mxu0 %vm1172_vm7, %v2617_v41 }
 0xdd8   :  { %5779 = vmatprep.mubr.msk.f32.mxu0 %vm1084_vm5, %v2810_v24  ;;  %v3032_v24 = vld [vmem:[#allocation10 + $0x8] sm:$0xff] }
 0xe5b   :  { %v2503_v31 = vpop.xlane.xlu0 %2502 }
 0xe5c   :  { %v2506_v19 = vmul.f32 0.0078125, %v2503_v31 }
 0xe5e   :  { %v2508_v32 = vsub.f32 %v2498_v27, %v2506_v19 }
 0xe5f   :  { %v2505_v33 = vpop.xlane.xlu0 %2504 }
 0xe60   :  { %v2507_v34 = vmul.f32 0.0078125, %v2505_v33  ;;  %v2510_v7 = vmul.f32 %v2508_v32, %v2508_v32  ;;  %v2811_v33 = vld [vmem:[#allocation8 + $0x8] sm:$0xff] }
 0xe62   :  { %v2509_v35 = vsub.f32 %v2499_v30, %v2507_v34  ;;  %2512 = vadd.xlane.f32.xlu0 %v2510_v7  ;;  %v2812_v34 = vld [vmem:[#allocation8 + $0x10] sm:$0xff]  ;;  %v2813_v7 = vld [vmem:[#allocation8 + $0x18] sm:$0xff] }
 0xe64   :  { %v2511_v36 = vmul.f32 %v2509_v35, %v2509_v35 }
 0xe66   :  { %2514 = vadd.xlane.f32.xlu0 %v2511_v36 }
 0xea6   :  { %v5767_v10 = vpop.f32.mrb[26].mxu0 }
 0xea7   :  { %v2791_v11 = vpop.f32.mrb[27].mxu0 }
 0xea8   :  { %v6262_v12 = vpack.c.bf16 %v5767_v10, %v2791_v11 }
 0xeaa   :  { %v5770_v13 = vpop.f32.mrb[28].mxu0 }
 0xeab   :  { %v2801_v14 = vpop.f32.mrb[29].mxu0 }
 0xeac   :  { %v6266_v28 = vpack.c.bf16 %v5770_v13, %v2801_v14  ;;  %v3202_v13 = vld [vmem:[%s8625_s26 + $0x18] sm:$0xff]  ;;  %v3292_v14 = vld [vmem:[%s8626_s28 + $0x10] sm:$0xff] }
 0xeef   :  { %v2513_v42 = vpop.xlane.xlu0 %2512 }
 0xef0   :  { %v2516_v43 = vmul.f32 0.0078125, %v2513_v42 }
 0xef2   :  { %v2518_v59 = vadd.f32 1e-05, %v2516_v43  ;;  %v5208_v43 = vld [vmem:[#allocation41] ss:$0 sm:$0xff] }
 0xef3   :  { %v2515_v45 = vpop.xlane.xlu0 %2514 }
 0xef4   :  { %6780 = vrsqrt.f32 %v2518_v59  ;;  %v2517_v47 = vmul.f32 0.0078125, %v2515_v45 }
 0xef6   :  { %v2519_v48 = vadd.f32 1e-05, %v2517_v47 }
 0xef8   :  { %6782 = vrsqrt.f32 %v2519_v48 }
 0xefe   :  { %v6781_v50 = vpop.eup %6780 }
 0xeff   :  { %v2522_v52 = vmul.f32 %v6781_v50, %v2508_v32 }
 0xf01   :  { %v2530_v57 = vmul.f32 %v5189_v53, %v2522_v52 }
 0xf02   :  { %v6783_v54 = vpop.eup %6782 }
 0xf03   :  { %v2523_v56 = vmul.f32 %v6783_v54, %v2509_v35  ;;  %v2538_v2 = vadd.f32 %v5190_v58, %v2530_v57 }
 0xf05   :  { %v2531_v61 = vmul.f32 %v5189_v53, %v2523_v56 }
 0xf07   :  { %v2539_v3 = vadd.f32 %v5190_v58, %v2531_v61 }
 0xf09   :  { %v6244_v8 = vpack.c.bf16 %v2539_v3, %v2538_v2  ;;  %v3199_v3 = vld [vmem:[%s8625_s26] sm:$0xff] }
 0xf0a   :  { %v6286_v10 = vpack.c.bf16 %v3200_v5, %v3199_v3  ;;  %v3386_v5 = vld [vmem:[%s8627_s23 + $0x18] sm:$0xff] }
 0xf0b   :  { %6245 = vmatpush3.bf16.msra.mxu1 %v6244_v8  ;;  %v3291_v8 = vld [vmem:[%s8626_s28 + $0x8] sm:$0xff] }
 0xf0c   :  { %6247 = vmatprep.subr.bf16.mxu1 %v6246_v4  ;;  %v6318_v11 = vpack.c.bf16 %v3291_v8, %v3290_v6  ;;  %v3390_v6 = vld [vmem:[%s8627_s23 + $0x38] sm:$0xff] }
 0xf0e   :  { %5759 = vmatmul.mubr.msk.f32.vlgmr.msra.gmra.mrb[12].mxu1 %vm1172_vm7, %v2540_v9 }
 0xf0f   :  { %6249 = vmatpush1.bf16.msra.mxu1 %v6248_v51  ;;  %2700 = vmatprep.mubr.f32.mxu1 %v7607_v1 }
 0xf10   :  { %6263 = vmatprep.subr.bf16.mxu1 %v6262_v12 }
 0xf12   :  { %5192 = vmatmul.mubr.msk.f32.vlgmr.msra.gmra.mrb[14].mxu1 %vm1172_vm7, %v2614_v38  ;;  %v3031_v38 = vld [vmem:[#allocation10] sm:$0xff] }
 0xf13   :  { %2706 = vmatprep.mubr.f32.mxu1 %v7607_v1  ;;  %6265 = vmatpush3.bf16.msra.mxu1 %v6262_v12  ;;  %v3201_v12 = vld [vmem:[%s8625_s26 + $0x10] sm:$0xff] }
 0xf14   :  { %6267 = vmatprep.subr.bf16.mxu1 %v6266_v28 }
 0xf16   :  { %5193 = vmatmul.mubr.msk.f32.gmra.mrb[16].mxu1 %vm1172_vm7, %v2615_v26 }
 0xf17   :  { %2712 = vmatprep.mubr.f32.mxu1 %v7607_v1  ;;  %6269 = vmatpush3.bf16.msra.mxu1 %v6266_v28  ;;  %v3293_v28 = vld [vmem:[%s8626_s28 + $0x18] sm:$0xff] }
 0xf1a   :  { %5194 = vmatmul.mubr.msk.f32.gmra.mrb[18].mxu1 %vm1172_vm7, %v2616_v40 }
 0xf1b   :  { %2718 = vmatprep.mubr.f32.mxu1 %v7607_v1 }
 0xf1e   :  { %5195 = vmatmul.mubr.msk.f32.gmra.mrb[20].mxu1 %vm1172_vm7, %v2617_v41 }
 0xf1f   :  { %5793 = vmatprep.mubr.msk.f32.mxu1 %vm1084_vm5, %v2911_v15  ;;  %v3115_v15 = vld [vmem:[#allocation11 + $0x8] sm:$0xff] }
 0xf22   :  { %5794 = vmatmul.mubr.msk.f32.vlgmr.msra.gmra.mrb[22].mxu1 %vm1084_vm5, %v2912_v55  ;;  %v6290_v55 = vpack.c.bf16 %v3202_v13, %v3201_v12 }
 0xf23   :  { %5796 = vmatprep.mubr.msk.f32.mxu1 %vm1084_vm5, %v2913_v16  ;;  %v6322_v16 = vpack.c.bf16 %v3293_v28, %v3292_v14 }
 0xf26   :  { %5797 = vmatmul.mubr.msk.f32.gmra.mrb[24].mxu1 %vm1084_vm5, %v2914_v20  ;;  %v3203_v20 = vld [vmem:[%s8625_s26 + $0x20] sm:$0xff] }
 0xf27   :  { %5818 = vmatprep.mubr.msk.f32.mxu1 %vm1084_vm5, %v3114_v39  ;;  %v3300_v39 = vld [vmem:[%s8626_s28 + $0x50] sm:$0xff] }
 0xfe1   :  { %v8272_v17 = vpop.f32.mrb[12].mxu1 }
 0xfe2   :  { %v5760_v18 = vpop.f32.mrb[13].mxu1 }
 0xfe3   :  { %v3204_v18 = vld [vmem:[%s8625_s26 + $0x28] sm:$0xff] }
 0xfe5   :  { %v2702_v22 = vpop.f32.mrb[14].mxu1 }
 0xfe6   :  { %v2704_v23 = vpop.f32.mrb[15].mxu1 }
 0xfe9   :  { %v2708_v60 = vpop.f32.mrb[16].mxu1 }
 0xfea   :  { %v6254_v25 = vpack.c.bf16 %v2708_v60, %v2702_v22  ;;  %v2710_v27 = vpop.f32.mrb[17].mxu1  ;;  %v3294_v22 = vld [vmem:[%s8626_s28 + $0x20] sm:$0xff]  ;;  %v6294_v60 = vpack.c.bf16 %v3204_v18, %v3203_v20  ;;  %v3396_v18 = vld [vmem:[%s8627_s23 + $0x68] sm:$0xff] }
 0xfec   :  { %6255 = vmatprep.subr.bf16.mxu0 %v6254_v25 }
 0xfed   :  { %v2714_v29 = vpop.f32.mrb[18].mxu1  ;;  %6257 = vmatpush3.bf16.msra.mxu0 %v6254_v25 }
 0xfee   :  { %v2716_v30 = vpop.f32.mrb[19].mxu1 }
 0xff1   :  { %v2720_v31 = vpop.f32.mrb[20].mxu1 }
 0xff2   :  { %v6258_v19 = vpack.c.bf16 %v2720_v31, %v2714_v29  ;;  %v2722_v32 = vpop.f32.mrb[21].mxu1  ;;  %v3206_v29 = vld [vmem:[%s8625_s26 + $0x38] sm:$0xff] }
 0xff3   :  { %v3297_v31 = vld [vmem:[%s8626_s28 + $0x38] sm:$0xff] }
 0xff4   :  { %6259 = vmatprep.subr.bf16.mxu0 %v6258_v19 }
 0xff5   :  { %6261 = vmatpush3.bf16.msra.mxu0 %v6258_v19  ;;  %v5795_v35 = vpop.f32.mrb[22].mxu1 }
 0xff6   :  { %v2993_v36 = vpop.f32.mrb[23].mxu1 }
 0xff8   :  { %5780 = vmatmul.mubr.msk.f32.vlgmr.msra.gmra.mrb[30].mxu0 %vm1084_vm5, %v2811_v33  ;;  %v3207_v33 = vld [vmem:[%s8625_s26 + $0x40] sm:$0xff] }
 0xff9   :  { %5782 = vmatprep.mubr.msk.f32.mxu0 %vm1084_vm5, %v2812_v34  ;;  %v5798_v21 = vpop.f32.mrb[24].mxu1  ;;  %v3208_v34 = vld [vmem:[%s8625_s26 + $0x48] sm:$0xff] }
 0xffa   :  { %v3003_v37 = vpop.f32.mrb[25].mxu1 }
 0xffc   :  { %5783 = vmatmul.mubr.msk.f32.gmra.mrb[32].mxu0 %vm1084_vm5, %v2813_v7  ;;  %v3298_v7 = vld [vmem:[%s8626_s28 + $0x40] sm:$0xff] }
 0xffd   :  { %5807 = vmatprep.mubr.msk.f32.mxu0 %vm1084_vm5, %v3031_v38  ;;  %v3210_v38 = vld [vmem:[%s8625_s26 + $0x58] sm:$0xff] }
0x10cb   :  { %v5781_v26 = vpop.f32.mrb[30].mxu0 }
0x10cc   :  { %v2898_v40 = vadd.f32 %v5781_v26, %v2710_v27  ;;  %v2892_v41 = vpop.f32.mrb[31].mxu0  ;;  %v3205_v27 = vld [vmem:[%s8625_s26 + $0x30] sm:$0xff]  ;;  %v3301_v26 = vld [vmem:[%s8626_s28 + $0x58] sm:$0xff] }
0x10cd   :  { %v2893_v42 = vadd.f32 %v2892_v41, %v2704_v23  ;;  %v3295_v23 = vld [vmem:[%s8626_s28 + $0x28] sm:$0xff]  ;;  %v6298_v19 = vpack.c.bf16 %v3206_v29, %v3205_v27  ;;  %v6338_v41 = vpack.c.bf16 %v3301_v26, %v3300_v39  ;;  %v3395_v29 = vld [vmem:[%s8627_s23 + $0x60] sm:$0xff] }
0x10ce   :  { %v3013_v59 = vadd.f32 %v5795_v35, %v2898_v40  ;;  %v6326_v25 = vpack.c.bf16 %v3295_v23, %v3294_v22  ;;  %v3299_v35 = vld [vmem:[%s8626_s28 + $0x48] sm:$0xff]  ;;  %v3399_v22 = vld [vmem:[%s8627_s23 + $0x80] sm:$0xff]  ;;  %v3397_v23 = vld [vmem:[%s8627_s23 + $0x70] sm:$0xff] }
0x10cf   :  { %v3012_v45 = vadd.f32 %v2993_v36, %v2893_v42  ;;  %v5784_v47 = vpop.f32.mrb[32].mxu0  ;;  %v6302_v36 = vpack.c.bf16 %v3208_v34, %v3207_v33  ;;  %v3211_v42 = vld [vmem:[%s8625_s26 + $0x60] sm:$0xff]  ;;  %v6358_v27 = vpack.c.bf16 %v3399_v22, %v3396_v18  ;;  %v3405_v33 = vld [vmem:[%s8627_s23 + $0xb0] sm:$0xff] }
0x10d0   :  { %v3024_v48 = vadd.f32 %v5208_v43, %v3013_v59  ;;  %v2908_v50 = vadd.f32 %v5784_v47, %v2722_v32  ;;  %v2902_v52 = vpop.f32.mrb[33].mxu0  ;;  %v3302_v59 = vld [vmem:[%s8626_s28 + $0x60] sm:$0xff]  ;;  %v3895_v22 = vld [vmem:[%s8629_s2 + $0x10] sm:$0xff] }
0x10d1   :  { %v3023_v53 = vadd.f32 %v5208_v43, %v3012_v45  ;;  %v2903_v54 = vadd.f32 %v2902_v52, %v2716_v30  ;;  %v3296_v30 = vld [vmem:[%s8626_s28 + $0x30] sm:$0xff]  ;;  %v3303_v45 = vld [vmem:[%s8626_s28 + $0x68] sm:$0xff]  ;;  %v3214_v52 = vld [vmem:[%s8625_s26 + $0x78] sm:$0xff] }
0x10d2   :  { %v3028_v56 = vmax.f32 %v3024_v48, 0.0  ;;  %v3015_v57 = vadd.f32 %v5798_v21, %v2908_v50  ;;  %v6330_v32 = vpack.c.bf16 %v3297_v31, %v3296_v30  ;;  %v6334_v21 = vpack.c.bf16 %v3299_v35, %v3298_v7  ;;  %v3213_v50 = vld [vmem:[%s8625_s26 + $0x70] sm:$0xff]  ;;  %v3398_v30 = vld [vmem:[%s8627_s23 + $0x78] sm:$0xff]  ;;  %v3404_v35 = vld [vmem:[%s8627_s23 + $0xa8] sm:$0xff] }
0x10d3   :  { %v3027_v58 = vmax.f32 %v3023_v53, 0.0  ;;  %v3014_v61 = vadd.f32 %v3003_v37, %v2903_v54  ;;  %v3209_v37 = vld [vmem:[%s8625_s26 + $0x50] sm:$0xff]  ;;  %v6342_v48 = vpack.c.bf16 %v3303_v45, %v3302_v59  ;;  %v6314_v54 = vpack.c.bf16 %v3214_v52, %v3213_v50  ;;  %v3565_v59 = vld [vmem:[#allocation13] sm:$0xff] }
0x10d4   :  { %v3026_v62 = vadd.f32 %v5208_v43, %v3015_v57  ;;  %v6306_v40 = vpack.c.bf16 %v3210_v38, %v3209_v37  ;;  %v3304_v53 = vld [vmem:[%s8626_s28 + $0x70] sm:$0xff]  ;;  %v3406_v37 = vld [vmem:[%s8627_s23 + $0xb8] sm:$0xff]  ;;  %v3648_v45 = vld [vmem:[%s8628_s1] sm:$0xff] }
0x10d5   :  { %v6270_v63 = vpack.c.bf16 %v3028_v56, %v3027_v58  ;;  %v3025_v2 = vadd.f32 %v5208_v43, %v3014_v61  ;;  %v3212_v43 = vld [vmem:[%s8625_s26 + $0x68] sm:$0xff]  ;;  %v3305_v56 = vld [vmem:[%s8626_s28 + $0x78] sm:$0xff]  ;;  %v3387_v61 = vld [vmem:[%s8627_s23 + $0x20] sm:$0xff] }
0x10d6   :  { %v3030_v4 = vmax.f32 %v3026_v62, 0.0  ;;  %v6310_v47 = vpack.c.bf16 %v3212_v43, %v3211_v42  ;;  %v6346_v57 = vpack.c.bf16 %v3305_v56, %v3304_v53  ;;  %v3384_v58 = vld [vmem:[%s8627_s23 + $0x8] sm:$0xff]  ;;  %v3401_v7 = vld [vmem:[%s8627_s23 + $0x90] sm:$0xff] }
0x10d7   :  { %v3029_v9 = vmax.f32 %v3025_v2, 0.0  ;;  %6271 = vmatprep.subr.bf16.mxu0 %v6270_v63  ;;  %6279 = vmatprep.subr.bf16.mxu1 %v6270_v63  ;;  %v6350_v62 = vpack.c.bf16 %v3387_v61, %v3384_v58  ;;  %v3388_v2 = vld [vmem:[%s8627_s23 + $0x28] sm:$0xff] }
0x10d8   :  { %6273 = vmatpush3.bf16.msra.mxu0 %v6270_v63  ;;  %6281 = vmatpush3.bf16.msra.mxu1 %v6270_v63  ;;  %v3385_v63 = vld [vmem:[%s8627_s23 + $0x10] sm:$0xff]  ;;  %v3649_v58 = vld [vmem:[%s8628_s1 + $0x8] sm:$0xff] }
0x10d9   :  { %v6274_v51 = vpack.c.bf16 %v3030_v4, %v3029_v9  ;;  %v6366_v3 = vpack.c.bf16 %v3388_v2, %v3385_v63  ;;  %v3383_v4 = vld [vmem:[%s8627_s23] sm:$0xff]  ;;  %v3566_v61 = vld [vmem:[#allocation13 + $0x8] sm:$0xff] }
0x10db   :  { %6275 = vmatprep.subr.bf16.mxu0 %v6274_v51  ;;  %6283 = vmatprep.subr.bf16.mxu1 %v6274_v51 }
0x10dc   :  { %6277 = vmatpush3.bf16.msra.mxu0 %v6274_v51  ;;  %6285 = vmatpush3.bf16.msra.mxu1 %v6274_v51  ;;  %v3393_v51 = vld [vmem:[%s8627_s23 + $0x50] sm:$0xff] }
0x10dd   :  { %6287 = vmatprep.subr.bf16.mxu0 %v6286_v10  ;;  %6319 = vmatprep.subr.bf16.mxu1 %v6318_v11 }
0x10df   :  { %5808 = vmatmul.mubr.msk.f32.vlgmr.msra.gmra.mrb[34].mxu0 %vm1084_vm5, %v3032_v24  ;;  %5819 = vmatmul.mubr.msk.f32.vlgmr.msra.gmra.mrb[26].mxu1 %vm1084_vm5, %v3115_v15  ;;  %v6352_v24 = vpack.c.bf16 %v3386_v5, %v3383_v4  ;;  %v6354_v15 = vpack.c.bf16 %v3393_v51, %v3390_v6  ;;  %v5221_v6 = vld [vmem:[#allocation43] ss:$0 sm:$0xff] }
0x10e0   :  { %6289 = vmatpush3.bf16.msra.mxu0 %v6286_v10  ;;  %6321 = vmatpush3.bf16.msra.mxu1 %v6318_v11  ;;  %v3391_v10 = vld [vmem:[%s8627_s23 + $0x40] sm:$0xff]  ;;  %v3394_v11 = vld [vmem:[%s8627_s23 + $0x58] sm:$0xff] }
0x10e1   :  { %6291 = vmatprep.subr.bf16.mxu0 %v6290_v55  ;;  %6323 = vmatprep.subr.bf16.mxu1 %v6322_v16  ;;  %v6370_v20 = vpack.c.bf16 %v3394_v11, %v3391_v10 }
0x10e4   :  { %6293 = vmatpush3.bf16.msra.mxu0 %v6290_v55  ;;  %6325 = vmatpush3.bf16.msra.mxu1 %v6322_v16  ;;  %v3389_v55 = vld [vmem:[%s8627_s23 + $0x30] sm:$0xff]  ;;  %v3392_v16 = vld [vmem:[%s8627_s23 + $0x48] sm:$0xff] }
0x10e5   :  { %6295 = vmatprep.subr.bf16.mxu0 %v6294_v60  ;;  %6327 = vmatprep.subr.bf16.mxu1 %v6326_v25 }
0x10e8   :  { %6297 = vmatpush3.bf16.msra.mxu0 %v6294_v60  ;;  %6329 = vmatpush3.bf16.msra.mxu1 %v6326_v25  ;;  %v3400_v60 = vld [vmem:[%s8627_s23 + $0x88] sm:$0xff]  ;;  %v6356_v25 = vpack.c.bf16 %v3392_v16, %v3389_v55  ;;  %v3744_v55 = vld [vmem:[%s8631_s17] sm:$0xff] }
0x10e9   :  { %6299 = vmatprep.subr.bf16.mxu0 %v6298_v19  ;;  %6331 = vmatprep.subr.bf16.mxu1 %v6330_v32  ;;  %v6374_v31 = vpack.c.bf16 %v3400_v60, %v3397_v23  ;;  %v3818_v16 = vld [vmem:[%s8632_s7] sm:$0xff]  ;;  %v3896_v23 = vld [vmem:[%s8629_s2 + $0x18] sm:$0xff]  ;;  %v3981_v60 = vld [vmem:[%s8630_s12 + $0x10] sm:$0xff] }
0x10ec   :  { %6301 = vmatpush3.bf16.msra.mxu0 %v6298_v19  ;;  %6333 = vmatpush3.bf16.msra.mxu1 %v6330_v32  ;;  %v6360_v19 = vpack.c.bf16 %v3398_v30, %v3395_v29  ;;  %v3402_v32 = vld [vmem:[%s8627_s23 + $0x98] sm:$0xff]  ;;  %v3897_v30 = vld [vmem:[%s8629_s2 + $0x20] sm:$0xff] }
0x10ed   :  { %6303 = vmatprep.subr.bf16.mxu0 %v6302_v36  ;;  %6335 = vmatprep.subr.bf16.mxu1 %v6334_v21  ;;  %v6362_v34 = vpack.c.bf16 %v3405_v33, %v3402_v32  ;;  %v3984_v32 = vld [vmem:[%s8630_s12 + $0x28] sm:$0xff] }
0x10f0   :  { %6305 = vmatpush3.bf16.msra.mxu0 %v6302_v36  ;;  %6337 = vmatpush3.bf16.msra.mxu1 %v6334_v21  ;;  %v3403_v36 = vld [vmem:[%s8627_s23 + $0xa0] sm:$0xff]  ;;  %v6364_v21 = vpack.c.bf16 %v3404_v35, %v3401_v7  ;;  %v3899_v7 = vld [vmem:[%s8629_s2 + $0x30] sm:$0xff]  ;;  %v3900_v35 = vld [vmem:[%s8629_s2 + $0x38] sm:$0xff] }
0x10f1   :  { %6307 = vmatprep.subr.bf16.mxu0 %v6306_v40  ;;  %6339 = vmatprep.subr.bf16.mxu1 %v6338_v41  ;;  %v6378_v38 = vpack.c.bf16 %v3406_v37, %v3403_v36  ;;  %v3985_v36 = vld [vmem:[%s8630_s12 + $0x30] sm:$0xff]  ;;  %v6406_v37 = vpack.c.bf16 %v3900_v35, %v3899_v7 }
0x10f2   :  { %v4117_v7 = vld [vmem:[#allocation46 + $0x98] sm:$0xff] }
0x10f4   :  { %6309 = vmatpush3.bf16.msra.mxu0 %v6306_v40  ;;  %6341 = vmatpush3.bf16.msra.mxu1 %v6338_v41 }
0x10f5   :  { %6311 = vmatprep.subr.bf16.mxu0 %v6310_v47  ;;  %6343 = vmatprep.subr.bf16.mxu1 %v6342_v48 }
0x10f8   :  { %6313 = vmatpush3.bf16.msra.mxu0 %v6310_v47  ;;  %6345 = vmatpush3.bf16.msra.mxu1 %v6342_v48 }
0x10f9   :  { %6315 = vmatprep.subr.bf16.mxu0 %v6314_v54  ;;  %6347 = vmatprep.subr.bf16.mxu1 %v6346_v57 }
0x10fc   :  { %6317 = vmatpush3.bf16.msra.mxu0 %v6314_v54  ;;  %6349 = vmatpush3.bf16.msra.mxu1 %v6346_v57 }
0x10fd   :  { %6351 = vmatprep.subr.bf16.mxu0 %v6350_v62  ;;  %6367 = vmatprep.subr.bf16.mxu1 %v6366_v3 }
0x11b2   :  { %v5809_v8 = vpop.f32.mrb[34].mxu0  ;;  %v5820_v9 = vpop.f32.mrb[26].mxu1 }
0x11b3   :  { %v3198_v12 = vmax.f32 %v5809_v8, %v5820_v9  ;;  %v3105_v13 = vpop.f32.mrb[35].mxu0  ;;  %v3188_v14 = vpop.f32.mrb[27].mxu1 }
0x11b4   :  { %v3197_v28 = vmax.f32 %v3105_v13, %v3188_v14  ;;  %v3893_v13 = vld [vmem:[%s8629_s2] sm:$0xff]  ;;  %v3894_v14 = vld [vmem:[%s8629_s2 + $0x8] sm:$0xff] }
0x11b6   :  { %5853 = vmatprep.mubr.f32.mxu0 %v3197_v28  ;;  %5888 = vmatprep.mubr.f32.mxu1 %v3197_v28  ;;  %v3979_v28 = vld [vmem:[%s8630_s12] sm:$0xff] }
0x11b7   :  { %5854 = vmatmul.mubr.f32.vlgmr.msra.gmra.mrb[36].mxu0 %v3198_v12  ;;  %5889 = vmatmul.mubr.f32.vlgmr.msra.gmra.mrb[28].mxu1 %v3198_v12 }
0x11b8   :  { %6353 = vmatpush1.bf16.msra.mxu0 %v6352_v24  ;;  %6369 = vmatpush3.bf16.msra.mxu1 %v6366_v3  ;;  %v3980_v24 = vld [vmem:[%s8630_s12 + $0x8] sm:$0xff] }
0x11b9   :  { %6355 = vmatprep.subr.bf16.mxu0 %v6354_v15  ;;  %6371 = vmatprep.subr.bf16.mxu1 %v6370_v20  ;;  %v6421_v18 = vpack.c.bf16 %v3980_v24, %v3979_v28 }
0x11ba   :  { %3477 = vmatprep.mubr.f32.mxu0 %v7607_v1 }
0x11bc   :  { %6357 = vmatpush1.bf16.msra.mxu0 %v6356_v25  ;;  %6373 = vmatpush3.bf16.msra.mxu1 %v6370_v20  ;;  %v6397_v20 = vpack.c.bf16 %v3894_v14, %v3893_v13  ;;  %v3982_v25 = vld [vmem:[%s8630_s12 + $0x18] sm:$0xff] }
0x11bd   :  { %6359 = vmatprep.subr.bf16.mxu0 %v6358_v27  ;;  %6375 = vmatprep.subr.bf16.mxu1 %v6374_v31  ;;  %v6400_v27 = vpack.c.bf16 %v3896_v23, %v3895_v22  ;;  %v6424_v29 = vpack.c.bf16 %v3982_v25, %v3981_v60  ;;  %v4109_v22 = vld [vmem:[#allocation46 + $0x58] sm:$0xff]  ;;  %v4106_v25 = vld [vmem:[#allocation46 + $0x40] sm:$0xff] }
0x11c0   :  { %6361 = vmatpush1.bf16.msra.mxu0 %v6360_v19  ;;  %6377 = vmatpush3.bf16.msra.mxu1 %v6374_v31  ;;  %v3898_v31 = vld [vmem:[%s8629_s2 + $0x28] sm:$0xff]  ;;  %v3983_v19 = vld [vmem:[%s8630_s12 + $0x20] sm:$0xff] }
0x11c1   :  { %6363 = vmatprep.subr.bf16.mxu0 %v6362_v34  ;;  %6379 = vmatprep.subr.bf16.mxu1 %v6378_v38  ;;  %v6403_v33 = vpack.c.bf16 %v3898_v31, %v3897_v30  ;;  %v6427_v34 = vpack.c.bf16 %v3984_v32, %v3983_v19  ;;  %v4113_v30 = vld [vmem:[#allocation46 + $0x78] sm:$0xff]  ;;  %v4110_v32 = vld [vmem:[#allocation46 + $0x60] sm:$0xff] }
0x11c4   :  { %6365 = vmatpush1.bf16.msra.mxu0 %v6364_v21  ;;  %6381 = vmatpush3.bf16.msra.mxu1 %v6378_v38  ;;  %v3986_v21 = vld [vmem:[%s8630_s12 + $0x38] sm:$0xff] }
0x11c5   :  { %v6430_v38 = vpack.c.bf16 %v3986_v21, %v3985_v36  ;;  %v4114_v21 = vld [vmem:[#allocation46 + $0x80] sm:$0xff] }
0x128a   :  { %v5855_v39 = vpop.f32.mrb[36].mxu0  ;;  %v5890_v26 = vpop.f32.mrb[28].mxu1 }
0x128b   :  { %v3382_v40 = vmax.f32 %v5855_v39, %v5890_v26  ;;  %v3281_v41 = vpop.f32.mrb[37].mxu0  ;;  %v3372_v42 = vpop.f32.mrb[29].mxu1  ;;  %v3901_v39 = vld [vmem:[%s8629_s2 + $0x40] sm:$0xff]  ;;  %v3902_v26 = vld [vmem:[%s8629_s2 + $0x48] sm:$0xff] }
0x128c   :  { %v3381_v43 = vmax.f32 %v3281_v41, %v3372_v42  ;;  %v3988_v41 = vld [vmem:[%s8630_s12 + $0x48] sm:$0xff]  ;;  %v6409_v42 = vpack.c.bf16 %v3902_v26, %v3901_v39  ;;  %v4121_v39 = vld [vmem:[#allocation46 + $0xb8] sm:$0xff] }
0x128e   :  { %5213 = vmatmul.mubr.msk.f32.vlgmr.msra.gmra.mrb[38].mxu0 %vm681_vm4, %v3381_v43  ;;  %5907 = vmatprep.mubr.msk.f32.mxu1 %vm681_vm4, %v3381_v43 }
0x128f   :  { %5908 = vmatmul.mubr.msk.f32.vlgmr.msra.gmra.mrb[30].mxu1 %vm681_vm4, %v3382_v40  ;;  %3483 = vmatprep.mubr.f32.mxu0 %v7607_v1 }
0x1290   :  { %5914 = vmatprep.mubr.msk.f32.mxu1 %vm1172_vm7, %v3565_v59  ;;  %v3903_v59 = vld [vmem:[%s8629_s2 + $0x50] sm:$0xff] }
0x1292   :  { %5214 = vmatmul.mubr.msk.f32.gmra.mrb[40].mxu0 %vm681_vm4, %v3382_v40  ;;  %v3987_v40 = vld [vmem:[%s8630_s12 + $0x40] sm:$0xff] }
0x1293   :  { %5921 = vmatprep.mubr.msk.f32.mxu0 %vm1172_vm7, %v3648_v45  ;;  %v6433_v43 = vpack.c.bf16 %v3988_v41, %v3987_v40  ;;  %v3904_v45 = vld [vmem:[%s8629_s2 + $0x58] sm:$0xff] }
0x1294   :  { %v4118_v41 = vld [vmem:[#allocation46 + $0xa0] sm:$0xff] }
0x1361   :  { %v3479_v47 = vpop.f32.mrb[38].mxu0 }
0x1362   :  { %v3481_v48 = vpop.f32.mrb[39].mxu0  ;;  %v5909_v50 = vpop.f32.mrb[30].mxu1 }
0x1363   :  { %v3556_v52 = vpop.f32.mrb[31].mxu1 }
0x1364   :  { %v6386_v53 = vpack.c.bf16 %v5909_v50, %v3556_v52  ;;  %v6412_v50 = vpack.c.bf16 %v3904_v45, %v3903_v59  ;;  %v4125_v59 = vld [vmem:[#allocation46 + $0xd8] sm:$0xff] }
0x1365   :  { %v3485_v54 = vpop.f32.mrb[40].mxu0 }
0x1366   :  { %v6382_v56 = vpack.c.bf16 %v3485_v54, %v3479_v47  ;;  %v3487_v57 = vpop.f32.mrb[41].mxu0  ;;  %6387 = vmatprep.subr.bf16.mxu0 %v6386_v53  ;;  %v3989_v47 = vld [vmem:[%s8630_s12 + $0x50] sm:$0xff]  ;;  %v3906_v54 = vld [vmem:[%s8629_s2 + $0x68] sm:$0xff] }
0x1367   :  { %6389 = vmatpush3.bf16.msra.mxu0 %v6386_v53  ;;  %v3905_v53 = vld [vmem:[%s8629_s2 + $0x60] sm:$0xff] }
0x1368   :  { %6383 = vmatprep.subr.bf16.mxu1 %v6382_v56  ;;  %6393 = vmatprep.subr.bf16.mxu0 %v7605_v0 }
0x1369   :  { %6385 = vmatpush3.bf16.msra.mxu1 %v6382_v56  ;;  %v3991_v56 = vld [vmem:[%s8630_s12 + $0x60] sm:$0xff] }
0x136a   :  { %5922 = vmatmul.mubr.msk.f32.vlgmr.msra.gmra.mrb[42].mxu0 %vm1172_vm7, %v3649_v58  ;;  %6390 = vmatprep.subr.bf16.mxu1 %v7605_v0  ;;  %v6415_v58 = vpack.c.bf16 %v3906_v54, %v3905_v53  ;;  %v4129_v53 = vld [vmem:[#allocation46 + $0xf8] sm:$0xff] }
0x136b   :  { %5935 = vmatprep.mubr.msk.f32.mxu0 %vm7606_vm0, %v7607_v1 }
0x136c   :  { %5915 = vmatmul.mubr.msk.f32.vlgmr.msra.gmra.mrb[32].mxu1 %vm1172_vm7, %v3566_v61 }
0x136d   :  { %5928 = vmatprep.mubr.msk.f32.mxu1 %vm7606_vm0, %v7607_v1 }
0x143d   :  { %v5923_v62 = vpop.f32.mrb[42].mxu0 }
0x143e   :  { %v3722_v63 = vpop.f32.mrb[43].mxu0 }
0x143f   :  { %v5916_v2 = vpop.f32.mrb[32].mxu1 }
0x1440   :  { %v3645_v3 = vadd.f32 %v5916_v2, %v3487_v57  ;;  %v3639_v4 = vpop.f32.mrb[33].mxu1  ;;  %v3992_v57 = vld [vmem:[%s8630_s12 + $0x68] sm:$0xff] }
0x1441   :  { %v3640_v5 = vadd.f32 %v3639_v4, %v3481_v48  ;;  %v3990_v48 = vld [vmem:[%s8630_s12 + $0x58] sm:$0xff]  ;;  %v6439_v61 = vpack.c.bf16 %v3992_v57, %v3991_v56 }
0x1442   :  { %v3732_v8 = vadd.f32 %v5923_v62, %v3645_v3  ;;  %v6436_v52 = vpack.c.bf16 %v3990_v48, %v3989_v47  ;;  %v3907_v62 = vld [vmem:[%s8629_s2 + $0x70] sm:$0xff]  ;;  %v3994_v4 = vld [vmem:[%s8630_s12 + $0x78] sm:$0xff] }
0x1443   :  { %v3731_v9 = vadd.f32 %v3722_v63, %v3640_v5  ;;  %v3908_v63 = vld [vmem:[%s8629_s2 + $0x78] sm:$0xff]  ;;  %v3993_v3 = vld [vmem:[%s8630_s12 + $0x70] sm:$0xff] }
0x1444   :  { %v3741_v51 = vadd.f32 %v5221_v6, %v3732_v8  ;;  %v6418_v2 = vpack.c.bf16 %v3908_v63, %v3907_v62  ;;  %v6442_v5 = vpack.c.bf16 %v3994_v4, %v3993_v3  ;;  %v4101_v8 = vld [vmem:[#allocation46 + $0x18] sm:$0xff]  ;;  %v4122_v48 = vld [vmem:[#allocation46 + $0xc0] sm:$0xff]  ;;  %v4068_v4 = vld [vmem:[#allocation44 + $0x10] sm:$0xff] }
0x1445   :  { %v3740_v10 = vadd.f32 %v5221_v6, %v3731_v9  ;;  %v4099_v6 = vld [vmem:[#allocation46 + $0x8] sm:$0xff]  ;;  %v4126_v57 = vld [vmem:[#allocation46 + $0xe0] sm:$0xff]  ;;  %v4069_v62 = vld [vmem:[#allocation44 + $0x18] sm:$0xff] }
0x1446   :  { %v3743_v11 = vmax.f32 %v3741_v51, 0.0  ;;  %v6444_v9 = vpack.c.bf16 %v4101_v8, %v4099_v6  ;;  %v4098_v51 = vld [vmem:[#allocation46] sm:$0xff]  ;;  %v4073_v6 = vld [vmem:[#allocation44 + $0x38] sm:$0xff] }
0x1447   :  { %v3742_v12 = vmax.f32 %v3740_v10, 0.0  ;;  %v4100_v10 = vld [vmem:[#allocation46 + $0x10] sm:$0xff]  ;;  %v4066_v3 = vld [vmem:[#allocation44] sm:$0xff] }
0x1448   :  { %v6446_v28 = vpack.c.bf16 %v4100_v10, %v4098_v51  ;;  %v6478_v8 = vpack.c.bf16 %v4068_v4, %v4066_v3  ;;  %v4070_v51 = vld [vmem:[#allocation44 + $0x20] sm:$0xff]  ;;  %v4072_v10 = vld [vmem:[#allocation44 + $0x30] sm:$0xff] }
0x1449   :  { %v6391_v15 = vpack.c.bf16 %v3743_v11, %v3742_v12  ;;  %v4103_v11 = vld [vmem:[#allocation46 + $0x28] sm:$0xff]  ;;  %v4105_v12 = vld [vmem:[#allocation46 + $0x38] sm:$0xff] }
0x144b   :  { %6392 = vmatpush3.bf16.msra.mxu1 %v6391_v15  ;;  %6395 = vmatpush3.bf16.msra.mxu0 %v6391_v15 }
0x144c   :  { %6396 = vmatprep.subr.bf16.mxu1 %v7605_v0  ;;  %6420 = vmatprep.subr.bf16.mxu0 %v7605_v0 }
0x144e   :  { %5929 = vmatmul.mubr.msk.f32.vlgmr.msra.gmra.mrb[34].mxu1 %vm1172_vm7, %v3744_v55  ;;  %5936 = vmatmul.mubr.msk.f32.vlgmr.msra.gmra.mrb[44].mxu0 %vm1172_vm7, %v3818_v16  ;;  %v6448_v55 = vpack.c.bf16 %v4105_v12, %v4103_v11  ;;  %v4102_v16 = vld [vmem:[#allocation46 + $0x20] sm:$0xff]  ;;  %v4075_v11 = vld [vmem:[#allocation44 + $0x48] sm:$0xff]  ;;  %v4077_v12 = vld [vmem:[#allocation44 + $0x58] sm:$0xff] }
0x144f   :  { %6398 = vmatpush3.bf16.msra.mxu1 %v6397_v20  ;;  %6422 = vmatpush3.bf16.msra.mxu0 %v6421_v18  ;;  %v4104_v20 = vld [vmem:[#allocation46 + $0x30] sm:$0xff]  ;;  %v4107_v18 = vld [vmem:[#allocation46 + $0x48] sm:$0xff] }
0x1450   :  { %6399 = vmatprep.subr.bf16.mxu1 %v7605_v0  ;;  %6423 = vmatprep.subr.bf16.mxu0 %v7605_v0  ;;  %v6450_v23 = vpack.c.bf16 %v4104_v20, %v4102_v16  ;;  %v6452_v60 = vpack.c.bf16 %v4109_v22, %v4107_v18  ;;  %v4078_v20 = vld [vmem:[#allocation44 + $0x60] sm:$0xff]  ;;  %v4080_v18 = vld [vmem:[#allocation44 + $0x70] sm:$0xff]  ;;  %v4083_v22 = vld [vmem:[#allocation44 + $0x88] sm:$0xff] }
0x1451   :  { %5970 = vmatprep.mubr.msk.f32.mxu1 %vm7606_vm0, %v7607_v1  ;;  %6005 = vmatprep.mubr.msk.f32.mxu0 %vm7606_vm0, %v7607_v1 }
0x1453   :  { %6401 = vmatpush3.bf16.msra.mxu1 %v6400_v27  ;;  %6425 = vmatpush3.bf16.msra.mxu0 %v6424_v29  ;;  %v4108_v27 = vld [vmem:[#allocation46 + $0x50] sm:$0xff]  ;;  %v4111_v29 = vld [vmem:[#allocation46 + $0x68] sm:$0xff] }
0x1454   :  { %6402 = vmatprep.subr.bf16.mxu1 %v7605_v0  ;;  %6426 = vmatprep.subr.bf16.mxu0 %v7605_v0  ;;  %v6454_v31 = vpack.c.bf16 %v4108_v27, %v4106_v25  ;;  %v6456_v19 = vpack.c.bf16 %v4113_v30, %v4111_v29  ;;  %v4082_v25 = vld [vmem:[#allocation44 + $0x80] sm:$0xff]  ;;  %v4084_v27 = vld [vmem:[#allocation44 + $0x90] sm:$0xff]  ;;  %v4087_v29 = vld [vmem:[#allocation44 + $0xa8] sm:$0xff] }
0x1455   :  { %v4089_v30 = vld [vmem:[#allocation44 + $0xb8] sm:$0xff] }
0x1457   :  { %6404 = vmatpush3.bf16.msra.mxu1 %v6403_v33  ;;  %6428 = vmatpush3.bf16.msra.mxu0 %v6427_v34  ;;  %v4112_v33 = vld [vmem:[#allocation46 + $0x70] sm:$0xff]  ;;  %v4115_v34 = vld [vmem:[#allocation46 + $0x88] sm:$0xff] }
0x1458   :  { %6405 = vmatprep.subr.bf16.mxu1 %v7605_v0  ;;  %6429 = vmatprep.subr.bf16.mxu0 %v7605_v0  ;;  %v6458_v35 = vpack.c.bf16 %v4112_v33, %v4110_v32  ;;  %v6460_v36 = vpack.c.bf16 %v4117_v7, %v4115_v34  ;;  %v4086_v32 = vld [vmem:[#allocation44 + $0xa0] sm:$0xff]  ;;  %v4088_v33 = vld [vmem:[#allocation44 + $0xb0] sm:$0xff]  ;;  %v4091_v34 = vld [vmem:[#allocation44 + $0xc8] sm:$0xff] }
0x1459   :  { %v4093_v7 = vld [vmem:[#allocation44 + $0xd8] sm:$0xff] }
0x145b   :  { %6407 = vmatpush3.bf16.msra.mxu1 %v6406_v37  ;;  %6431 = vmatpush3.bf16.msra.mxu0 %v6430_v38  ;;  %v4116_v37 = vld [vmem:[#allocation46 + $0x90] sm:$0xff]  ;;  %v4119_v38 = vld [vmem:[#allocation46 + $0xa8] sm:$0xff] }
0x145c   :  { %6408 = vmatprep.subr.bf16.mxu1 %v7605_v0  ;;  %6432 = vmatprep.subr.bf16.mxu0 %v7605_v0  ;;  %v6462_v26 = vpack.c.bf16 %v4116_v37, %v4114_v21  ;;  %v6464_v40 = vpack.c.bf16 %v4121_v39, %v4119_v38  ;;  %v4090_v21 = vld [vmem:[#allocation44 + $0xc0] sm:$0xff]  ;;  %v4092_v37 = vld [vmem:[#allocation44 + $0xd0] sm:$0xff]  ;;  %v4095_v38 = vld [vmem:[#allocation44 + $0xe8] sm:$0xff] }
0x145d   :  { %v4097_v39 = vld [vmem:[#allocation44 + $0xf8] sm:$0xff] }
0x145f   :  { %6410 = vmatpush3.bf16.msra.mxu1 %v6409_v42  ;;  %6434 = vmatpush3.bf16.msra.mxu0 %v6433_v43  ;;  %v4120_v42 = vld [vmem:[#allocation46 + $0xb0] sm:$0xff]  ;;  %v4123_v43 = vld [vmem:[#allocation46 + $0xc8] sm:$0xff] }
0x1460   :  { %6411 = vmatprep.subr.bf16.mxu1 %v7605_v0  ;;  %6435 = vmatprep.subr.bf16.mxu0 %v7605_v0  ;;  %v6466_v45 = vpack.c.bf16 %v4120_v42, %v4118_v41  ;;  %v6468_v47 = vpack.c.bf16 %v4125_v59, %v4123_v43  ;;  %v4094_v41 = vld [vmem:[#allocation44 + $0xe0] sm:$0xff]  ;;  %v4096_v42 = vld [vmem:[#allocation44 + $0xf0] sm:$0xff]  ;;  %v5148_v43 = vld [vmem:[#allocation19] ss:$0 sm:$0xff] }
0x1461   :  { %v6506_v59 = vpack.c.bf16 %v4096_v42, %v4094_v41 }
0x1463   :  { %6413 = vmatpush3.bf16.msra.mxu1 %v6412_v50  ;;  %6437 = vmatpush3.bf16.msra.mxu0 %v6436_v52  ;;  %v4124_v50 = vld [vmem:[#allocation46 + $0xd0] sm:$0xff]  ;;  %v4127_v52 = vld [vmem:[#allocation46 + $0xe8] sm:$0xff] }
0x1464   :  { %6414 = vmatprep.subr.bf16.mxu1 %v7605_v0  ;;  %6438 = vmatprep.subr.bf16.mxu0 %v7605_v0  ;;  %v6470_v54 = vpack.c.bf16 %v4124_v50, %v4122_v48  ;;  %v6472_v56 = vpack.c.bf16 %v4129_v53, %v4127_v52  ;;  %v4361_v48 = vld [vmem:[%s8633_s10 + $0x8] sm:$0xff]  ;;  %v4363_v50 = vld [vmem:[%s8633_s10 + $0x18] sm:$0xff]  ;;  %v4360_v52 = vld [vmem:[%s8633_s10] sm:$0xff] }
0x1465   :  { %v6508_v53 = vpack.c.bf16 %v4363_v50, %v4361_v48 }
0x1467   :  { %6416 = vmatpush3.bf16.msra.mxu1 %v6415_v58  ;;  %6440 = vmatpush3.bf16.msra.mxu0 %v6439_v61  ;;  %v4128_v58 = vld [vmem:[#allocation46 + $0xf0] sm:$0xff]  ;;  %v4067_v61 = vld [vmem:[#allocation44 + $0x8] sm:$0xff] }
0x1468   :  { %6417 = vmatprep.subr.bf16.mxu1 %v7605_v0  ;;  %6441 = vmatprep.subr.bf16.mxu0 %v7605_v0  ;;  %v6474_v63 = vpack.c.bf16 %v4128_v58, %v4126_v57 }
0x146b   :  { %6419 = vmatpush3.bf16.msra.mxu1 %v6418_v2  ;;  %6443 = vmatpush3.bf16.msra.mxu0 %v6442_v5  ;;  %v6476_v2 = vpack.c.bf16 %v4069_v62, %v4067_v61  ;;  %v4071_v5 = vld [vmem:[#allocation44 + $0x28] sm:$0xff]  ;;  %v4366_v62 = vld [vmem:[%s8633_s10 + $0x30] sm:$0xff] }
0x146c   :  { %6008 = vmatprep.subr.mxu0 %v7607_v1  ;;  %6445 = vmatprep.subr.bf16.mxu1 %v6444_v9  ;;  %v6480_v9 = vpack.c.bf16 %v4073_v6, %v4071_v5  ;;  %v4364_v61 = vld [vmem:[%s8633_s10 + $0x20] sm:$0xff]  ;;  %v4370_v6 = vld [vmem:[%s8633_s10 + $0x50] sm:$0xff] }
0x146d   :  { %v6514_v3 = vpack.c.bf16 %v4366_v62, %v4364_v61  ;;  %v4368_v5 = vld [vmem:[%s8633_s10 + $0x40] sm:$0xff]  ;;  %v4969_v61 = vld [vmem:[%s7840_s9 + $0x58] sm:$0xff] }
0x146e   :  { %v4986_v62 = vld [vmem:[%s7840_s9 + $0xe0] sm:$0xff] }
0x1521   :  { %v3814_v13 = vpop.f32.mrb[34].mxu1  ;;  %v3888_v14 = vpop.f32.mrb[44].mxu0 }
0x1522   :  { %v3892_v24 = vmax.f32 %v3814_v13, %v3888_v14  ;;  %v5930_v0 = vpop.f32.mrb[35].mxu1  ;;  %v5937_v15 = vpop.f32.mrb[45].mxu0  ;;  %v6482_v13 = vpack.c.bf16 %v4072_v10, %v4070_v51  ;;  %v6484_v14 = vpack.c.bf16 %v4077_v12, %v4075_v11  ;;  %v6518_v51 = vpack.c.bf16 %v4370_v6, %v4368_v5  ;;  %v4372_v11 = vld [vmem:[%s8633_s10 + $0x60] sm:$0xff]  ;;  %v4374_v12 = vld [vmem:[%s8633_s10 + $0x70] sm:$0xff]  ;;  %v5233_v6 = vld [vmem:[%s8633_s10 + $0xa8] sm:$0xff] }
0x1523   :  { %v4079_v0 = vld [vmem:[#allocation44 + $0x68] sm:$0xff]  ;;  %v4081_v15 = vld [vmem:[#allocation44 + $0x78] sm:$0xff] }
0x1524   :  { %5971 = vmatmul.mubr.f32.vlgmr.msra.gmra.mrb[36].mxu1 %v3892_v24  ;;  %6006 = vmatmul.mubr.f32.vlgmr.msra.gmra.mrb[46].mxu0 %v3892_v24  ;;  %v4076_v24 = vld [vmem:[#allocation44 + $0x50] sm:$0xff]  ;;  %v6488_v16 = vpack.c.bf16 %v4081_v15, %v4079_v0 }
0x1525   :  { %6447 = vmatpush1.bf16.msra.mxu1 %v6446_v28  ;;  %4194 = vmatprep.mubr.f32.mxu1 %v7607_v1  ;;  %v4074_v28 = vld [vmem:[#allocation44 + $0x40] sm:$0xff]  ;;  %v5230_v5 = vld [vmem:[%s8633_s10 + $0x90] sm:$0xff] }
0x1526   :  { %6449 = vmatprep.subr.bf16.mxu1 %v6448_v55  ;;  %6010 = vmatprep.mubr.msk.f32.mxu0 %vm7606_vm0, %v7607_v1  ;;  %v6486_v55 = vpack.c.bf16 %v4076_v24, %v4074_v28 }
0x1529   :  { %6451 = vmatpush1.bf16.msra.mxu1 %v6450_v23  ;;  %v4085_v23 = vld [vmem:[#allocation44 + $0x98] sm:$0xff] }
0x152a   :  { %6453 = vmatprep.subr.bf16.mxu1 %v6452_v60  ;;  %v6492_v60 = vpack.c.bf16 %v4085_v23, %v4083_v22  ;;  %v5229_v22 = vld [vmem:[%s8633_s10 + $0x88] sm:$0xff]  ;;  %v5231_v23 = vld [vmem:[%s8633_s10 + $0x98] sm:$0xff] }
0x152d   :  { %6455 = vmatpush1.bf16.msra.mxu1 %v6454_v31  ;;  %v6494_v31 = vpack.c.bf16 %v4084_v27, %v4082_v25  ;;  %v4975_v25 = vld [vmem:[%s7840_s9 + $0x88] sm:$0xff]  ;;  %v4958_v27 = vld [vmem:[%s7840_s9] sm:$0xff] }
0x152e   :  { %6457 = vmatprep.subr.bf16.mxu1 %v6456_v19  ;;  %v6496_v19 = vpack.c.bf16 %v4089_v30, %v4087_v29  ;;  %v4959_v30 = vld [vmem:[%s7840_s9 + $0x8] sm:$0xff] }
0x1531   :  { %6459 = vmatpush1.bf16.msra.mxu1 %v6458_v35  ;;  %v6498_v35 = vpack.c.bf16 %v4088_v33, %v4086_v32  ;;  %v6574_v32 = vpack.c.bf16 %v4959_v30, %v4958_v27  ;;  %v5248_v27 = vld [vmem:[%s8633_s10 + $0x108] sm:$0xff] }
0x1532   :  { %6461 = vmatprep.subr.bf16.mxu1 %v6460_v36  ;;  %v6500_v36 = vpack.c.bf16 %v4093_v7, %v4091_v34  ;;  %v4960_v34 = vld [vmem:[%s7840_s9 + $0x10] sm:$0xff]  ;;  %v4961_v7 = vld [vmem:[%s7840_s9 + $0x18] sm:$0xff] }
0x1535   :  { %6463 = vmatpush1.bf16.msra.mxu1 %v6462_v26  ;;  %v6502_v26 = vpack.c.bf16 %v4092_v37, %v4090_v21  ;;  %v6578_v21 = vpack.c.bf16 %v4961_v7, %v4960_v34  ;;  %v5249_v34 = vld [vmem:[%s8633_s10 + $0x110] sm:$0xff]  ;;  %v5252_v7 = vld [vmem:[%s8633_s10 + $0x128] sm:$0xff] }
0x1536   :  { %6465 = vmatprep.subr.bf16.mxu1 %v6464_v40  ;;  %v6504_v40 = vpack.c.bf16 %v4097_v39, %v4095_v38  ;;  %v4962_v38 = vld [vmem:[%s7840_s9 + $0x20] sm:$0xff]  ;;  %v4963_v39 = vld [vmem:[%s7840_s9 + $0x28] sm:$0xff] }
0x1537   :  { %v6582_v41 = vpack.c.bf16 %v4963_v39, %v4962_v38  ;;  %v5251_v39 = vld [vmem:[%s8633_s10 + $0x120] sm:$0xff] }
0x1539   :  { %6467 = vmatpush1.bf16.msra.mxu1 %v6466_v45  ;;  %v752_v45 = vadd.f32 %v5148_v43, %v8110_v46  ;;  %v4367_v46 = vld [vmem:[%s8633_s10 + $0x38] sm:$0xff]  ;;  %v4964_v43 = vld [vmem:[%s7840_s9 + $0x30] sm:$0xff] }
0x153a   :  { %6469 = vmatprep.subr.bf16.mxu1 %v6468_v47 }
0x153b   :  { %v755_v47 = vmax.f32 %v752_v45, 0.0  ;;  %v4982_v45 = vld [vmem:[%s7840_s9 + $0xc0] sm:$0xff] }
0x153d   :  { %6471 = vmatpush1.bf16.msra.mxu1 %v6470_v54  ;;  %v4362_v54 = vld [vmem:[%s8633_s10 + $0x10] sm:$0xff] }
0x153e   :  { %6473 = vmatprep.subr.bf16.mxu1 %v6472_v56  ;;  %v4365_v56 = vld [vmem:[%s8633_s10 + $0x28] sm:$0xff]  ;;  %v6510_v57 = vpack.c.bf16 %v4362_v54, %v4360_v52  ;;  %v4966_v52 = vld [vmem:[%s7840_s9 + $0x40] sm:$0xff]  ;;  %v4984_v54 = vld [vmem:[%s7840_s9 + $0xd0] sm:$0xff] }
0x153f   :  { %v6512_v58 = vpack.c.bf16 %v4367_v46, %v4365_v56  ;;  %v4985_v56 = vld [vmem:[%s7840_s9 + $0xd8] sm:$0xff] }
0x1541   :  { %6475 = vmatpush1.bf16.msra.mxu1 %v6474_v63  ;;  %v4369_v63 = vld [vmem:[%s8633_s10 + $0x48] sm:$0xff] }
0x1542   :  { %6477 = vmatprep.subr.bf16.mxu1 %v6476_v2  ;;  %v4371_v2 = vld [vmem:[%s8633_s10 + $0x58] sm:$0xff] }
0x1543   :  { %v6516_v4 = vpack.c.bf16 %v4371_v2, %v4369_v63  ;;  %v4987_v63 = vld [vmem:[%s7840_s9 + $0xe8] sm:$0xff] }
0x1544   :  { %4195 = vmatmul.mubr.f32.vlgmr.msra.gmra.mrb[38].mxu1 %v8272_v17  ;;  %v6490_v17 = vpack.c.bf16 %v4080_v18, %v4078_v20  ;;  %v5245_v20 = vld [vmem:[%s8634_s24 + $0x4] sm:$0x3]  ;;  %v5264_v18 = vld [vmem:[%s8634_s24 + $0x6] sm:$0x3] }
0x1545   :  { %6479 = vmatpush1.bf16.msra.mxu1 %v6478_v8  ;;  %4265 = vmatprep.mubr.f32.mxu1 %v7607_v1  ;;  %v4373_v8 = vld [vmem:[%s8633_s10 + $0x68] sm:$0xff] }
0x1546   :  { %6481 = vmatprep.subr.bf16.mxu1 %v6480_v9  ;;  %v4375_v9 = vld [vmem:[%s8633_s10 + $0x78] sm:$0xff] }
0x1547   :  { %v6520_v10 = vpack.c.bf16 %v4375_v9, %v4373_v8  ;;  %v5235_v8 = vld [vmem:[%s8633_s10 + $0xb8] sm:$0xff] }
0x1549   :  { %6483 = vmatpush1.bf16.msra.mxu1 %v6482_v13  ;;  %v6522_v13 = vpack.c.bf16 %v4374_v12, %v4372_v11  ;;  %v5234_v11 = vld [vmem:[%s8633_s10 + $0xb0] sm:$0xff] }
0x154a   :  { %6485 = vmatprep.subr.bf16.mxu1 %v6484_v14 }
0x154d   :  { %6487 = vmatpush1.bf16.msra.mxu1 %v6486_v55  ;;  %v4286_v55 = vld [vmem:[%s8634_s24] sm:$0x3] }
0x154e   :  { %6489 = vmatprep.subr.bf16.mxu1 %v6488_v16  ;;  %v5226_v16 = vld [vmem:[%s8634_s24 + $0x2] sm:$0x3] }
0x1551   :  { %6491 = vmatpush1.bf16.msra.mxu1 %v6490_v17  ;;  %v6524_v17 = vpack.c.bf16 %v5231_v23, %v5229_v22 }
0x1552   :  { %6493 = vmatprep.subr.bf16.mxu1 %v6492_v60  ;;  %v4974_v60 = vld [vmem:[%s7840_s9 + $0x80] sm:$0xff] }
0x1553   :  { %v6572_v29 = vpack.c.bf16 %v4975_v25, %v4974_v60  ;;  %v5240_v60 = vld [vmem:[%s8633_s10 + $0xe0] sm:$0xff]  ;;  %v5242_v25 = vld [vmem:[%s8633_s10 + $0xf0] sm:$0xff] }
0x1555   :  { %6495 = vmatpush1.bf16.msra.mxu1 %v6494_v31  ;;  %v4976_v31 = vld [vmem:[%s7840_s9 + $0x90] sm:$0xff] }
0x1556   :  { %6497 = vmatprep.subr.bf16.mxu1 %v6496_v19  ;;  %v4977_v19 = vld [vmem:[%s7840_s9 + $0x98] sm:$0xff] }
0x1557   :  { %v6576_v33 = vpack.c.bf16 %v4977_v19, %v4976_v31  ;;  %v6538_v19 = vpack.c.bf16 %v5242_v25, %v5240_v60  ;;  %v4973_v60 = vld [vmem:[%s7840_s9 + $0x78] sm:$0xff] }
0x1559   :  { %6499 = vmatpush1.bf16.msra.mxu1 %v6498_v35  ;;  %v4978_v35 = vld [vmem:[%s7840_s9 + $0xa0] sm:$0xff] }
0x155a   :  { %6501 = vmatprep.subr.bf16.mxu1 %v6500_v36  ;;  %v4979_v36 = vld [vmem:[%s7840_s9 + $0xa8] sm:$0xff] }
0x155b   :  { %v6580_v37 = vpack.c.bf16 %v4979_v36, %v4978_v35  ;;  %v5254_v35 = vld [vmem:[%s8633_s10 + $0x138] sm:$0xff] }
0x155c   :  { %v6544_v38 = vpack.c.bf16 %v5254_v35, %v5252_v7 }
0x155d   :  { %6503 = vmatpush1.bf16.msra.mxu1 %v6502_v26  ;;  %v4980_v26 = vld [vmem:[%s7840_s9 + $0xb0] sm:$0xff] }
0x155e   :  { %6505 = vmatprep.subr.bf16.mxu1 %v6504_v40  ;;  %v4981_v40 = vld [vmem:[%s7840_s9 + $0xb8] sm:$0xff] }
0x155f   :  { %v6584_v42 = vpack.c.bf16 %v4981_v40, %v4980_v26  ;;  %v5253_v26 = vld [vmem:[%s8633_s10 + $0x130] sm:$0xff]  ;;  %v5256_v40 = vld [vmem:[%s8633_s10 + $0x148] sm:$0xff] }
0x1561   :  { %6507 = vmatpush1.bf16.msra.mxu1 %v6506_v59  ;;  %v4965_v59 = vld [vmem:[%s7840_s9 + $0x38] sm:$0xff] }
0x1562   :  { %6509 = vmatprep.subr.bf16.mxu1 %v6508_v53  ;;  %v6586_v48 = vpack.c.bf16 %v4965_v59, %v4964_v43  ;;  %v4967_v53 = vld [vmem:[%s7840_s9 + $0x48] sm:$0xff]  ;;  %v5255_v59 = vld [vmem:[%s8633_s10 + $0x140] sm:$0xff] }
0x1563   :  { %v6590_v46 = vpack.c.bf16 %v4967_v53, %v4966_v52  ;;  %v5259_v53 = vld [vmem:[%s8633_s10 + $0x160] sm:$0xff] }
0x1564   :  { %4266 = vmatmul.mubr.f32.vlgmr.msra.gmra.mrb[38].mxu1 %v755_v47  ;;  %v4983_v47 = vld [vmem:[%s7840_s9 + $0xc8] sm:$0xff] }
0x1565   :  { %4443 = vmatprep.mubr.f32.mxu1 %v7607_v1  ;;  %6511 = vmatpush1.bf16.msra.mxu1 %v6510_v57  ;;  %v6588_v50 = vpack.c.bf16 %v4983_v47, %v4982_v45  ;;  %v6592_v57 = vpack.c.bf16 %v4985_v56, %v4984_v54  ;;  %v5257_v45 = vld [vmem:[%s8633_s10 + $0x150] sm:$0xff]  ;;  %v5260_v47 = vld [vmem:[%s8633_s10 + $0x168] sm:$0xff] }
0x1566   :  { %6513 = vmatprep.subr.bf16.mxu1 %v6512_v58  ;;  %v4968_v58 = vld [vmem:[%s7840_s9 + $0x50] sm:$0xff]  ;;  %v5267_v56 = vld [vmem:[%s8633_s10 + $0x188] sm:$0xff] }
0x1567   :  { %v6594_v2 = vpack.c.bf16 %v4969_v61, %v4968_v58  ;;  %v5261_v54 = vld [vmem:[%s8633_s10 + $0x170] sm:$0xff]  ;;  %v5266_v61 = vld [vmem:[%s8633_s10 + $0x180] sm:$0xff] }
0x1569   :  { %6515 = vmatpush1.bf16.msra.mxu1 %v6514_v3  ;;  %v6596_v3 = vpack.c.bf16 %v4987_v63, %v4986_v62  ;;  %v5268_v62 = vld [vmem:[%s8633_s10 + $0x190] sm:$0xff]  ;;  %v5271_v63 = vld [vmem:[%s8633_s10 + $0x1a8] sm:$0xff] }
0x156a   :  { %6517 = vmatprep.subr.bf16.mxu1 %v6516_v4  ;;  %v5228_v4 = vld [vmem:[%s8633_s10 + $0x80] sm:$0xff] }
0x156b   :  { %v6526_v9 = vpack.c.bf16 %v5230_v5, %v5228_v4  ;;  %v5270_v5 = vld [vmem:[%s8633_s10 + $0x1a0] sm:$0xff] }
0x156d   :  { %6519 = vmatpush1.bf16.msra.mxu1 %v6518_v51  ;;  %v6528_v51 = vpack.c.bf16 %v5235_v8, %v5233_v6  ;;  %v5272_v6 = vld [vmem:[%s8633_s10 + $0x1b0] sm:$0xff]  ;;  %v5275_v8 = vld [vmem:[%s8633_s10 + $0x1c8] sm:$0xff] }
0x156e   :  { %6521 = vmatprep.subr.bf16.mxu1 %v6520_v10  ;;  %v5232_v10 = vld [vmem:[%s8633_s10 + $0xa0] sm:$0xff] }
0x1571   :  { %6523 = vmatpush1.bf16.msra.mxu1 %v6522_v13  ;;  %v5237_v13 = vld [vmem:[%s8633_s10 + $0xc8] sm:$0xff] }
0x1572   :  { %6525 = vmatprep.subr.bf16.mxu1 %v6524_v17 }
0x15f7   :  { %v3975_v14 = vpop.f32.mrb[36].mxu1  ;;  %v4061_v28 = vpop.f32.mrb[46].mxu0 }
0x15f8   :  { %v4065_v24 = vmax.f32 %v3975_v14, %v4061_v28  ;;  %v5972_v0 = vpop.f32.mrb[37].mxu1  ;;  %v6007_v15 = vpop.f32.mrb[47].mxu0  ;;  %v5239_v14 = vld [vmem:[%s8633_s10 + $0xd8] sm:$0xff] }
0x15f9   :  { %v6532_v0 = vpack.c.bf16 %v5239_v14, %v5237_v13  ;;  %v5236_v15 = vld [vmem:[%s8633_s10 + $0xc0] sm:$0xff]  ;;  %v5279_v13 = vld [vmem:[%s8633_s10 + $0x1e8] sm:$0xff]  ;;  %v5281_v14 = vld [vmem:[%s8633_s10 + $0x1f8] sm:$0xff] }
0x15fa   :  { %6009 = vmatpush3.msra.mxu0 %v4065_v24 }
0x15fb   :  { %6011 = vmatmul.mubr.msk.f32.vlgmr.msra.gmra.mrb[48].mxu0 %vm766_vm3, %v4286_v55  ;;  %6013 = vmatprep.subr.mxu0 %v7607_v1  ;;  %v5238_v55 = vld [vmem:[%s8633_s10 + $0xd0] sm:$0xff] }
0x15fc   :  { %6014 = vmatpush3.msra.mxu0 %v4065_v24  ;;  %6015 = vmatprep.mubr.msk.f32.mxu0 %vm7606_vm0, %v7607_v1  ;;  %v6534_v23 = vpack.c.bf16 %v5238_v55, %v5236_v15  ;;  %v5280_v15 = vld [vmem:[%s8633_s10 + $0x1f0] sm:$0xff]  ;;  %v4970_v55 = vld [vmem:[%s7840_s9 + $0x60] sm:$0xff] }
0x15fd   :  { %6018 = vmatprep.subr.mxu0 %v7607_v1 }
0x15ff   :  { %6016 = vmatmul.mubr.msk.f32.vlgmr.msra.gmra.mrb[50].mxu0 %vm766_vm3, %v5226_v16  ;;  %v5241_v16 = vld [vmem:[%s8633_s10 + $0xe8] sm:$0xff] }
0x1600   :  { %6019 = vmatpush3.msra.mxu0 %v4065_v24  ;;  %6020 = vmatprep.mubr.msk.f32.mxu0 %vm7606_vm0, %v7607_v1 }
0x1601   :  { %6023 = vmatprep.subr.mxu0 %v7607_v1 }
0x1603   :  { %6021 = vmatmul.mubr.msk.f32.vlgmr.msra.gmra.mrb[52].mxu0 %vm766_vm3, %v5245_v20  ;;  %v5243_v20 = vld [vmem:[%s8633_s10 + $0xf8] sm:$0xff] }
0x1604   :  { %6024 = vmatpush3.msra.mxu0 %v4065_v24  ;;  %6025 = vmatprep.mubr.msk.f32.mxu0 %vm7606_vm0, %v7607_v1  ;;  %v6530_v24 = vpack.c.bf16 %v5234_v11, %v5232_v10  ;;  %v6536_v17 = vpack.c.bf16 %v5243_v20, %v5241_v16  ;;  %v5274_v11 = vld [vmem:[%s8633_s10 + $0x1c0] sm:$0xff]  ;;  %v4971_v16 = vld [vmem:[%s7840_s9 + $0x68] sm:$0xff] }
0x1605   :  { %6573 = vmatprep.subr.bf16.mxu0 %v6572_v29  ;;  %v5250_v29 = vld [vmem:[%s8633_s10 + $0x118] sm:$0xff]  ;;  %v6598_v20 = vpack.c.bf16 %v4971_v16, %v4970_v55 }
0x1607   :  { %6026 = vmatmul.mubr.msk.f32.vlgmr.msra.gmra.mrb[54].mxu0 %vm766_vm3, %v5264_v18 }
0x1608   :  { %6575 = vmatpush3.bf16.msra.mxu0 %v6574_v32  ;;  %v6540_v32 = vpack.c.bf16 %v5250_v29, %v5248_v27  ;;  %v4272_v27 = vld [vmem:[#allocation47] sm:$0x3] }
0x1609   :  { %6577 = vmatprep.subr.bf16.mxu0 %v6576_v33  ;;  %v5247_v33 = vld [vmem:[%s8633_s10 + $0x100] sm:$0xff]  ;;  %v4277_v29 = vrot.slane %v4272_v27, %v8108_v44 }
0x160c   :  { %6579 = vmatpush3.bf16.msra.mxu0 %v6578_v21 }
0x160d   :  { %6581 = vmatprep.subr.bf16.mxu0 %v6580_v37  ;;  %v6542_v37 = vpack.c.bf16 %v5249_v34, %v5247_v33 }
0x1610   :  { %6583 = vmatpush3.bf16.msra.mxu0 %v6582_v41  ;;  %v5258_v41 = vld [vmem:[%s8633_s10 + $0x158] sm:$0xff] }
0x1611   :  { %6585 = vmatprep.subr.bf16.mxu0 %v6584_v42  ;;  %v6546_v42 = vpack.c.bf16 %v5253_v26, %v5251_v39  ;;  %v6548_v43 = vpack.c.bf16 %v5258_v41, %v5256_v40 }
0x1614   :  { %6587 = vmatpush3.bf16.msra.mxu0 %v6586_v48  ;;  %v5262_v48 = vld [vmem:[%s8633_s10 + $0x178] sm:$0xff] }
0x1615   :  { %6589 = vmatprep.subr.bf16.mxu0 %v6588_v50  ;;  %v6550_v50 = vpack.c.bf16 %v5257_v45, %v5255_v59  ;;  %v6552_v52 = vpack.c.bf16 %v5262_v48, %v5260_v47 }
0x1618   :  { %6591 = vmatpush3.bf16.msra.mxu0 %v6590_v46  ;;  %v5269_v46 = vld [vmem:[%s8633_s10 + $0x198] sm:$0xff] }
0x1619   :  { %6593 = vmatprep.subr.bf16.mxu0 %v6592_v57  ;;  %v6554_v57 = vpack.c.bf16 %v5261_v54, %v5259_v53  ;;  %v6556_v58 = vpack.c.bf16 %v5269_v46, %v5267_v56 }
0x161c   :  { %6595 = vmatpush3.bf16.msra.mxu0 %v6594_v2  ;;  %v5273_v2 = vld [vmem:[%s8633_s10 + $0x1b8] sm:$0xff] }
0x161d   :  { %6597 = vmatprep.subr.bf16.mxu0 %v6596_v3  ;;  %v6558_v3 = vpack.c.bf16 %v5268_v62, %v5266_v61  ;;  %v6560_v4 = vpack.c.bf16 %v5273_v2, %v5271_v63 }
0x1620   :  { %6599 = vmatpush3.bf16.msra.mxu0 %v6598_v20 }
0x16ce   :  { %v4356_v12 = vpop.f32.mrb[48].mxu0 }
0x16cf   :  { %5225 = vmatmul.mubr.msk.f32.vlgmr.msra.gmra.mrb[38].mxu1 %vm681_vm4, %v4356_v12  ;;  %v6012_v28 = vpop.f32.mrb[49].mxu0  ;;  %v5276_v12 = vld [vmem:[%s8633_s10 + $0x1d0] sm:$0xff] }
0x16d0   :  { %6527 = vmatpush1.bf16.msra.mxu1 %v6526_v9  ;;  %4611 = vmatprep.mubr.f32.mxu1 %v7607_v1  ;;  %v5277_v9 = vld [vmem:[%s8633_s10 + $0x1d8] sm:$0xff]  ;;  %v6566_v28 = vpack.c.bf16 %v5276_v12, %v5274_v11 }
0x16d1   :  { %6529 = vmatprep.subr.bf16.mxu1 %v6528_v51  ;;  %v6562_v51 = vpack.c.bf16 %v5272_v6, %v5270_v5  ;;  %v6564_v10 = vpack.c.bf16 %v5277_v9, %v5275_v8 }
0x16d2   :  { %v4523_v18 = vpop.f32.mrb[50].mxu0 }
0x16d3   :  { %v6017_v22 = vpop.f32.mrb[51].mxu0 }
0x16d4   :  { %6531 = vmatpush1.bf16.msra.mxu1 %v6530_v24  ;;  %v6568_v24 = vpack.c.bf16 %v5281_v14, %v5279_v13  ;;  %v4989_v22 = vld [vmem:[%s7840_s9 + $0xf8] sm:$0xff] }
0x16d5   :  { %6533 = vmatprep.subr.bf16.mxu1 %v6532_v0  ;;  %v5278_v0 = vld [vmem:[%s8633_s10 + $0x1e0] sm:$0xff] }
0x16d6   :  { %v4691_v30 = vpop.f32.mrb[52].mxu0 }
0x16d7   :  { %v6022_v31 = vpop.f32.mrb[53].mxu0 }
0x16d8   :  { %6535 = vmatpush1.bf16.msra.mxu1 %v6534_v23 }
0x16d9   :  { %6537 = vmatprep.subr.bf16.mxu1 %v6536_v17  ;;  %v4972_v17 = vld [vmem:[%s7840_s9 + $0x70] sm:$0xff] }
0x16da   :  { %v8502_v36 = vpop.f32.mrb[54].mxu0  ;;  %v6602_v25 = vpack.c.bf16 %v4973_v60, %v4972_v17 }
0x16db   :  { %v6027_v21 = vpop.f32.mrb[55].mxu0 }
0x16dc   :  { %6539 = vmatpush1.bf16.msra.mxu1 %v6538_v19 }
0x16dd   :  { %6541 = vmatprep.subr.bf16.mxu1 %v6540_v32 }
0x16df   :  { %5244 = vmatmul.mubr.msk.f32.vlgmr.msra.gmra.mrb[38].mxu1 %vm681_vm4, %v4523_v18  ;;  %v4988_v18 = vld [vmem:[%s7840_s9 + $0xf0] sm:$0xff]  ;;  %s7611_s9 = smov [#allocation50]  }
0x16e0   :  { %6543 = vmatpush1.bf16.msra.mxu1 %v6542_v37  ;;  %4779 = vmatprep.mubr.f32.mxu1 %v7607_v1  ;;  %v6600_v23 = vpack.c.bf16 %v4989_v22, %v4988_v18  ;;  %s5075_s5 = sshll.u32 %s7611_s9, 4  ;;  %s5076_s5 = int_to_ptr.vmem [resolvable:$true] %s5075_s5 }
0x16e1   :  { %6545 = vmatprep.subr.bf16.mxu1 %v6544_v38  ;;  %s7466_s27 = scalar_lea.vmem %s5076_s5, 32  ;;  %p7471_p11 = scmp.lt.s32.totalorder %s5076_s5, %s5076_s5 }
0x16e2   :  { %6601 = vmatprep.subr.bf16.mxu0 %v6600_v23  ;;  %p7467_p10 = scmp.ne.s32.totalorder %s5076_s5, %s7466_s27  ;;  %p7472_p12 = scmp.lt.s32.totalorder %s7466_s27, %s7466_s27 }
0x16e3   :  { %6603 = vmatpush3.bf16.msra.mxu0 %v6602_v25 }
0x16e4   :  { %6547 = vmatpush1.bf16.msra.mxu1 %v6546_v42  ;;  %p7473_p13 = por %p7472_p12, %p7471_p11 }
0x16e5   :  { %6549 = vmatprep.subr.bf16.mxu1 %v6548_v43 }
0x16e6   :  { %p7474_p0 = pnand %p7473_p13, %p7467_p10 }
0x16e8   :  { %6551 = vmatpush1.bf16.msra.mxu1 %v6550_v50 }
0x16e9   :  { %6553 = vmatprep.subr.bf16.mxu1 %v6552_v52 }
0x16ec   :  { %6555 = vmatpush1.bf16.msra.mxu1 %v6554_v57 }
0x16ed   :  { %6557 = vmatprep.subr.bf16.mxu1 %v6556_v58 }
0x16ef   :  { %5263 = vmatmul.mubr.msk.f32.vlgmr.msra.gmra.mrb[38].mxu1 %vm681_vm4, %v4691_v30  ;;  %v4281_v30 = vrot.slane %v4272_v27, %v8113_v49 }
0x16f0   :  { %6559 = vmatpush1.bf16.msra.mxu1 %v6558_v3  ;;  %4947 = vmatprep.mubr.f32.mxu1 %v7607_v1  ;;  %v6570_v1 = vpack.c.bf16 %v5280_v15, %v5278_v0 }
0x16f1   :  { %6561 = vmatprep.subr.bf16.mxu1 %v6560_v4 }
0x16f4   :  { %6563 = vmatpush1.bf16.msra.mxu1 %v6562_v51 }
0x16f5   :  { %6565 = vmatprep.subr.bf16.mxu1 %v6564_v10 }
0x16f8   :  { %6567 = vmatpush1.bf16.msra.mxu1 %v6566_v28 }
0x16f9   :  { %6569 = vmatprep.subr.bf16.mxu1 %v6568_v24 }
0x16fc   :  { %6571 = vmatpush1.bf16.msra.mxu1 %v6570_v1 }
0x16ff   :  { %5282 = vmatmul.mubr.msk.f32.vlgmr.msra.gmra.mrb[38].mxu1 %vm681_vm4, %v8502_v36  ;;  %v5283_v36 = vld [vmem:[#allocation49] ss:$0 sm:$0xff] }
0x17d2   :  { %v4949_v31 = vpop.f32.mrb[38].mxu1 }
0x17d3   :  { %v6606_v19 = vadd.f32 %v4949_v31, %v4277_v29  ;;  %v4951_v32 = vpop.f32.mrb[39].mxu1 }
0x17d4   :  { %v6607_v33 = vadd.f32 %v4951_v32, %v4281_v30 }
0x17d5   :  { %v4956_v7 = vmax.f32 %v6606_v19, 0.0 }
0x17d6   :  { %v4957_v34 = vmax.f32 %v6607_v33, 0.0 }
0x17d8   :  { %5061 = vmatprep.mubr.f32.mxu0 %v4957_v34 }
0x17d9   :  { %5062 = vmatmul.mubr.f32.vlgmr.msra.gmra.mrb[56].mxu0 %v4956_v7 }
0x18ac   :  { %v5583_v35 = vpop.f32.mrb[56].mxu0 }
0x18ad   :  { %v5584_v21 = vpop.f32.mrb[57].mxu0 }
0x18ae   :  { %v5585_v37 = vadd.f32 %v5584_v21, %v5583_v35 }
0x18b0   :  { %v5064_v38 = vadd.f32 %v5585_v37, %v5283_v36 }
0x18b2   :  { %5068 = vst.msk [vmem:[#allocation50] sm:$0x3] %vm5067_vm8, %v5064_v38 }
0x18b3   :  { %7477 = shalt.err (!%p7474_p0)
}
0x18b4   :  { %s7478_s11 = scalar_lea.hbm %s7850_s29, 32 }
0x18b5   :  { %p7479_p1 = scmp.ne.s32.totalorder %s7850_s29, %s7478_s11  ;;  %p7482_p2 = scmp.lt.u32.totalorder %s7478_s11, %s7850_s29 }
0x18b7   :  { %p7484_p3 = pnand %p7482_p2, %p7479_p1 }
0x18b9   :  { %7487 = shalt.err (!%p7484_p3)
}
0x18ba   :  { %5078 = dma.vmem_to_hbm [thread:$0]  %s5076_s5, 32, %s7850_s29, [#allocation4]  }
0x18bb   :  { %7520 = dma.done.wait [#allocation4], 32  }
0x18bc   :  { %7521 = vsyncadd [#allocation4], 4294967264 }
0x18bd   :  { %5082 = vsyncpa [#allocation3], 1 }
0x18be   :  { %5083 = vsyncpa [#allocation6], 1 }
0x18bf   :  { %5084 = vsyncpa [#allocation9], 1 }
0x18c0   :  { %5085 = vsyncpa [#allocation12], 1 }
0x18c1   :  { %5086 = vsyncpa [#allocation15], 1 }
0x18c2   :  { %5087 = vsyncpa [#allocation18], 1 }
0x18c3   :  { %5088 = vsyncpa [#allocation21], 1 }
0x18c4   :  { %5089 = vsyncpa [#allocation24], 1 }
0x18c5   :  { %5090 = vsyncpa [#allocation27], 1 }
0x18c6   :  { %5091 = vsyncpa [#allocation30], 1 }
0x18c7   :  { %5092 = vsyncpa [#allocation33], 1 }
0x18c8   :  { %5093 = vsyncpa [#allocation36], 1 }
0x18c9   :  { %5094 = vsyncpa [#allocation39], 1 }
0x18ca   :  { %5095 = vsyncpa [#allocation42], 1 }
0x18cb   :  { %5096 = vsyncpa [#allocation45], 1 }
0x18cc   :  { %5097 = vsyncpa [#allocation48], 1 }
0x18cd   :  { %5098 = vsyncpa [#allocation4], 1 }

</bundles_post_ra>
